<compile_context>
chip_gen: v7x
topology: tpu7x:2x2x1
jax: 0.10.0
libtpu: 0.0.40
codegen_flags: <defaults>
</compile_context>

<pallas_src>
import functools

import jax
import jax.numpy as jnp
from jax import lax
from jax.experimental import pallas as pl
from jax.experimental.pallas import tpu as pltpu

LN_EPS = 1e-5
NEG_SLOPE = 0.2


def _round_up(v, m):
    return (v + m - 1) // m * m


def _ln_lrelu(h, gamma, beta):
    # Unpadded LayerNorm (biased variance, like torch.nn.LayerNorm) + LeakyReLU(0.2).
    mu = jnp.mean(h, axis=-1, keepdims=True)
    var = jnp.mean((h - mu) ** 2, axis=-1, keepdims=True)
    h = (h - mu) * lax.rsqrt(var + LN_EPS) * gamma + beta
    return jnp.where(h >= 0, h, NEG_SLOPE * h)


def _masked_ln_lrelu(h, gamma, beta, ch_mask, c_valid):
    # LayerNorm over the first c_valid channels only. Padded channels of `h` are exactly 0
    # on entry and gamma/beta are zero-padded, so padded channels stay exactly 0 on exit.
    inv_c = 1.0 / float(c_valid)
    mu = jnp.sum(h, axis=-1, keepdims=True) * inv_c
    centered = (h - mu) * ch_mask
    var = jnp.sum(centered * centered, axis=-1, keepdims=True) * inv_c
    hn = centered * lax.rsqrt(var + LN_EPS) * gamma + beta
    return jnp.where(hn >= 0, hn, NEG_SLOPE * hn)


def edgeconv_kernel(idx_ref, ea_ref,
                    xw1s_ref, xw1t_ref, b1_ref, g1_ref, be1_ref,
                    w2_ref, b2_ref, g2_ref, be2_ref, mask_ref,
                    out_ref,
                    *, c_valid):
    # Accumulator init at the start of each core-slab's edge loop.
    @pl.when(pl.program_id(1) == 0)
    def _init():
        out_ref[...] = jnp.zeros(out_ref.shape, out_ref.dtype)

    tE = idx_ref.shape[0]
    n_pad = xw1s_ref.shape[0]

    # One-hot selection matrices for this tile of edges: [tE, N_pad]. tgt one-hot is reused
    # for both gather and scatter (single build per tile).
    node_iota = lax.broadcasted_iota(jnp.int32, (tE, n_pad), 1)
    src_oh = (idx_ref[:, 0:1] == node_iota).astype(jnp.float32)
    tgt_oh = (idx_ref[:, 1:2] == node_iota).astype(jnp.float32)

    # Gather + Linear1 fused: h = src_oh @ (x W1s) + tgt_oh @ (x W1t) + b1   -> [tE, C_pad]
    h = (jnp.dot(src_oh, xw1s_ref[...], preferred_element_type=jnp.float32)
         + jnp.dot(tgt_oh, xw1t_ref[...], preferred_element_type=jnp.float32)
         + b1_ref[...])

    ch_mask = mask_ref[...]
    h = _masked_ln_lrelu(h, g1_ref[...], be1_ref[...], ch_mask, c_valid)
    h = jnp.dot(h, w2_ref[...], preferred_element_type=jnp.float32) + b2_ref[...]
    h = _masked_ln_lrelu(h, g2_ref[...], be2_ref[...], ch_mask, c_valid)

    # Per-edge weighting. Padded tail edges have ea == 0 -> contribute exactly nothing.
    h = h * ea_ref[...]                                            # [tE, C_pad] * [tE, 1]

    # Scatter-add into nodes, reusing tgt_oh with a dim-0-contracted dot on the MXU:
    #   out += tgt_oh^T @ h   ([N_pad, tE] x [tE, C_pad])
    out_ref[...] += lax.dot_general(
        tgt_oh, h,
        dimension_numbers=(((0,), (0,)), ((), ())),
        preferred_element_type=jnp.float32)


def edge_conv(x, edge_index, edge_attr, params, *, edge_tile=256, num_core_splits=2):
    """Pallas EdgeConv forward. x: [N, C] f32, edge_index: [2, E] int32, edge_attr: [E] f32."""
    N, C = x.shape
    E = edge_index.shape[1]
    w1s, w1t, b1, g1, be1, w2, b2, g2, be2 = params

    # Lane-dense channels (x128), sublane-aligned nodes (x8), tile-aligned edges.
    C_pad = _round_up(C, 128)
    N_pad = _round_up(N, 8)
    tE = edge_tile
    nsplit = num_core_splits
    E_pad = _round_up(max(E, 1), nsplit * tE)
    tiles_per_split = E_pad // (nsplit * tE)

    def pad2(a, r, c):
        return jnp.pad(a, ((0, r - a.shape[0]), (0, c - a.shape[1])))

    x_p = pad2(x.astype(jnp.float32), N_pad, C_pad)
    w1s_p = pad2(w1s, C_pad, C_pad)
    w1t_p = pad2(w1t, C_pad, C_pad)
    # Linear1 folded into the node features ONCE, in the wrapper (hoisted out of the kernel).
    # Exactly equal to the reference: (onehot @ x) @ W == onehot @ (x @ W).
    xw1s = jnp.dot(x_p, w1s_p, precision=lax.Precision.HIGHEST,
                   preferred_element_type=jnp.float32)
    xw1t = jnp.dot(x_p, w1t_p, precision=lax.Precision.HIGHEST,
                   preferred_element_type=jnp.float32)

    w2_p = pad2(w2, C_pad, C_pad)
    b1_p = pad2(b1, 1, C_pad)
    g1_p = pad2(g1, 1, C_pad)
    be1_p = pad2(be1, 1, C_pad)
    b2_p = pad2(b2, 1, C_pad)
    g2_p = pad2(g2, 1, C_pad)
    be2_p = pad2(be2, 1, C_pad)
    ch_mask = (jnp.arange(C_pad) < C).astype(jnp.float32).reshape(1, C_pad)

    # src/tgt merged into one [E_pad, 2] int32 array; edge_attr stays f32.
    idx = jnp.pad(edge_index.astype(jnp.int32).T, ((0, E_pad - E), (0, 0)))
    ea = jnp.pad(edge_attr.astype(jnp.float32), (0, E_pad - E)).reshape(E_pad, 1)

    def const(shape):
        return pl.BlockSpec(shape, lambda c, e: (0, 0))

    def edge_spec(width):
        return pl.BlockSpec((tE, width), lambda c, e: (c * tiles_per_split + e, 0))

    num_tiles = nsplit * tiles_per_split
    flops_tile = (2 * 2 * tE * N_pad * C_pad      # fused gather (2 dots)
                  + 2 * tE * C_pad * C_pad        # second Linear
                  + 2 * tE * N_pad * C_pad)       # scatter
    cost = pl.CostEstimate(
        flops=num_tiles * flops_tile,
        transcendentals=num_tiles * 2 * tE,
        bytes_accessed=4 * (2 * N_pad * C_pad          # xW tables
                            + C_pad * C_pad            # w2
                            + 7 * C_pad                # biases / gamma / beta / mask
                            + 3 * E_pad                # idx (2 cols) + edge_attr
                            + nsplit * N_pad * C_pad), # per-core output slabs
    )

    out_p = pl.pallas_call(
        functools.partial(edgeconv_kernel, c_valid=C),
        out_shape=jax.ShapeDtypeStruct((nsplit, N_pad, C_pad), jnp.float32),
        grid_spec=pltpu.PrefetchScalarGridSpec(
            num_scalar_prefetch=0,
            grid=(nsplit, tiles_per_split),
            in_specs=[
                edge_spec(2), edge_spec(1),                     # idx (src,tgt), edge_attr
                const((N_pad, C_pad)), const((N_pad, C_pad)),   # xW1s, xW1t (resident)
                const((1, C_pad)), const((1, C_pad)), const((1, C_pad)),  # b1, g1, be1
                const((C_pad, C_pad)),                          # w2
                const((1, C_pad)), const((1, C_pad)), const((1, C_pad)),  # b2, g2, be2
                const((1, C_pad)),                              # channel mask
            ],
            # Per-core output slab; accumulated across the "arbitrary" edge axis.
            out_specs=pl.BlockSpec((None, N_pad, C_pad), lambda c, e: (c, 0, 0)),
        ),
        compiler_params=pltpu.CompilerParams(
            dimension_semantics=("parallel", "arbitrary"),
            vmem_limit_bytes=48 * 1024 * 1024),
        cost_estimate=cost,
    )(idx, ea, xw1s, xw1t, b1_p, g1_p, be1_p, w2_p, b2_p, g2_p, be2_p, ch_mask)

    # Reduce the per-core slabs and strip padding.
    return out_p.sum(axis=0)[:N, :C]


def edge_conv_reference(x, edge_index, edge_attr, params):
    """Pure-JAX reference mirroring the PyTorch module."""
    w1s, w1t, b1, g1, be1, w2, b2, g2, be2 = params
    src, tgt = edge_index[0], edge_index[1]
    source_x = x[src]
    target_x = x[tgt]
    h = source_x @ w1s + target_x @ w1t + b1      # == cat([sx, tx], 1) @ W1 + b1
    h = _ln_lrelu(h, g1, be1)
    h = h @ w2 + b2
    h = _ln_lrelu(h, g2, be2)
    h = h * edge_attr[:, None]
    out = jnp.zeros_like(x).at[tgt].add(h)
    return out


def make_params(key, c):
    ks = jax.random.split(key, 9)
    w1s = 0.1 * jax.random.normal(ks[0], (c, c), jnp.float32)
    w1t = 0.1 * jax.random.normal(ks[1], (c, c), jnp.float32)
    b1 = 0.1 * jax.random.normal(ks[2], (1, c), jnp.float32)
    g1 = 1.0 + 0.1 * jax.random.normal(ks[3], (1, c), jnp.float32)
    be1 = 0.1 * jax.random.normal(ks[4], (1, c), jnp.float32)
    w2 = 0.1 * jax.random.normal(ks[5], (c, c), jnp.float32)
    b2 = 0.1 * jax.random.normal(ks[6], (1, c), jnp.float32)
    g2 = 1.0 + 0.1 * jax.random.normal(ks[7], (1, c), jnp.float32)
    be2 = 0.1 * jax.random.normal(ks[8], (1, c), jnp.float32)
    return (w1s, w1t, b1, g1, be1, w2, b2, g2, be2)


if __name__ == "__main__":
    N, C, E = 8, 32, 16   # in_channels == out_channels (required by zeros_like + index_add_)
    key = jax.random.PRNGKey(0)
    kx, ke, ka, kp = jax.random.split(key, 4)

    x = jax.random.normal(kx, (N, C), jnp.float32)
    edge_index = jax.random.randint(ke, (2, E), 0, N, dtype=jnp.int32)
    edge_attr = jax.random.uniform(ka, (E,), jnp.float32)
    params = make_params(kp, C)

    out = edge_conv(x, edge_index, edge_attr, params)
    out = jax.block_until_ready(out)

    ref = edge_conv_reference(x, edge_index, edge_attr, params)
    assert out.shape == (N, C) and out.dtype == jnp.float32
    assert jnp.allclose(out, ref, atol=1e-4, rtol=1e-4), "mismatch vs reference"

    print("KERNEL_OK")
</pallas_src>

<mosaic_0001>
module attributes {stable_mosaic.version = 11 : i64} {
  func.func @edgeconv_kernel(%arg0: i32, %arg1: i32, %arg2: memref<256x2xi32, #tpu.memory_space<vmem>>, %arg3: memref<256x1xf32, #tpu.memory_space<vmem>>, %arg4: memref<8x128xf32, #tpu.memory_space<vmem>>, %arg5: memref<8x128xf32, #tpu.memory_space<vmem>>, %arg6: memref<1x128xf32, #tpu.memory_space<vmem>>, %arg7: memref<1x128xf32, #tpu.memory_space<vmem>>, %arg8: memref<1x128xf32, #tpu.memory_space<vmem>>, %arg9: memref<128x128xf32, #tpu.memory_space<vmem>>, %arg10: memref<1x128xf32, #tpu.memory_space<vmem>>, %arg11: memref<1x128xf32, #tpu.memory_space<vmem>>, %arg12: memref<1x128xf32, #tpu.memory_space<vmem>>, %arg13: memref<1x128xf32, #tpu.memory_space<vmem>>, %arg14: memref<1x8x128xf32, #tpu.memory_space<vmem>>) attributes {dimension_semantics = [#tpu.dimension_semantics<parallel>, #tpu.dimension_semantics<arbitrary>], iteration_bounds = array<i64: 2, 1>, scalar_prefetch = 0 : i64, scratch_operands = 0 : i64, tpu.core_type = #tpu.core_type<tc>, window_params = [{transform_indices = @transform_0, window_bounds = array<i64: 256, 2>}, {transform_indices = @transform_1, window_bounds = array<i64: 256, 1>}, {pipeline_mode = #tpu.pipeline_mode<synchronous>, transform_indices = @transform_2, window_bounds = array<i64: 8, 128>}, {pipeline_mode = #tpu.pipeline_mode<synchronous>, transform_indices = @transform_3, window_bounds = array<i64: 8, 128>}, {pipeline_mode = #tpu.pipeline_mode<synchronous>, transform_indices = @transform_4, window_bounds = array<i64: 1, 128>}, {pipeline_mode = #tpu.pipeline_mode<synchronous>, transform_indices = @transform_5, window_bounds = array<i64: 1, 128>}, {pipeline_mode = #tpu.pipeline_mode<synchronous>, transform_indices = @transform_6, window_bounds = array<i64: 1, 128>}, {pipeline_mode = #tpu.pipeline_mode<synchronous>, transform_indices = @transform_7, window_bounds = array<i64: 128, 128>}, {pipeline_mode = #tpu.pipeline_mode<synchronous>, transform_indices = @transform_8, window_bounds = array<i64: 1, 128>}, {pipeline_mode = #tpu.pipeline_mode<synchronous>, transform_indices = @transform_9, window_bounds = array<i64: 1, 128>}, {pipeline_mode = #tpu.pipeline_mode<synchronous>, transform_indices = @transform_10, window_bounds = array<i64: 1, 128>}, {pipeline_mode = #tpu.pipeline_mode<synchronous>, transform_indices = @transform_11, window_bounds = array<i64: 1, 128>}, {transform_indices = @transform_12, window_bounds = array<i64: 1, 8, 128>}]} {
    %c0_i32 = arith.constant 0 : i32
    %0 = arith.cmpi eq, %arg1, %c0_i32 : i32
    %1 = arith.extui %0 : i1 to i32
    %c0_i32_0 = arith.constant 0 : i32
    %2 = arith.cmpi ne, %1, %c0_i32_0 : i32
    scf.if %2 {
      %cst_48 = arith.constant 0.000000e+00 : f32
      %96 = vector.broadcast %cst_48 : f32 to vector<8x128xf32>
      %c0_49 = arith.constant 0 : index
      %c0_50 = arith.constant 0 : index
      %c0_51 = arith.constant 0 : index
      %97 = vector.load %arg14[%c0_49, %c0_50, %c0_51] : memref<1x8x128xf32, #tpu.memory_space<vmem>>, vector<1x8x128xf32>
      %98 = vector.shape_cast %97 : vector<1x8x128xf32> to vector<8x128xf32>
      %99 = vector.shape_cast %96 : vector<8x128xf32> to vector<1x8x128xf32>
      tpu.vector_store %arg14[%c0_49, %c0_50, %c0_51], %99 {strides = array<i32>} : memref<1x8x128xf32, #tpu.memory_space<vmem>>, vector<1x8x128xf32>,
    } else {
    }
    %3 = tpu.iota {dimensions = array<i32: 1>} : vector<256x8xi32>
    %c0 = arith.constant 0 : index
    %c0_1 = arith.constant 0 : index
    %4 = vector.load %arg2[%c0, %c0_1] : memref<256x2xi32, #tpu.memory_space<vmem>>, vector<256x1xi32>
    %5 = vector.broadcast %4 : vector<256x1xi32> to vector<256x8xi32>
    %6 = arith.cmpi eq, %5, %3 : vector<256x8xi32>
    %7 = arith.extui %6 : vector<256x8xi1> to vector<256x8xi32>
    %8 = arith.sitofp %7 : vector<256x8xi32> to vector<256x8xf32>
    %c0_2 = arith.constant 0 : index
    %c1 = arith.constant 1 : index
    %9 = vector.load %arg2[%c0_2, %c1] : memref<256x2xi32, #tpu.memory_space<vmem>>, vector<256x1xi32>
    %10 = vector.broadcast %9 : vector<256x1xi32> to vector<256x8xi32>
    %11 = arith.cmpi eq, %10, %3 : vector<256x8xi32>
    %12 = arith.extui %11 : vector<256x8xi1> to vector<256x8xi32>
    %13 = arith.sitofp %12 : vector<256x8xi32> to vector<256x8xf32>
    %c0_3 = arith.constant 0 : index
    %c0_4 = arith.constant 0 : index
    %14 = vector.load %arg4[%c0_3, %c0_4] : memref<8x128xf32, #tpu.memory_space<vmem>>, vector<8x128xf32>
    %cst = arith.constant dense<0.000000e+00> : vector<256x128xf32>
    %15 = tpu.matmul %8, %14, %cst {dimension_numbers = #tpu.dot_dimension_numbers<[1], [0], [0], [1], [0, 0, 1, 1], [], []>} : vector<256x8xf32>, vector<8x128xf32>, vector<256x128xf32> -> vector<256x128xf32>
    %c0_5 = arith.constant 0 : index
    %c0_6 = arith.constant 0 : index
    %16 = vector.load %arg5[%c0_5, %c0_6] : memref<8x128xf32, #tpu.memory_space<vmem>>, vector<8x128xf32>
    %cst_7 = arith.constant dense<0.000000e+00> : vector<256x128xf32>
    %17 = tpu.matmul %13, %16, %cst_7 {dimension_numbers = #tpu.dot_dimension_numbers<[1], [0], [0], [1], [0, 0, 1, 1], [], []>} : vector<256x8xf32>, vector<8x128xf32>, vector<256x128xf32> -> vector<256x128xf32>
    %18 = arith.addf %15, %17 : vector<256x128xf32>
    %c0_8 = arith.constant 0 : index
    %c0_9 = arith.constant 0 : index
    %19 = vector.load %arg6[%c0_8, %c0_9] : memref<1x128xf32, #tpu.memory_space<vmem>>, vector<1x128xf32>
    %20 = vector.broadcast %19 : vector<1x128xf32> to vector<256x128xf32>
    %21 = arith.addf %18, %20 : vector<256x128xf32>
    %c0_10 = arith.constant 0 : index
    %c0_11 = arith.constant 0 : index
    %22 = vector.load %arg13[%c0_10, %c0_11] : memref<1x128xf32, #tpu.memory_space<vmem>>, vector<1x128xf32>
    %c0_12 = arith.constant 0 : index
    %c0_13 = arith.constant 0 : index
    %23 = vector.load %arg7[%c0_12, %c0_13] : memref<1x128xf32, #tpu.memory_space<vmem>>, vector<1x128xf32>
    %c0_14 = arith.constant 0 : index
    %c0_15 = arith.constant 0 : index
    %24 = vector.load %arg8[%c0_14, %c0_15] : memref<1x128xf32, #tpu.memory_space<vmem>>, vector<1x128xf32>
    %cst_16 = arith.constant dense<0.000000e+00> : vector<256xf32>
    %25 = vector.multi_reduction <add>, %21, %cst_16 [1] : vector<256x128xf32> to vector<256xf32>
    %26 = vector.shape_cast %25 : vector<256xf32> to vector<256x1xf32>
    %cst_17 = arith.constant 3.125000e-02 : f32
    %27 = vector.broadcast %cst_17 : f32 to vector<256x1xf32>
    %28 = arith.mulf %26, %27 : vector<256x1xf32>
    %29 = vector.broadcast %28 : vector<256x1xf32> to vector<256x128xf32>
    %30 = arith.subf %21, %29 : vector<256x128xf32>
    %31 = vector.broadcast %22 : vector<1x128xf32> to vector<256x128xf32>
    %32 = arith.mulf %30, %31 : vector<256x128xf32>
    %33 = arith.mulf %32, %32 : vector<256x128xf32>
    %cst_18 = arith.constant dense<0.000000e+00> : vector<256xf32>
    %34 = vector.multi_reduction <add>, %33, %cst_18 [1] : vector<256x128xf32> to vector<256xf32>
    %35 = vector.shape_cast %34 : vector<256xf32> to vector<256x1xf32>
    %cst_19 = arith.constant 3.125000e-02 : f32
    %36 = vector.broadcast %cst_19 : f32 to vector<256x1xf32>
    %37 = arith.mulf %35, %36 : vector<256x1xf32>
    %cst_20 = arith.constant 9.99999974E-6 : f32
    %38 = vector.broadcast %cst_20 : f32 to vector<256x1xf32>
    %39 = arith.addf %37, %38 : vector<256x1xf32>
    %40 = math.rsqrt %39 : vector<256x1xf32>
    %41 = vector.broadcast %40 : vector<256x1xf32> to vector<256x128xf32>
    %42 = arith.mulf %32, %41 : vector<256x128xf32>
    %43 = vector.broadcast %23 : vector<1x128xf32> to vector<256x128xf32>
    %44 = arith.mulf %42, %43 : vector<256x128xf32>
    %45 = vector.broadcast %24 : vector<1x128xf32> to vector<256x128xf32>
    %46 = arith.addf %44, %45 : vector<256x128xf32>
    %cst_21 = arith.constant 0.000000e+00 : f32
    %47 = vector.broadcast %cst_21 : f32 to vector<256x128xf32>
    %48 = arith.cmpf oge, %46, %47 : vector<256x128xf32>
    %cst_22 = arith.constant 2.000000e-01 : f32
    %49 = vector.broadcast %cst_22 : f32 to vector<256x128xf32>
    %50 = arith.mulf %49, %46 : vector<256x128xf32>
    %51 = arith.select %48, %46, %50 : vector<256x128xi1>, vector<256x128xf32>
    %c0_23 = arith.constant 0 : index
    %c0_24 = arith.constant 0 : index
    %52 = vector.load %arg9[%c0_23, %c0_24] : memref<128x128xf32, #tpu.memory_space<vmem>>, vector<128x128xf32>
    %cst_25 = arith.constant dense<0.000000e+00> : vector<256x128xf32>
    %53 = tpu.matmul %51, %52, %cst_25 {dimension_numbers = #tpu.dot_dimension_numbers<[1], [0], [0], [1], [0, 0, 1, 1], [], []>} : vector<256x128xf32>, vector<128x128xf32>, vector<256x128xf32> -> vector<256x128xf32>
    %c0_26 = arith.constant 0 : index
    %c0_27 = arith.constant 0 : index
    %54 = vector.load %arg10[%c0_26, %c0_27] : memref<1x128xf32, #tpu.memory_space<vmem>>, vector<1x128xf32>
    %55 = vector.broadcast %54 : vector<1x128xf32> to vector<256x128xf32>
    %56 = arith.addf %53, %55 : vector<256x128xf32>
    %c0_28 = arith.constant 0 : index
    %c0_29 = arith.constant 0 : index
    %57 = vector.load %arg11[%c0_28, %c0_29] : memref<1x128xf32, #tpu.memory_space<vmem>>, vector<1x128xf32>
    %c0_30 = arith.constant 0 : index
    %c0_31 = arith.constant 0 : index
    %58 = vector.load %arg12[%c0_30, %c0_31] : memref<1x128xf32, #tpu.memory_space<vmem>>, vector<1x128xf32>
    %cst_32 = arith.constant dense<0.000000e+00> : vector<256xf32>
    %59 = vector.multi_reduction <add>, %56, %cst_32 [1] : vector<256x128xf32> to vector<256xf32>
    %60 = vector.shape_cast %59 : vector<256xf32> to vector<256x1xf32>
    %cst_33 = arith.constant 3.125000e-02 : f32
    %61 = vector.broadcast %cst_33 : f32 to vector<256x1xf32>
    %62 = arith.mulf %60, %61 : vector<256x1xf32>
    %63 = vector.broadcast %62 : vector<256x1xf32> to vector<256x128xf32>
    %64 = arith.subf %56, %63 : vector<256x128xf32>
    %65 = vector.broadcast %22 : vector<1x128xf32> to vector<256x128xf32>
    %66 = arith.mulf %64, %65 : vector<256x128xf32>
    %67 = arith.mulf %66, %66 : vector<256x128xf32>
    %cst_34 = arith.constant dense<0.000000e+00> : vector<256xf32>
    %68 = vector.multi_reduction <add>, %67, %cst_34 [1] : vector<256x128xf32> to vector<256xf32>
    %69 = vector.shape_cast %68 : vector<256xf32> to vector<256x1xf32>
    %cst_35 = arith.constant 3.125000e-02 : f32
    %70 = vector.broadcast %cst_35 : f32 to vector<256x1xf32>
    %71 = arith.mulf %69, %70 : vector<256x1xf32>
    %cst_36 = arith.constant 9.99999974E-6 : f32
    %72 = vector.broadcast %cst_36 : f32 to vector<256x1xf32>
    %73 = arith.addf %71, %72 : vector<256x1xf32>
    %74 = math.rsqrt %73 : vector<256x1xf32>
    %75 = vector.broadcast %74 : vector<256x1xf32> to vector<256x128xf32>
    %76 = arith.mulf %66, %75 : vector<256x128xf32>
    %77 = vector.broadcast %57 : vector<1x128xf32> to vector<256x128xf32>
    %78 = arith.mulf %76, %77 : vector<256x128xf32>
    %79 = vector.broadcast %58 : vector<1x128xf32> to vector<256x128xf32>
    %80 = arith.addf %78, %79 : vector<256x128xf32>
    %cst_37 = arith.constant 0.000000e+00 : f32
    %81 = vector.broadcast %cst_37 : f32 to vector<256x128xf32>
    %82 = arith.cmpf oge, %80, %81 : vector<256x128xf32>
    %cst_38 = arith.constant 2.000000e-01 : f32
    %83 = vector.broadcast %cst_38 : f32 to vector<256x128xf32>
    %84 = arith.mulf %83, %80 : vector<256x128xf32>
    %85 = arith.select %82, %80, %84 : vector<256x128xi1>, vector<256x128xf32>
    %c0_39 = arith.constant 0 : index
    %c0_40 = arith.constant 0 : index
    %86 = vector.load %arg3[%c0_39, %c0_40] : memref<256x1xf32, #tpu.memory_space<vmem>>, vector<256x1xf32>
    %87 = vector.broadcast %86 : vector<256x1xf32> to vector<256x128xf32>
    %88 = arith.mulf %85, %87 : vector<256x128xf32>
    %c0_41 = arith.constant 0 : index
    %c0_42 = arith.constant 0 : index
    %c0_43 = arith.constant 0 : index
    %89 = vector.load %arg14[%c0_41, %c0_42, %c0_43] : memref<1x8x128xf32, #tpu.memory_space<vmem>>, vector<1x8x128xf32>
    %90 = vector.shape_cast %89 : vector<1x8x128xf32> to vector<8x128xf32>
    %cst_44 = arith.constant dense<0.000000e+00> : vector<8x128xf32>
    %91 = tpu.matmul %13, %88, %cst_44 {dimension_numbers = #tpu.dot_dimension_numbers<[0], [0], [1], [1], [0, 1, 1, 1], [], []>} : vector<256x8xf32>, vector<256x128xf32>, vector<8x128xf32> -> vector<8x128xf32>
    %92 = arith.addf %90, %91 : vector<8x128xf32>
    %c0_45 = arith.constant 0 : index
    %c0_46 = arith.constant 0 : index
    %c0_47 = arith.constant 0 : index
    %93 = vector.load %arg14[%c0_45, %c0_46, %c0_47] : memref<1x8x128xf32, #tpu.memory_space<vmem>>, vector<1x8x128xf32>
    %94 = vector.shape_cast %93 : vector<1x8x128xf32> to vector<8x128xf32>
    %95 = vector.shape_cast %92 : vector<8x128xf32> to vector<1x8x128xf32>
    tpu.vector_store %arg14[%c0_45, %c0_46, %c0_47], %95 {strides = array<i32>} : memref<1x8x128xf32, #tpu.memory_space<vmem>>, vector<1x8x128xf32>,
    return
  }
  func.func @transform_0(%arg0: i32, %arg1: i32) -> (i32, i32) {
    %c1_i32 = arith.constant 1 : i32
    %0 = arith.muli %arg0, %c1_i32 : i32
    %1 = arith.addi %0, %arg1 : i32
    %c0_i32 = arith.constant 0 : i32
    %c0_i32_0 = arith.constant 0 : i32
    return %1, %c0_i32 : i32, i32
  }
  func.func @transform_1(%arg0: i32, %arg1: i32) -> (i32, i32) {
    %c1_i32 = arith.constant 1 : i32
    %0 = arith.muli %arg0, %c1_i32 : i32
    %1 = arith.addi %0, %arg1 : i32
    %c0_i32 = arith.constant 0 : i32
    %c0_i32_0 = arith.constant 0 : i32
    return %1, %c0_i32 : i32, i32
  }
  func.func @transform_2(%arg0: i32, %arg1: i32) -> (i32, i32) {
    %c0_i32 = arith.constant 0 : i32
    %c0_i32_0 = arith.constant 0 : i32
    %c0_i32_1 = arith.constant 0 : i32
    return %c0_i32, %c0_i32_0 : i32, i32
  }
  func.func @transform_3(%arg0: i32, %arg1: i32) -> (i32, i32) {
    %c0_i32 = arith.constant 0 : i32
    %c0_i32_0 = arith.constant 0 : i32
    %c0_i32_1 = arith.constant 0 : i32
    return %c0_i32, %c0_i32_0 : i32, i32
  }
  func.func @transform_4(%arg0: i32, %arg1: i32) -> (i32, i32) {
    %c0_i32 = arith.constant 0 : i32
    %c0_i32_0 = arith.constant 0 : i32
    %c0_i32_1 = arith.constant 0 : i32
    return %c0_i32, %c0_i32_0 : i32, i32
  }
  func.func @transform_5(%arg0: i32, %arg1: i32) -> (i32, i32) {
    %c0_i32 = arith.constant 0 : i32
    %c0_i32_0 = arith.constant 0 : i32
    %c0_i32_1 = arith.constant 0 : i32
    return %c0_i32, %c0_i32_0 : i32, i32
  }
  func.func @transform_6(%arg0: i32, %arg1: i32) -> (i32, i32) {
    %c0_i32 = arith.constant 0 : i32
    %c0_i32_0 = arith.constant 0 : i32
    %c0_i32_1 = arith.constant 0 : i32
    return %c0_i32, %c0_i32_0 : i32, i32
  }
  func.func @transform_7(%arg0: i32, %arg1: i32) -> (i32, i32) {
    %c0_i32 = arith.constant 0 : i32
    %c0_i32_0 = arith.constant 0 : i32
    %c0_i32_1 = arith.constant 0 : i32
    return %c0_i32, %c0_i32_0 : i32, i32
  }
  func.func @transform_8(%arg0: i32, %arg1: i32) -> (i32, i32) {
    %c0_i32 = arith.constant 0 : i32
    %c0_i32_0 = arith.constant 0 : i32
    %c0_i32_1 = arith.constant 0 : i32
    return %c0_i32, %c0_i32_0 : i32, i32
  }
  func.func @transform_9(%arg0: i32, %arg1: i32) -> (i32, i32) {
    %c0_i32 = arith.constant 0 : i32
    %c0_i32_0 = arith.constant 0 : i32
    %c0_i32_1 = arith.constant 0 : i32
    return %c0_i32, %c0_i32_0 : i32, i32
  }
  func.func @transform_10(%arg0: i32, %arg1: i32) -> (i32, i32) {
    %c0_i32 = arith.constant 0 : i32
    %c0_i32_0 = arith.constant 0 : i32
    %c0_i32_1 = arith.constant 0 : i32
    return %c0_i32, %c0_i32_0 : i32, i32
  }
  func.func @transform_11(%arg0: i32, %arg1: i32) -> (i32, i32) {
    %c0_i32 = arith.constant 0 : i32
    %c0_i32_0 = arith.constant 0 : i32
    %c0_i32_1 = arith.constant 0 : i32
    return %c0_i32, %c0_i32_0 : i32, i32
  }
  func.func @transform_12(%arg0: i32, %arg1: i32) -> (i32, i32, i32) {
    %c0_i32 = arith.constant 0 : i32
    %c0_i32_0 = arith.constant 0 : i32
    %c0_i32_1 = arith.constant 0 : i32
    return %arg0, %c0_i32, %c0_i32_0 : i32, i32, i32
  }
}

</mosaic_0001>

<bundles_post_ra>
// kernel: tpu_custom_call.1
= control target key start
LH: loop header
LB: loop body
LE: loop exit
PB: predicated region body
PF: predicated region fallthrough
CT: control target
= control target key end

     0   :  { %s6052_s0 = inlined_call_operand.vmem [shape: s32[512,2], index: 0, kind: input, shape index: {}]   ;;  %s6053_s1 = inlined_call_operand.vmem [shape: f32[512,1], index: 1, kind: input, shape index: {}]   ;;  %s6054_s2 = inlined_call_operand.vmem [shape: f32[8,128], index: 2, kind: input, shape index: {}]   ;;  %s6055_s3 = inlined_call_operand.vmem [shape: f32[8,128], index: 3, kind: input, shape index: {}]   ;;  %s6056_s4 = inlined_call_operand.vmem [shape: f32[1,128], index: 4, kind: input, shape index: {}]   ;;  %s6057_s5 = inlined_call_operand.vmem [shape: f32[1,128], index: 5, kind: input, shape index: {}]   ;;  %s6058_s6 = inlined_call_operand.vmem [shape: f32[1,128], index: 6, kind: input, shape index: {}]   ;;  %s6059_s7 = inlined_call_operand.vmem [shape: f32[128,128], index: 7, kind: input, shape index: {}]   ;;  %s6060_s8 = inlined_call_operand.vmem [shape: f32[1,128], index: 8, kind: input, shape index: {}]   ;;  %s6061_s9 = inlined_call_operand.vmem [shape: f32[1,128], index: 9, kind: input, shape index: {}]   ;;  %s6062_s10 = inlined_call_operand.vmem [shape: f32[1,128], index: 10, kind: input, shape index: {}]   ;;  %s6063_s11 = inlined_call_operand.vmem [shape: f32[1,128], index: 11, kind: input, shape index: {}]   ;;  %s6064_s12 = inlined_call_operand.hbm [shape: f32[2,8,128], index: 12, kind: output, shape index: {}]  }
   0x1   :  { %6088 = sst [smem:[#allocation47_spill]] %s6052_s0 }
   0x2   :  { %6089 = sst [smem:[#allocation48_spill]] %s6053_s1 }
   0x3   :  { %6090 = sst [smem:[#allocation49_spill]] %s6054_s2 }
   0x4   :  { %17 = vsyncpa [#allocation3], 0 }
   0x5   :  { %19 = vsyncpa [#allocation3 + $0x1], 0  ;;  %s4345_s21 = smov 0   ;;  %s4347_s22 = smov 0  }
   0x6   :  { %s4349_s23 = smov 0   ;;  %s4351_s24 = smov 0  }
   0x7   :  { %s4353_s25 = smov 0   ;;  %s4355_s26 = smov 0  }
   0x8 LB: > { %s3394_s27 = sadd.s32 4294967295, %s4274_s26   ;;  %s3395_s28 = sadd.s32 4294967294, %s4274_s26   ;;  %s4274_s26 = sphi %s4355_s26, %s25_s26   ;;  %s4270_s25 = sphi %s4353_s25, %s6201_s25   ;;  %s4266_s24 = sphi %s4351_s24, %s6200_s24   ;;  %s4262_s23 = sphi %s4349_s23, %s6199_s23   ;;  %s4258_s22 = sphi %s4347_s22, %s6198_s22   ;;  %s4254_s21 = sphi %s4345_s21, %s6197_s21  }
   0x9   : > { %s37_s29 = sadd.s32 1, %s4270_s25  ;;  %s310_s30 = sadd.s32 1, %s4262_s23 }
   0xa   : > { %p39_p0 = scmp.ge.s32.totalorder %s37_s29, 2  ;;  %p320_p1 = scmp.ne.s32.totalorder %s4262_s23, %s4258_s22 }
   0xb   : > { %p321_p2 = scmp.eq.s32.totalorder %s3394_s27, 1  ;;  %p326_p3 = scmp.ne.s32.totalorder %s4258_s22, %s4254_s21 }
   0xc   : > { %s6203_s29 = smov (%p39_p0, %s37_s29), 0  ;;  %p327_p5 = scmp.eq.s32.totalorder %s3395_s28, 1 }
   0xd   : > { %p4385_p4 = por %p321_p2, %p320_p1  ;;  %s307_s14 = ssub.s32 %s4270_s25, %s6203_s29 }
   0xe   : > { %p3398_p6 = scmp.ge.s32.totalorder %s4274_s26, 1  ;;  %p308_p7 = scmp.eq.s32.totalorder %s307_s14, 0 }
   0xf   : > { %p4392_p8 = por %p327_p5, %p326_p3  ;;  %p397_p9 = scmp.lt.s32.totalorder %s4274_s26, 3 }
  0x10   : > { %s4398_s16 = scalar_select %p308_p7, %s4262_s23, %s310_s30  }
  0x11   : > { %p398_p10 = pnand %p3398_p6, %p397_p9 }
  0x13   : > { %401 = sbr.rel (%p398_p10) target bundleno = 1617 (0x651), region = 68 }
  0x1a   : > { %s3400_s17 = sshll.u32 %s4266_s24, 5  ;;  %v4276_v0 = vmov 1   ;;  %s6093_s0 = sld [smem:[#allocation47_spill]]  ;;  %v886_v9 = vld [vmem:[%s6055_s3] sm:$0xff]  ;;  %v4277_v35 = vmov 0   ;;  %v467_v36 = vlaneseq  ;;  %vm887_vm0 = vcmask 64512  }
  0x1b   : > { %4027 = vset.pattern.permute.xlu1 %v4276_v0  ;;  %4026 = vset.pattern.permute.xlu0 %v4276_v0  ;;  %p448_p11 = scmp.lt.s32.totalorder %s3400_s17, 63  ;;  %s6094_s2 = sld [smem:[#allocation49_spill]]  ;;  %v4278_v40 = vmov 0.0  }
  0x1c   : > { %3692 = vmatprep.subr.mxu0 %v886_v9  ;;  %v4484_v37 = vand.u32 127, %v467_v36  ;;  %s6118_s1 = sld [smem:[#allocation48_spill]]  ;;  %s443_s28 = sand.u32 1, %s4258_s22  }
  0x1d   : > { %s6205_s17 = smov (!%p448_p11, %s3400_s17), 63  ;;  %3693 = vmatpush3.msra.mxu0 %v886_v9  ;;  %s3399_s30 = sshll.u32 %s443_s28, 3 }
  0x1e   : > { %s6079_s18 = sshll.u32 %s6205_s17, 3 }
  0x20   : > { %s4409_s27 = scalar_lea.vmem %s6093_s0, %s6079_s18  ;;  %s6117_s0 = sshll.u32 %s6205_s17, 3 }
  0x21   : > { %v4412_v1 = vld [vmem:[%s4409_s27 + $0x10] sm:$0xff]  ;;  %v4415_v2 = vld [vmem:[%s4409_s27] sm:$0xff]  ;;  %v4420_v3 = vld [vmem:[%s4409_s27 + $0x18] sm:$0xff]  ;;  %s445_s18 = scalar_lea.vmem [#allocation2], %s3399_s30 }
  0x22   : > { %700 = vperm.xlu1 %4027, %v4412_v1   ;;  %694 = vperm.xlu0 %4026, %v4415_v2   ;;  %v4423_v4 = vld [vmem:[%s4409_s27 + $0x8] sm:$0xff]  ;;  %v4431_v6 = vld [vmem:[%s4409_s27 + $0x20] sm:$0xff]  ;;  %v4436_v7 = vld [vmem:[%s4409_s27 + $0x38] sm:$0xff]  ;;  %s5190_s19 = scalar_lea.vmem %s6118_s1, %s6117_s0  ;;  %s3540_s0 = sshll.u32 %s4266_s24, 7 }
  0x23   : > { %v4428_v5 = vld [vmem:[%s4409_s27 + $0x28] sm:$0xff]  ;;  %v4439_v8 = vld [vmem:[%s4409_s27 + $0x30] sm:$0xff]  ;;  %v477_v11 = vld [vmem:[%s4409_s27 + $0x40] sm:$0xff]  ;;  %s3315_s14 = sshll.u32 %s445_s18, 4  ;;  %s6005_s20 = scalar_lea.hbm %s6064_s12, %s3540_s0  ;;  %s6007_s14 = int_to_ptr.vmem [resolvable:$true] %s3315_s14 }
  0x24   : > { %v478_v10 = vld [vmem:[%s4409_s27 + $0x48] sm:$0xff]  ;;  %v480_v12 = vld [vmem:[%s4409_s27 + $0x58] sm:$0xff]  ;;  %v479_v13 = vld [vmem:[%s4409_s27 + $0x50] sm:$0xff]  ;;  %s4196_s1 = scalar_lea.vmem %s6007_s14, 128  ;;  %s4279_s24 = smov [#allocation2]  }
  0x25   : > { %v482_v14 = vld [vmem:[%s4409_s27 + $0x68] sm:$0xff]  ;;  %v481_v15 = vld [vmem:[%s4409_s27 + $0x60] sm:$0xff]  ;;  %v484_v17 = vld [vmem:[%s4409_s27 + $0x78] sm:$0xff]  ;;  %p4197_p12 = scmp.ne.s32.totalorder %s6007_s14, %s4196_s1  ;;  %s4200_s30 = sshll.u32 %s4279_s24, 4  ;;  %s4201_s30 = int_to_ptr.vmem [resolvable:$false] %s4200_s30 }
  0x26   : > { %703 = vperm.xlu1 %4027, %v4420_v3   ;;  %697 = vperm.xlu0 %4026, %v4423_v4   ;;  %v4455_v16 = vld [vmem:[%s6094_s2] sm:$0xff]  ;;  %v483_v18 = vld [vmem:[%s4409_s27 + $0x70] sm:$0xff]  ;;  %v486_v19 = vld [vmem:[%s4409_s27 + $0x88] sm:$0xff]  ;;  %s4202_s2 = scalar_lea.vmem %s4201_s30, 256  ;;  %p4203_p1 = scmp.lt.s32.totalorder %s6007_s14, %s4201_s30 }
  0x27   : > { %3742 = vmatprep.subr.mxu0 %v4455_v16  ;;  %v485_v20 = vld [vmem:[%s4409_s27 + $0x80] sm:$0xff]  ;;  %v488_v21 = vld [vmem:[%s4409_s27 + $0x98] sm:$0xff]  ;;  %v487_v22 = vld [vmem:[%s4409_s27 + $0x90] sm:$0xff]  ;;  %p4198_p13 = pnand %p4197_p12, %p4385_p4  ;;  %p4204_p2 = scmp.lt.s32.totalorder %s4202_s2, %s4196_s1 }
  0x28   : > { %v490_v23 = vld [vmem:[%s4409_s27 + $0xa8] sm:$0xff]  ;;  %v489_v24 = vld [vmem:[%s4409_s27 + $0xa0] sm:$0xff]  ;;  %v492_v25 = vld [vmem:[%s4409_s27 + $0xb8] sm:$0xff] }
  0x29   : > { %v491_v26 = vld [vmem:[%s4409_s27 + $0xb0] sm:$0xff]  ;;  %v494_v27 = vld [vmem:[%s4409_s27 + $0xc8] sm:$0xff]  ;;  %v493_v28 = vld [vmem:[%s4409_s27 + $0xc0] sm:$0xff]  ;;  %p4199_p0 = pneg %p4198_p13  ;;  %p4205_p3 = por %p4204_p2, %p4203_p1 }
  0x2a   : > { %709 = vperm.xlu1 %4027, %v4428_v5   ;;  %706 = vperm.xlu0 %4026, %v4431_v6   ;;  %v496_v29 = vld [vmem:[%s4409_s27 + $0xd8] sm:$0xff]  ;;  %v495_v30 = vld [vmem:[%s4409_s27 + $0xd0] sm:$0xff]  ;;  %v498_v31 = vld [vmem:[%s4409_s27 + $0xe8] sm:$0xff] }
  0x2b   : > { %v497_v32 = vld [vmem:[%s4409_s27 + $0xe0] sm:$0xff]  ;;  %v500_v33 = vld [vmem:[%s4409_s27 + $0xf8] sm:$0xff]  ;;  %v499_v34 = vld [vmem:[%s4409_s27 + $0xf0] sm:$0xff]  ;;  %s3302_s27 = scalar_lea.sflag [#allocation3], %s443_s28  ;;  %p4206_p5 = pnand %p4205_p3, %p4199_p0 }
  0x2e   : > { %715 = vperm.xlu1 %4027, %v4436_v7   ;;  %712 = vperm.xlu0 %4026, %v4439_v8  }
  0x32   : > { %721 = vperm.xlu1 %4027, %v478_v10   ;;  %718 = vperm.xlu0 %4026, %v477_v11  }
  0x36   : > { %727 = vperm.xlu1 %4027, %v480_v12   ;;  %724 = vperm.xlu0 %4026, %v479_v13  }
  0x3a   : > { %733 = vperm.xlu1 %4027, %v482_v14   ;;  %730 = vperm.xlu0 %4026, %v481_v15  }
  0x3e   : > { %739 = vperm.xlu1 %4027, %v484_v17   ;;  %736 = vperm.xlu0 %4026, %v483_v18  }
  0x42   : > { %745 = vperm.xlu1 %4027, %v486_v19   ;;  %742 = vperm.xlu0 %4026, %v485_v20  }
  0x46   : > { %751 = vperm.xlu1 %4027, %v488_v21   ;;  %748 = vperm.xlu0 %4026, %v487_v22  }
  0x4a   : > { %757 = vperm.xlu1 %4027, %v490_v23   ;;  %754 = vperm.xlu0 %4026, %v489_v24  }
  0x4e   : > { %763 = vperm.xlu1 %4027, %v492_v25   ;;  %760 = vperm.xlu0 %4026, %v491_v26  }
  0x52   : > { %769 = vperm.xlu1 %4027, %v494_v27   ;;  %766 = vperm.xlu0 %4026, %v493_v28  }
  0x56   : > { %775 = vperm.xlu1 %4027, %v496_v29   ;;  %772 = vperm.xlu0 %4026, %v495_v30  }
  0x5a   : > { %781 = vperm.xlu1 %4027, %v498_v31   ;;  %778 = vperm.xlu0 %4026, %v497_v32  }
  0x5e   : > { %787 = vperm.xlu1 %4027, %v500_v33   ;;  %784 = vperm.xlu0 %4026, %v499_v34  }
  0x62   : > { %4029 = vset.pattern.permute.xlu1 %v4277_v35  ;;  %4028 = vset.pattern.permute.xlu0 %v4277_v35 }
  0x63   : > { %505 = vperm.xlu1 %4029, %v4423_v4   ;;  %502 = vperm.xlu0 %4028, %v4415_v2  }
  0x67   : > { %508 = vperm.xlu1 %4029, %v4412_v1   ;;  %511 = vperm.xlu0 %4028, %v4420_v3  }
  0x6b   : > { %514 = vperm.xlu1 %4029, %v4431_v6   ;;  %517 = vperm.xlu0 %4028, %v4428_v5  }
  0x6f   : > { %520 = vperm.xlu1 %4029, %v4439_v8   ;;  %523 = vperm.xlu0 %4028, %v4436_v7  }
  0x73   : > { %526 = vperm.xlu1 %4029, %v477_v11   ;;  %529 = vperm.xlu0 %4028, %v478_v10  }
  0x77   : > { %532 = vperm.xlu1 %4029, %v479_v13   ;;  %535 = vperm.xlu0 %4028, %v480_v12  }
  0x7b   : > { %538 = vperm.xlu1 %4029, %v481_v15   ;;  %541 = vperm.xlu0 %4028, %v482_v14  }
  0x7f   : > { %544 = vperm.xlu1 %4029, %v483_v18   ;;  %547 = vperm.xlu0 %4028, %v484_v17  }
  0x83   : > { %550 = vperm.xlu1 %4029, %v485_v20   ;;  %553 = vperm.xlu0 %4028, %v486_v19  }
  0x87   : > { %556 = vperm.xlu1 %4029, %v487_v22   ;;  %559 = vperm.xlu0 %4028, %v488_v21  }
  0x8b   : > { %562 = vperm.xlu1 %4029, %v489_v24   ;;  %565 = vperm.xlu0 %4028, %v490_v23  }
  0x8f   : > { %568 = vperm.xlu1 %4029, %v491_v26   ;;  %571 = vperm.xlu0 %4028, %v492_v25  }
  0x93   : > { %574 = vperm.xlu1 %4029, %v493_v28   ;;  %577 = vperm.xlu0 %4028, %v494_v27  }
  0x97   : > { %580 = vperm.xlu1 %4029, %v495_v30   ;;  %583 = vperm.xlu0 %4028, %v496_v29  }
  0x9b   : > { %586 = vperm.xlu1 %4029, %v497_v32   ;;  %589 = vperm.xlu0 %4028, %v498_v31  }
  0x9f   : > { %592 = vperm.xlu1 %4029, %v499_v34   ;;  %595 = vperm.xlu0 %4028, %v500_v33  }
  0xa1   : > { %v701_v38 = vpop.permute.xlu1 %700  ;;  %v695_v39 = vpop.permute.xlu0 %694 }
  0xa2   : > { %vm789_vm1 = vcmp.eq.s32.totalorder %v695_v39, %v4484_v37  ;;  %vm791_vm2 = vcmp.eq.s32.totalorder %v701_v38, %v4484_v37 }
  0xa3   : > { %v4488_v41 = vsel %vm789_vm1, 1.0, %v4278_v40  ;;  %v4498_v45 = vsel %vm791_vm2, 1.0, %v4278_v40 }
  0xa4   : > { %3694 = vmatprep.mubr.msk.f32.mxu0 %vm887_vm0, %v4488_v41 }
  0xa5   : > { %v704_v42 = vpop.permute.xlu1 %703  ;;  %v698_v43 = vpop.permute.xlu0 %697 }
  0xa6   : > { %vm790_vm3 = vcmp.eq.s32.totalorder %v698_v43, %v4484_v37  ;;  %vm792_vm4 = vcmp.eq.s32.totalorder %v704_v42, %v4484_v37 }
  0xa7   : > { %v4495_v44 = vsel %vm790_vm3, 1.0, %v4278_v40  ;;  %v4508_v48 = vsel %vm792_vm4, 1.0, %v4278_v40 }
  0xa8   : > { %3695 = vmatmul.mubr.msk.f32.vlgmr.msra.gmra.mrb[0].mxu0 %vm887_vm0, %v4495_v44 }
  0xa9   : > { %v710_v46 = vpop.permute.xlu1 %709  ;;  %3697 = vmatprep.mubr.msk.f32.mxu0 %vm887_vm0, %v4498_v45  ;;  %v707_v47 = vpop.permute.xlu0 %706  ;;  %3743 = vmatpush3.msra.mxu0 %v4455_v16 }
  0xaa   : > { %vm793_vm5 = vcmp.eq.s32.totalorder %v707_v47, %v4484_v37  ;;  %vm794_vm6 = vcmp.eq.s32.totalorder %v710_v46, %v4484_v37 }
  0xab   : > { %v4511_v49 = vsel %vm793_vm5, 1.0, %v4278_v40  ;;  %v4520_v52 = vsel %vm794_vm6, 1.0, %v4278_v40 }
  0xac   : > { %3698 = vmatmul.mubr.msk.f32.gmra.mrb[2].mxu0 %vm887_vm0, %v4508_v48  ;;  %6095 = vst [vmem:[#allocation5_spill] sm:$0xff] %v4520_v52 }
  0xad   : > { %v716_v50 = vpop.permute.xlu1 %715  ;;  %3700 = vmatprep.mubr.msk.f32.mxu0 %vm887_vm0, %v4511_v49  ;;  %v713_v51 = vpop.permute.xlu0 %712 }
  0xae   : > { %vm795_vm7 = vcmp.eq.s32.totalorder %v713_v51, %v4484_v37  ;;  %vm796_vm8 = vcmp.eq.s32.totalorder %v716_v50, %v4484_v37 }
  0xaf   : > { %v4523_v53 = vsel %vm795_vm7, 1.0, %v4278_v40  ;;  %v4532_v56 = vsel %vm796_vm8, 1.0, %v4278_v40 }
  0xb0   : > { %6096 = vst [vmem:[#allocation6_spill] sm:$0xff] %v4523_v53  ;;  %3701 = vmatmul.mubr.msk.f32.gmra.mrb[4].mxu0 %vm887_vm0, %v4520_v52  ;;  %6097 = vst [vmem:[#allocation7_spill] sm:$0xff] %v4532_v56 }
  0xb1   : > { %v722_v54 = vpop.permute.xlu1 %721  ;;  %3703 = vmatprep.mubr.msk.f32.mxu0 %vm887_vm0, %v4523_v53  ;;  %v719_v55 = vpop.permute.xlu0 %718 }
  0xb2   : > { %vm797_vm9 = vcmp.eq.s32.totalorder %v719_v55, %v4484_v37  ;;  %vm798_vm10 = vcmp.eq.s32.totalorder %v722_v54, %v4484_v37 }
  0xb3   : > { %v4535_v57 = vsel %vm797_vm9, 1.0, %v4278_v40  ;;  %v4544_v60 = vsel %vm798_vm10, 1.0, %v4278_v40 }
  0xb4   : > { %6098 = vst [vmem:[#allocation8_spill] sm:$0xff] %v4535_v57  ;;  %3704 = vmatmul.mubr.msk.f32.gmra.mrb[6].mxu0 %vm887_vm0, %v4532_v56  ;;  %6099 = vst [vmem:[#allocation9_spill] sm:$0xff] %v4544_v60 }
  0xb5   : > { %v728_v58 = vpop.permute.xlu1 %727  ;;  %3706 = vmatprep.mubr.msk.f32.mxu0 %vm887_vm0, %v4535_v57  ;;  %v725_v59 = vpop.permute.xlu0 %724 }
  0xb6   : > { %vm799_vm11 = vcmp.eq.s32.totalorder %v725_v59, %v4484_v37  ;;  %vm800_vm12 = vcmp.eq.s32.totalorder %v728_v58, %v4484_v37 }
  0xb7   : > { %v4547_v61 = vsel %vm799_vm11, 1.0, %v4278_v40  ;;  %v4556_v0 = vsel %vm800_vm12, 1.0, %v4278_v40 }
  0xb8   : > { %6100 = vst [vmem:[#allocation10_spill] sm:$0xff] %v4547_v61  ;;  %3707 = vmatmul.mubr.msk.f32.gmra.mrb[8].mxu0 %vm887_vm0, %v4544_v60  ;;  %6101 = vst [vmem:[#allocation11_spill] sm:$0xff] %v4556_v0 }
  0xb9   : > { %v734_v62 = vpop.permute.xlu1 %733  ;;  %3709 = vmatprep.mubr.msk.f32.mxu0 %vm887_vm0, %v4547_v61  ;;  %v731_v63 = vpop.permute.xlu0 %730 }
  0xba   : > { %vm801_vm13 = vcmp.eq.s32.totalorder %v731_v63, %v4484_v37  ;;  %vm802_vm14 = vcmp.eq.s32.totalorder %v734_v62, %v4484_v37 }
  0xbb   : > { %v4559_v1 = vsel %vm801_vm13, 1.0, %v4278_v40  ;;  %v4568_v4 = vsel %vm802_vm14, 1.0, %v4278_v40 }
  0xbc   : > { %6102 = vst [vmem:[#allocation12_spill] sm:$0xff] %v4559_v1  ;;  %3710 = vmatmul.mubr.msk.f32.gmra.mrb[10].mxu0 %vm887_vm0, %v4556_v0  ;;  %6103 = vst [vmem:[#allocation13_spill] sm:$0xff] %v4568_v4 }
  0xbd   : > { %v740_v2 = vpop.permute.xlu1 %739  ;;  %3712 = vmatprep.mubr.msk.f32.mxu0 %vm887_vm0, %v4559_v1  ;;  %v737_v3 = vpop.permute.xlu0 %736  ;;  %v4943_v1 = vld [vmem:[%s6063_s11] ss:$0 sm:$0xff] }
  0xbe   : > { %vm803_vm15 = vcmp.eq.s32.totalorder %v737_v3, %v4484_v37  ;;  %vm804_vm1 = vcmp.eq.s32.totalorder %v740_v2, %v4484_v37 }
  0xbf   : > { %v4571_v5 = vsel %vm803_vm15, 1.0, %v4278_v40  ;;  %v4581_v8 = vsel %vm804_vm1, 1.0, %v4278_v40 }
  0xc0   : > { %6104 = vst [vmem:[#allocation14_spill] sm:$0xff] %v4571_v5  ;;  %3713 = vmatmul.mubr.msk.f32.gmra.mrb[12].mxu0 %vm887_vm0, %v4568_v4  ;;  %6105 = vst [vmem:[#allocation15_spill] sm:$0xff] %v4581_v8 }
  0xc1   : > { %v746_v6 = vpop.permute.xlu1 %745  ;;  %3715 = vmatprep.mubr.msk.f32.mxu0 %vm887_vm0, %v4571_v5  ;;  %v743_v7 = vpop.permute.xlu0 %742 }
  0xc2   : > { %vm806_vm2 = vcmp.eq.s32.totalorder %v746_v6, %v4484_v37  ;;  %vm805_vm3 = vcmp.eq.s32.totalorder %v743_v7, %v4484_v37 }
  0xc3   : > { %v4584_v9 = vsel %vm806_vm2, 1.0, %v4278_v40  ;;  %v4587_v10 = vsel %vm805_vm3, 1.0, %v4278_v40 }
  0xc4   : > { %3716 = vmatmul.mubr.msk.f32.gmra.mrb[14].mxu0 %vm887_vm0, %v4581_v8 }
  0xc5   : > { %v752_v13 = vpop.permute.xlu1 %751  ;;  %3718 = vmatprep.mubr.msk.f32.mxu0 %vm887_vm0, %v4587_v10  ;;  %v749_v14 = vpop.permute.xlu0 %748 }
  0xc6   : > { %vm808_vm4 = vcmp.eq.s32.totalorder %v752_v13, %v4484_v37  ;;  %vm807_vm5 = vcmp.eq.s32.totalorder %v749_v14, %v4484_v37 }
  0xc7   : > { %v4600_v15 = vsel %vm808_vm4, 1.0, %v4278_v40  ;;  %v4603_v16 = vsel %vm807_vm5, 1.0, %v4278_v40 }
  0xc8   : > { %3719 = vmatmul.mubr.msk.f32.gmra.mrb[16].mxu0 %vm887_vm0, %v4584_v9 }
  0xc9   : > { %v758_v19 = vpop.permute.xlu1 %757  ;;  %3721 = vmatprep.mubr.msk.f32.mxu0 %vm887_vm0, %v4603_v16  ;;  %v755_v20 = vpop.permute.xlu0 %754 }
  0xca   : > { %vm810_vm6 = vcmp.eq.s32.totalorder %v758_v19, %v4484_v37  ;;  %vm809_vm7 = vcmp.eq.s32.totalorder %v755_v20, %v4484_v37 }
  0xcb   : > { %v4616_v21 = vsel %vm810_vm6, 1.0, %v4278_v40  ;;  %v4619_v22 = vsel %vm809_vm7, 1.0, %v4278_v40 }
  0xcc   : > { %6106 = vst [vmem:[#allocation16_spill] sm:$0xff] %v4616_v21  ;;  %3722 = vmatmul.mubr.msk.f32.gmra.mrb[18].mxu0 %vm887_vm0, %v4600_v15 }
  0xcd   : > { %v764_v25 = vpop.permute.xlu1 %763  ;;  %3724 = vmatprep.mubr.msk.f32.mxu0 %vm887_vm0, %v4619_v22  ;;  %v761_v26 = vpop.permute.xlu0 %760 }
  0xce   : > { %vm812_vm8 = vcmp.eq.s32.totalorder %v764_v25, %v4484_v37  ;;  %vm811_vm9 = vcmp.eq.s32.totalorder %v761_v26, %v4484_v37 }
  0xcf   : > { %v4632_v27 = vsel %vm812_vm8, 1.0, %v4278_v40  ;;  %v4635_v28 = vsel %vm811_vm9, 1.0, %v4278_v40 }
  0xd0   : > { %6107 = vst [vmem:[#allocation17_spill] sm:$0xff] %v4632_v27  ;;  %6108 = vst [vmem:[#allocation18_spill] sm:$0xff] %v4635_v28  ;;  %3725 = vmatmul.mubr.msk.f32.gmra.mrb[20].mxu0 %vm887_vm0, %v4616_v21 }
  0xd1   : > { %v770_v31 = vpop.permute.xlu1 %769  ;;  %3727 = vmatprep.mubr.msk.f32.mxu0 %vm887_vm0, %v4635_v28  ;;  %v767_v32 = vpop.permute.xlu0 %766 }
  0xd2   : > { %vm814_vm10 = vcmp.eq.s32.totalorder %v770_v31, %v4484_v37  ;;  %vm813_vm11 = vcmp.eq.s32.totalorder %v767_v32, %v4484_v37 }
  0xd3   : > { %v4648_v33 = vsel %vm814_vm10, 1.0, %v4278_v40  ;;  %v4651_v34 = vsel %vm813_vm11, 1.0, %v4278_v40 }
  0xd4   : > { %6109 = vst [vmem:[#allocation19_spill] sm:$0xff] %v4648_v33  ;;  %6110 = vst [vmem:[#allocation20_spill] sm:$0xff] %v4651_v34  ;;  %3728 = vmatmul.mubr.msk.f32.gmra.mrb[22].mxu0 %vm887_vm0, %v4632_v27 }
  0xd5   : > { %v776_v38 = vpop.permute.xlu1 %775  ;;  %3730 = vmatprep.mubr.msk.f32.mxu0 %vm887_vm0, %v4651_v34  ;;  %v773_v39 = vpop.permute.xlu0 %772 }
  0xd6   : > { %vm816_vm12 = vcmp.eq.s32.totalorder %v776_v38, %v4484_v37  ;;  %vm815_vm13 = vcmp.eq.s32.totalorder %v773_v39, %v4484_v37 }
  0xd7   : > { %v4664_v42 = vsel %vm816_vm12, 1.0, %v4278_v40  ;;  %v4667_v43 = vsel %vm815_vm13, 1.0, %v4278_v40 }
  0xd8   : > { %6111 = vst [vmem:[#allocation21_spill] sm:$0xff] %v4664_v42  ;;  %6112 = vst [vmem:[#allocation22_spill] sm:$0xff] %v4667_v43  ;;  %3731 = vmatmul.mubr.msk.f32.gmra.mrb[24].mxu0 %vm887_vm0, %v4648_v33 }
  0xd9   : > { %v782_v50 = vpop.permute.xlu1 %781  ;;  %3733 = vmatprep.mubr.msk.f32.mxu0 %vm887_vm0, %v4667_v43  ;;  %v779_v51 = vpop.permute.xlu0 %778 }
  0xda   : > { %vm818_vm14 = vcmp.eq.s32.totalorder %v782_v50, %v4484_v37  ;;  %vm817_vm15 = vcmp.eq.s32.totalorder %v779_v51, %v4484_v37 }
  0xdb   : > { %v4680_v54 = vsel %vm818_vm14, 1.0, %v4278_v40  ;;  %v4683_v55 = vsel %vm817_vm15, 1.0, %v4278_v40 }
  0xdc   : > { %6113 = vst [vmem:[#allocation23_spill] sm:$0xff] %v4680_v54  ;;  %6114 = vst [vmem:[#allocation24_spill] sm:$0xff] %v4683_v55  ;;  %3734 = vmatmul.mubr.msk.f32.gmra.mrb[26].mxu0 %vm887_vm0, %v4664_v42 }
  0xdd   : > { %v788_v62 = vpop.permute.xlu1 %787  ;;  %3736 = vmatprep.mubr.msk.f32.mxu0 %vm887_vm0, %v4683_v55  ;;  %v785_v63 = vpop.permute.xlu0 %784 }
  0xde   : > { %vm820_vm1 = vcmp.eq.s32.totalorder %v788_v62, %v4484_v37  ;;  %vm819_vm2 = vcmp.eq.s32.totalorder %v785_v63, %v4484_v37 }
  0xdf   : > { %v4696_v2 = vsel %vm820_vm1, 1.0, %v4278_v40  ;;  %v4699_v3 = vsel %vm819_vm2, 1.0, %v4278_v40 }
  0xe0   : > { %6115 = vst [vmem:[#allocation25_spill] sm:$0xff] %v4696_v2  ;;  %6116 = vst [vmem:[#allocation26_spill] sm:$0xff] %v4699_v3  ;;  %3737 = vmatmul.mubr.msk.f32.gmra.mrb[28].mxu0 %vm887_vm0, %v4680_v54 }
  0xe1   : > { %3739 = vmatprep.mubr.msk.f32.mxu0 %vm887_vm0, %v4699_v3 }
  0xe2   : > { %v506_v13 = vpop.permute.xlu1 %505  ;;  %v503_v14 = vpop.permute.xlu0 %502 }
  0xe3   : > { %vm598_vm3 = vcmp.eq.s32.totalorder %v506_v13, %v4484_v37  ;;  %vm597_vm4 = vcmp.eq.s32.totalorder %v503_v14, %v4484_v37 }
  0xe4   : > { %v3404_v19 = vsel %vm597_vm4, 1.0, %v4278_v40  ;;  %3740 = vmatmul.mubr.msk.f32.gmra.mrb[30].mxu0 %vm887_vm0, %v4696_v2  ;;  %v3405_v20 = vsel %vm598_vm3, 1.0, %v4278_v40 }
  0xe5   : > { %3744 = vmatprep.mubr.msk.f32.mxu0 %vm887_vm0, %v3404_v19 }
  0xe6   : > { %v509_v25 = vpop.permute.xlu1 %508  ;;  %v512_v26 = vpop.permute.xlu0 %511 }
  0xe7   : > { %vm599_vm5 = vcmp.eq.s32.totalorder %v509_v25, %v4484_v37  ;;  %vm600_vm6 = vcmp.eq.s32.totalorder %v512_v26, %v4484_v37 }
  0xe8   : > { %v3406_v31 = vsel %vm599_vm5, 1.0, %v4278_v40  ;;  %3745 = vmatmul.mubr.msk.f32.vlgmr.msra.gmra.mrb[0].mxu0 %vm887_vm0, %v3405_v20  ;;  %v3407_v39 = vsel %vm600_vm6, 1.0, %v4278_v40 }
  0xe9   : > { %3747 = vmatprep.mubr.msk.f32.mxu0 %vm887_vm0, %v3406_v31 }
  0xea   : > { %v515_v32 = vpop.permute.xlu1 %514  ;;  %v518_v38 = vpop.permute.xlu0 %517 }
  0xeb   : > { %vm601_vm7 = vcmp.eq.s32.totalorder %v515_v32, %v4484_v37  ;;  %vm602_vm8 = vcmp.eq.s32.totalorder %v518_v38, %v4484_v37 }
  0xec   : > { %v3408_v50 = vsel %vm601_vm7, 1.0, %v4278_v40  ;;  %3748 = vmatmul.mubr.msk.f32.gmra.mrb[2].mxu0 %vm887_vm0, %v3407_v39  ;;  %v3409_v63 = vsel %vm602_vm8, 1.0, %v4278_v40 }
  0xed   : > { %3750 = vmatprep.mubr.msk.f32.mxu0 %vm887_vm0, %v3408_v50 }
  0xee   : > { %v521_v51 = vpop.permute.xlu1 %520  ;;  %v524_v62 = vpop.permute.xlu0 %523 }
  0xef   : > { %vm603_vm9 = vcmp.eq.s32.totalorder %v521_v51, %v4484_v37  ;;  %vm604_vm10 = vcmp.eq.s32.totalorder %v524_v62, %v4484_v37 }
  0xf0   : > { %v3410_v13 = vsel %vm603_vm9, 1.0, %v4278_v40  ;;  %3751 = vmatmul.mubr.msk.f32.gmra.mrb[4].mxu0 %vm887_vm0, %v3409_v63  ;;  %v3411_v20 = vsel %vm604_vm10, 1.0, %v4278_v40 }
  0xf1   : > { %3753 = vmatprep.mubr.msk.f32.mxu0 %vm887_vm0, %v3410_v13 }
  0xf2   : > { %v527_v14 = vpop.permute.xlu1 %526  ;;  %v530_v19 = vpop.permute.xlu0 %529 }
  0xf3   : > { %vm605_vm11 = vcmp.eq.s32.totalorder %v527_v14, %v4484_v37  ;;  %vm606_vm12 = vcmp.eq.s32.totalorder %v530_v19, %v4484_v37 }
  0xf4   : > { %v3412_v25 = vsel %vm605_vm11, 1.0, %v4278_v40  ;;  %3754 = vmatmul.mubr.msk.f32.gmra.mrb[6].mxu0 %vm887_vm0, %v3411_v20  ;;  %v3413_v32 = vsel %vm606_vm12, 1.0, %v4278_v40 }
  0xf5   : > { %3756 = vmatprep.mubr.msk.f32.mxu0 %vm887_vm0, %v3412_v25 }
  0xf6   : > { %v533_v26 = vpop.permute.xlu1 %532  ;;  %v536_v31 = vpop.permute.xlu0 %535 }
  0xf7   : > { %vm607_vm13 = vcmp.eq.s32.totalorder %v533_v26, %v4484_v37  ;;  %vm608_vm14 = vcmp.eq.s32.totalorder %v536_v31, %v4484_v37 }
  0xf8   : > { %v3414_v38 = vsel %vm607_vm13, 1.0, %v4278_v40  ;;  %3757 = vmatmul.mubr.msk.f32.gmra.mrb[8].mxu0 %vm887_vm0, %v3413_v32  ;;  %v3415_v51 = vsel %vm608_vm14, 1.0, %v4278_v40 }
  0xf9   : > { %3759 = vmatprep.mubr.msk.f32.mxu0 %vm887_vm0, %v3414_v38 }
  0xfa   : > { %v539_v39 = vpop.permute.xlu1 %538  ;;  %v542_v50 = vpop.permute.xlu0 %541 }
  0xfb   : > { %vm609_vm15 = vcmp.eq.s32.totalorder %v539_v39, %v4484_v37  ;;  %vm610_vm1 = vcmp.eq.s32.totalorder %v542_v50, %v4484_v37 }
  0xfc   : > { %v3416_v62 = vsel %vm609_vm15, 1.0, %v4278_v40  ;;  %3760 = vmatmul.mubr.msk.f32.gmra.mrb[10].mxu0 %vm887_vm0, %v3415_v51  ;;  %v3417_v14 = vsel %vm610_vm1, 1.0, %v4278_v40 }
  0xfd   : > { %3762 = vmatprep.mubr.msk.f32.mxu0 %vm887_vm0, %v3416_v62 }
  0xfe   : > { %v545_v63 = vpop.permute.xlu1 %544  ;;  %v548_v13 = vpop.permute.xlu0 %547 }
  0xff   : > { %vm611_vm2 = vcmp.eq.s32.totalorder %v545_v63, %v4484_v37  ;;  %vm612_vm3 = vcmp.eq.s32.totalorder %v548_v13, %v4484_v37 }
 0x100   : > { %v3418_v19 = vsel %vm611_vm2, 1.0, %v4278_v40  ;;  %3763 = vmatmul.mubr.msk.f32.gmra.mrb[12].mxu0 %vm887_vm0, %v3417_v14  ;;  %v3419_v26 = vsel %vm612_vm3, 1.0, %v4278_v40 }
 0x101   : > { %3765 = vmatprep.mubr.msk.f32.mxu0 %vm887_vm0, %v3418_v19 }
 0x102   : > { %v551_v20 = vpop.permute.xlu1 %550  ;;  %v554_v25 = vpop.permute.xlu0 %553 }
 0x103   : > { %vm613_vm4 = vcmp.eq.s32.totalorder %v551_v20, %v4484_v37  ;;  %vm614_vm5 = vcmp.eq.s32.totalorder %v554_v25, %v4484_v37 }
 0x104   : > { %v3420_v31 = vsel %vm613_vm4, 1.0, %v4278_v40  ;;  %3766 = vmatmul.mubr.msk.f32.gmra.mrb[14].mxu0 %vm887_vm0, %v3419_v26  ;;  %v3421_v39 = vsel %vm614_vm5, 1.0, %v4278_v40 }
 0x105   : > { %3768 = vmatprep.mubr.msk.f32.mxu0 %vm887_vm0, %v3420_v31 }
 0x106   : > { %v557_v32 = vpop.permute.xlu1 %556  ;;  %v560_v38 = vpop.permute.xlu0 %559 }
 0x107   : > { %vm615_vm6 = vcmp.eq.s32.totalorder %v557_v32, %v4484_v37  ;;  %vm616_vm7 = vcmp.eq.s32.totalorder %v560_v38, %v4484_v37 }
 0x108   : > { %v3422_v50 = vsel %vm615_vm6, 1.0, %v4278_v40  ;;  %3769 = vmatmul.mubr.msk.f32.gmra.mrb[16].mxu0 %vm887_vm0, %v3421_v39  ;;  %v3423_v63 = vsel %vm616_vm7, 1.0, %v4278_v40 }
 0x109   : > { %3771 = vmatprep.mubr.msk.f32.mxu0 %vm887_vm0, %v3422_v50 }
 0x10a   : > { %v563_v51 = vpop.permute.xlu1 %562  ;;  %v566_v62 = vpop.permute.xlu0 %565 }
 0x10b   : > { %vm617_vm8 = vcmp.eq.s32.totalorder %v563_v51, %v4484_v37  ;;  %vm618_vm9 = vcmp.eq.s32.totalorder %v566_v62, %v4484_v37 }
 0x10c   : > { %v3424_v13 = vsel %vm617_vm8, 1.0, %v4278_v40  ;;  %3772 = vmatmul.mubr.msk.f32.gmra.mrb[18].mxu0 %vm887_vm0, %v3423_v63  ;;  %v3425_v20 = vsel %vm618_vm9, 1.0, %v4278_v40 }
 0x10d   : > { %3774 = vmatprep.mubr.msk.f32.mxu0 %vm887_vm0, %v3424_v13 }
 0x10e   : > { %v569_v14 = vpop.permute.xlu1 %568  ;;  %v572_v19 = vpop.permute.xlu0 %571 }
 0x10f   : > { %vm619_vm10 = vcmp.eq.s32.totalorder %v569_v14, %v4484_v37  ;;  %vm620_vm11 = vcmp.eq.s32.totalorder %v572_v19, %v4484_v37 }
 0x110   : > { %v3426_v25 = vsel %vm619_vm10, 1.0, %v4278_v40  ;;  %3775 = vmatmul.mubr.msk.f32.gmra.mrb[20].mxu0 %vm887_vm0, %v3425_v20  ;;  %v3427_v32 = vsel %vm620_vm11, 1.0, %v4278_v40 }
 0x111   : > { %3777 = vmatprep.mubr.msk.f32.mxu0 %vm887_vm0, %v3426_v25 }
 0x112   : > { %v575_v26 = vpop.permute.xlu1 %574  ;;  %v578_v31 = vpop.permute.xlu0 %577 }
 0x113   : > { %vm621_vm12 = vcmp.eq.s32.totalorder %v575_v26, %v4484_v37  ;;  %vm622_vm13 = vcmp.eq.s32.totalorder %v578_v31, %v4484_v37 }
 0x114   : > { %v3428_v38 = vsel %vm621_vm12, 1.0, %v4278_v40  ;;  %3778 = vmatmul.mubr.msk.f32.gmra.mrb[22].mxu0 %vm887_vm0, %v3427_v32  ;;  %v3429_v51 = vsel %vm622_vm13, 1.0, %v4278_v40 }
 0x115   : > { %3780 = vmatprep.mubr.msk.f32.mxu0 %vm887_vm0, %v3428_v38  ;;  %v4810_v38 = vld [vmem:[%s6056_s4] ss:$0 sm:$0xff] }
 0x116   : > { %v581_v39 = vpop.permute.xlu1 %580  ;;  %v584_v50 = vpop.permute.xlu0 %583 }
 0x117   : > { %vm623_vm14 = vcmp.eq.s32.totalorder %v581_v39, %v4484_v37  ;;  %vm624_vm15 = vcmp.eq.s32.totalorder %v584_v50, %v4484_v37 }
 0x118   : > { %v3430_v62 = vsel %vm623_vm14, 1.0, %v4278_v40  ;;  %3781 = vmatmul.mubr.msk.f32.gmra.mrb[24].mxu0 %vm887_vm0, %v3429_v51  ;;  %v3431_v14 = vsel %vm624_vm15, 1.0, %v4278_v40 }
 0x119   : > { %3783 = vmatprep.mubr.msk.f32.mxu0 %vm887_vm0, %v3430_v62 }
 0x11a   : > { %v587_v63 = vpop.permute.xlu1 %586  ;;  %v590_v13 = vpop.permute.xlu0 %589 }
 0x11b   : > { %vm625_vm1 = vcmp.eq.s32.totalorder %v587_v63, %v4484_v37  ;;  %vm626_vm2 = vcmp.eq.s32.totalorder %v590_v13, %v4484_v37 }
 0x11c   : > { %v3432_v19 = vsel %vm625_vm1, 1.0, %v4278_v40  ;;  %3784 = vmatmul.mubr.msk.f32.gmra.mrb[26].mxu0 %vm887_vm0, %v3431_v14  ;;  %v3433_v26 = vsel %vm626_vm2, 1.0, %v4278_v40 }
 0x11d   : > { %3786 = vmatprep.mubr.msk.f32.mxu0 %vm887_vm0, %v3432_v19 }
 0x11e   : > { %v593_v20 = vpop.permute.xlu1 %592  ;;  %v596_v25 = vpop.permute.xlu0 %595 }
 0x11f   : > { %vm627_vm3 = vcmp.eq.s32.totalorder %v593_v20, %v4484_v37  ;;  %vm628_vm4 = vcmp.eq.s32.totalorder %v596_v25, %v4484_v37 }
 0x120   : > { %v3434_v31 = vsel %vm627_vm3, 1.0, %v4278_v40  ;;  %3787 = vmatmul.mubr.msk.f32.gmra.mrb[28].mxu0 %vm887_vm0, %v3433_v26  ;;  %v3435_v32 = vsel %vm628_vm4, 1.0, %v4278_v40 }
 0x121   : > { %3789 = vmatprep.mubr.msk.f32.mxu0 %vm887_vm0, %v3434_v31 }
 0x124   : > { %3790 = vmatmul.mubr.msk.f32.gmra.mrb[30].mxu0 %vm887_vm0, %v3435_v32 }
 0x1bb   : > { %v3746_v39 = vpop.f32.mrb[0].mxu0 }
 0x1bc   : > { %v4813_v50 = vadd.f32 %v3746_v39, %v4810_v38  ;;  %v1371_v51 = vpop.f32.mrb[1].mxu0 }
 0x1bd   : > { %v4816_v37 = vadd.f32 %v4810_v38, %v1371_v51 }
 0x1be   : > { %1574 = vadd.xlane.f32.xlu0 %v4813_v50 }
 0x1bf   : > { %1572 = vadd.xlane.f32.xlu1 %v4816_v37  ;;  %v3749_v40 = vpop.f32.mrb[2].mxu0 }
 0x1c0   : > { %v4821_v62 = vadd.f32 %v3749_v40, %v4810_v38  ;;  %v1381_v63 = vpop.f32.mrb[3].mxu0 }
 0x1c1   : > { %v4824_v13 = vadd.f32 %v4810_v38, %v1381_v63 }
 0x1c3   : > { %1578 = vadd.xlane.f32.xlu1 %v4821_v62  ;;  %1576 = vadd.xlane.f32.xlu0 %v4824_v13  ;;  %v3752_v14 = vpop.f32.mrb[4].mxu0 }
 0x1c4   : > { %v4829_v19 = vadd.f32 %v3752_v14, %v4810_v38  ;;  %v1391_v20 = vpop.f32.mrb[5].mxu0 }
 0x1c5   : > { %v4832_v25 = vadd.f32 %v4810_v38, %v1391_v20 }
 0x1c7   : > { %1582 = vadd.xlane.f32.xlu1 %v4829_v19  ;;  %1580 = vadd.xlane.f32.xlu0 %v4832_v25  ;;  %v3755_v26 = vpop.f32.mrb[6].mxu0 }
 0x1c8   : > { %v4837_v31 = vadd.f32 %v3755_v26, %v4810_v38  ;;  %v1401_v32 = vpop.f32.mrb[7].mxu0 }
 0x1c9   : > { %v4840_v39 = vadd.f32 %v4810_v38, %v1401_v32 }
 0x1cb   : > { %1586 = vadd.xlane.f32.xlu1 %v4837_v31  ;;  %1584 = vadd.xlane.f32.xlu0 %v4840_v39  ;;  %v3758_v51 = vpop.f32.mrb[8].mxu0 }
 0x1cc   : > { %v4845_v40 = vadd.f32 %v3758_v51, %v4810_v38  ;;  %v1411_v63 = vpop.f32.mrb[9].mxu0 }
 0x1cd   : > { %v4848_v14 = vadd.f32 %v4810_v38, %v1411_v63 }
 0x1cf   : > { %1590 = vadd.xlane.f32.xlu1 %v4845_v40  ;;  %1588 = vadd.xlane.f32.xlu0 %v4848_v14  ;;  %v3761_v20 = vpop.f32.mrb[10].mxu0 }
 0x1d0   : > { %v4853_v26 = vadd.f32 %v3761_v20, %v4810_v38  ;;  %v1421_v32 = vpop.f32.mrb[11].mxu0 }
 0x1d1   : > { %v4856_v6 = vadd.f32 %v4810_v38, %v1421_v32 }
 0x1d3   : > { %1594 = vadd.xlane.f32.xlu1 %v4853_v26  ;;  %1592 = vadd.xlane.f32.xlu0 %v4856_v6  ;;  %v3764_v51 = vpop.f32.mrb[12].mxu0 }
 0x1d4   : > { %v4861_v63 = vadd.f32 %v3764_v51, %v4810_v38  ;;  %v1431_v7 = vpop.f32.mrb[13].mxu0 }
 0x1d5   : > { %v4864_v58 = vadd.f32 %v4810_v38, %v1431_v7 }
 0x1d7   : > { %1598 = vadd.xlane.f32.xlu1 %v4861_v63  ;;  %1596 = vadd.xlane.f32.xlu0 %v4864_v58  ;;  %v3767_v20 = vpop.f32.mrb[14].mxu0 }
 0x1d8   : > { %v4869_v32 = vadd.f32 %v3767_v20, %v4810_v38  ;;  %v1441_v59 = vpop.f32.mrb[15].mxu0 }
 0x1d9   : > { %v4872_v46 = vadd.f32 %v4810_v38, %v1441_v59 }
 0x1db   : > { %1602 = vadd.xlane.f32.xlu1 %v4869_v32  ;;  %1600 = vadd.xlane.f32.xlu0 %v4872_v46  ;;  %v3770_v51 = vpop.f32.mrb[16].mxu0 }
 0x1dc   : > { %v4877_v7 = vadd.f32 %v3770_v51, %v4810_v38  ;;  %v1451_v47 = vpop.f32.mrb[17].mxu0 }
 0x1dd   : > { %v4880_v35 = vadd.f32 %v4810_v38, %v1451_v47 }
 0x1df   : > { %1606 = vadd.xlane.f32.xlu1 %v4877_v7  ;;  %1604 = vadd.xlane.f32.xlu0 %v4880_v35  ;;  %v3773_v20 = vpop.f32.mrb[18].mxu0 }
 0x1e0   : > { %v4885_v59 = vadd.f32 %v3773_v20, %v4810_v38  ;;  %v1461_v36 = vpop.f32.mrb[19].mxu0 }
 0x1e1   : > { %v4888_v29 = vadd.f32 %v4810_v38, %v1461_v36 }
 0x1e3   : > { %1610 = vadd.xlane.f32.xlu1 %v4885_v59  ;;  %1608 = vadd.xlane.f32.xlu0 %v4888_v29  ;;  %v3776_v51 = vpop.f32.mrb[20].mxu0 }
 0x1e4   : > { %v4893_v47 = vadd.f32 %v3776_v51, %v4810_v38  ;;  %v1471_v30 = vpop.f32.mrb[21].mxu0 }
 0x1e5   : > { %v4896_v23 = vadd.f32 %v4810_v38, %v1471_v30 }
 0x1e7   : > { %1614 = vadd.xlane.f32.xlu1 %v4893_v47  ;;  %1612 = vadd.xlane.f32.xlu0 %v4896_v23  ;;  %v3779_v20 = vpop.f32.mrb[22].mxu0 }
 0x1e8   : > { %v4901_v36 = vadd.f32 %v3779_v20, %v4810_v38  ;;  %v1481_v24 = vpop.f32.mrb[23].mxu0 }
 0x1e9   : > { %v4904_v17 = vadd.f32 %v4810_v38, %v1481_v24 }
 0x1eb   : > { %1618 = vadd.xlane.f32.xlu1 %v4901_v36  ;;  %1616 = vadd.xlane.f32.xlu0 %v4904_v17  ;;  %v3782_v51 = vpop.f32.mrb[24].mxu0 }
 0x1ec   : > { %v4909_v30 = vadd.f32 %v3782_v51, %v4810_v38  ;;  %v1491_v18 = vpop.f32.mrb[25].mxu0 }
 0x1ed   : > { %v4912_v11 = vadd.f32 %v4810_v38, %v1491_v18 }
 0x1ef   : > { %1622 = vadd.xlane.f32.xlu1 %v4909_v30  ;;  %1620 = vadd.xlane.f32.xlu0 %v4912_v11  ;;  %v3785_v20 = vpop.f32.mrb[26].mxu0 }
 0x1f0   : > { %v4917_v24 = vadd.f32 %v3785_v20, %v4810_v38  ;;  %v1501_v12 = vpop.f32.mrb[27].mxu0 }
 0x1f1   : > { %v4920_v2 = vadd.f32 %v4810_v38, %v1501_v12 }
 0x1f3   : > { %1626 = vadd.xlane.f32.xlu1 %v4917_v24  ;;  %1624 = vadd.xlane.f32.xlu0 %v4920_v2  ;;  %v3788_v51 = vpop.f32.mrb[28].mxu0 }
 0x1f4   : > { %v4925_v18 = vadd.f32 %v3788_v51, %v4810_v38  ;;  %v1511_v8 = vpop.f32.mrb[29].mxu0 }
 0x1f5   : > { %v4928_v3 = vadd.f32 %v4810_v38, %v1511_v8 }
 0x1f7   : > { %1630 = vadd.xlane.f32.xlu1 %v4925_v18  ;;  %1628 = vadd.xlane.f32.xlu0 %v4928_v3  ;;  %v3791_v20 = vpop.f32.mrb[30].mxu0 }
 0x1f8   : > { %v4933_v12 = vadd.f32 %v3791_v20, %v4810_v38  ;;  %v1521_v5 = vpop.f32.mrb[31].mxu0 }
 0x1f9   : > { %v4936_v54 = vadd.f32 %v4810_v38, %v1521_v5 }
 0x1fb   : > { %1634 = vadd.xlane.f32.xlu1 %v4933_v12  ;;  %1632 = vadd.xlane.f32.xlu0 %v4936_v54 }
 0x24b   : > { %v1575_v51 = vpop.xlane.xlu0 %1574 }
 0x24c   : > { %v1637_v4 = vmul.f32 0.03125, %v1575_v51  ;;  %v1573_v8 = vpop.xlane.xlu1 %1572 }
 0x24d   : > { %v1636_v55 = vmul.f32 0.03125, %v1573_v8 }
 0x24e   : > { %v1669_v20 = vsub.f32 %v4813_v50, %v1637_v4 }
 0x24f   : > { %v1668_v42 = vsub.f32 %v4816_v37, %v1636_v55 }
 0x250   : > { %v1579_v0 = vpop.xlane.xlu1 %1578  ;;  %v1577_v5 = vpop.xlane.xlu0 %1576  ;;  %v4948_v38 = vmul.f32 %v4943_v1, %v1669_v20 }
 0x251   : > { %v1639_v43 = vmul.f32 0.03125, %v1579_v0  ;;  %v1638_v61 = vmul.f32 0.03125, %v1577_v5  ;;  %v4951_v51 = vmul.f32 %v4943_v1, %v1668_v42 }
 0x252   : > { %v1739_v8 = vmul.f32 %v4948_v38, %v4948_v38 }
 0x253   : > { %v1671_v33 = vsub.f32 %v4821_v62, %v1639_v43  ;;  %v1670_v60 = vsub.f32 %v4824_v13, %v1638_v61  ;;  %v1738_v4 = vmul.f32 %v4951_v51, %v4951_v51  ;;  %v2136_v13 = vld [vmem:[%s6059_s7 + $0x10] sm:$0xff] }
 0x254   : > { %v1583_v55 = vpop.xlane.xlu1 %1582  ;;  %1772 = vadd.xlane.f32.xlu1 %v1739_v8  ;;  %v1581_v50 = vpop.xlane.xlu0 %1580 }
 0x255   : > { %v4960_v37 = vmul.f32 %v4943_v1, %v1671_v33  ;;  %v4963_v0 = vmul.f32 %v4943_v1, %v1670_v60  ;;  %v1641_v42 = vmul.f32 0.03125, %v1583_v55  ;;  %v1640_v20 = vmul.f32 0.03125, %v1581_v50  ;;  %1770 = vadd.xlane.f32.xlu0 %v1738_v4  ;;  %v2134_v33 = vld [vmem:[%s6059_s7] sm:$0xff]  ;;  %v2135_v60 = vld [vmem:[%s6059_s7 + $0x8] sm:$0xff]  ;;  %v2137_v4 = vld [vmem:[%s6059_s7 + $0x18] sm:$0xff] }
 0x256   : > { %v3872_v8 = vpack.c.bf16 %v2135_v60, %v2134_v33  ;;  %v3876_v34 = vpack.c.bf16 %v2137_v4, %v2136_v13 }
 0x257   : > { %v1673_v5 = vsub.f32 %v4829_v19, %v1641_v42  ;;  %v1672_v43 = vsub.f32 %v4832_v25, %v1640_v20  ;;  %v1741_v61 = vmul.f32 %v4960_v37, %v4960_v37  ;;  %v1740_v62 = vmul.f32 %v4963_v0, %v4963_v0 }
 0x258   : > { %v1587_v19 = vpop.xlane.xlu1 %1586  ;;  %v1585_v25 = vpop.xlane.xlu0 %1584  ;;  %3873 = vmatprep.subr.bf16.mxu1 %v3872_v8 }
 0x259   : > { %v4984_v55 = vmul.f32 %v4943_v1, %v1673_v5  ;;  %v4987_v50 = vmul.f32 %v4943_v1, %v1672_v43  ;;  %v1643_v42 = vmul.f32 0.03125, %v1587_v19  ;;  %v1642_v20 = vmul.f32 0.03125, %v1585_v25  ;;  %1776 = vadd.xlane.f32.xlu1 %v1741_v61  ;;  %1774 = vadd.xlane.f32.xlu0 %v1740_v62 }
 0x25a   : > { %3875 = vmatpush3.bf16.msra.mxu1 %v3872_v8 }
 0x25b   : > { %v1675_v57 = vsub.f32 %v4837_v31, %v1643_v42  ;;  %v1674_v33 = vsub.f32 %v4840_v39, %v1642_v20  ;;  %v1743_v60 = vmul.f32 %v4984_v55, %v4984_v55  ;;  %v1742_v5 = vmul.f32 %v4987_v50, %v4987_v50  ;;  %3877 = vmatprep.subr.bf16.mxu1 %v3876_v34 }
 0x25c   : > { %v1591_v27 = vpop.xlane.xlu1 %1590  ;;  %v1589_v43 = vpop.xlane.xlu0 %1588 }
 0x25d   : > { %v4996_v19 = vmul.f32 %v4943_v1, %v1675_v57  ;;  %v4999_v61 = vmul.f32 %v4943_v1, %v1674_v33  ;;  %v1645_v62 = vmul.f32 0.03125, %v1591_v27  ;;  %v1644_v31 = vmul.f32 0.03125, %v1589_v43  ;;  %1780 = vadd.xlane.f32.xlu1 %v1743_v60  ;;  %1778 = vadd.xlane.f32.xlu0 %v1742_v5 }
 0x25e   : > { %3879 = vmatpush3.bf16.msra.mxu1 %v3876_v34  ;;  %v2139_v34 = vld [vmem:[%s6059_s7 + $0x28] sm:$0xff] }
 0x25f   : > { %v1677_v39 = vsub.f32 %v4845_v40, %v1645_v62  ;;  %v1676_v13 = vsub.f32 %v4848_v14, %v1644_v31  ;;  %v1745_v25 = vmul.f32 %v4996_v19, %v4996_v19  ;;  %v1744_v8 = vmul.f32 %v4999_v61, %v4999_v61  ;;  %v2138_v40 = vld [vmem:[%s6059_s7 + $0x20] sm:$0xff] }
 0x260   : > { %v1595_v57 = vpop.xlane.xlu1 %1594  ;;  %v1593_v4 = vpop.xlane.xlu0 %1592  ;;  %v3880_v14 = vpack.c.bf16 %v2139_v34, %v2138_v40 }
 0x261   : > { %v5008_v42 = vmul.f32 %v4943_v1, %v1677_v39  ;;  %v5011_v27 = vmul.f32 %v4943_v1, %v1676_v13  ;;  %v1647_v20 = vmul.f32 0.03125, %v1595_v57  ;;  %v1646_v33 = vmul.f32 0.03125, %v1593_v4  ;;  %1784 = vadd.xlane.f32.xlu1 %v1745_v25  ;;  %1782 = vadd.xlane.f32.xlu0 %v1744_v8 }
 0x262   : > { %3881 = vmatprep.subr.bf16.mxu1 %v3880_v14 }
 0x263   : > { %v1679_v60 = vsub.f32 %v4853_v26, %v1647_v20  ;;  %v1678_v5 = vsub.f32 %v4856_v6, %v1646_v33  ;;  %v1747_v43 = vmul.f32 %v5008_v42, %v5008_v42  ;;  %v1746_v62 = vmul.f32 %v5011_v27, %v5011_v27  ;;  %3883 = vmatpush3.bf16.msra.mxu1 %v3880_v14  ;;  %v2140_v6 = vld [vmem:[%s6059_s7 + $0x30] sm:$0xff]  ;;  %v2141_v26 = vld [vmem:[%s6059_s7 + $0x38] sm:$0xff] }
 0x264   : > { %v1599_v31 = vpop.xlane.xlu1 %1598  ;;  %v1597_v39 = vpop.xlane.xlu0 %1596 }
 0x265   : > { %v5026_v13 = vmul.f32 %v4943_v1, %v1679_v60  ;;  %v5029_v25 = vmul.f32 %v4943_v1, %v1678_v5  ;;  %v1649_v8 = vmul.f32 0.03125, %v1599_v31  ;;  %v1648_v57 = vmul.f32 0.03125, %v1597_v39  ;;  %1788 = vadd.xlane.f32.xlu1 %v1747_v43  ;;  %1786 = vadd.xlane.f32.xlu0 %v1746_v62 }
 0x266   : > { %v3884_v60 = vpack.c.bf16 %v2141_v26, %v2140_v6 }
 0x267   : > { %v1681_v4 = vsub.f32 %v4861_v63, %v1649_v8  ;;  %v1680_v20 = vsub.f32 %v4864_v58, %v1648_v57  ;;  %v1749_v33 = vmul.f32 %v5026_v13, %v5026_v13  ;;  %v1748_v40 = vmul.f32 %v5029_v25, %v5029_v25  ;;  %v2142_v58 = vld [vmem:[%s6059_s7 + $0x40] sm:$0xff]  ;;  %v2143_v63 = vld [vmem:[%s6059_s7 + $0x48] sm:$0xff] }
 0x268   : > { %v1603_v34 = vpop.xlane.xlu1 %1602  ;;  %v1601_v14 = vpop.xlane.xlu0 %1600  ;;  %3885 = vmatprep.subr.bf16.mxu1 %v3884_v60 }
 0x269   : > { %v5044_v5 = vmul.f32 %v4943_v1, %v1681_v4  ;;  %v5047_v43 = vmul.f32 %v4943_v1, %v1680_v20  ;;  %v1651_v62 = vmul.f32 0.03125, %v1603_v34  ;;  %v1650_v31 = vmul.f32 0.03125, %v1601_v14  ;;  %1792 = vadd.xlane.f32.xlu1 %v1749_v33  ;;  %1790 = vadd.xlane.f32.xlu0 %v1748_v40  ;;  %v2145_v14 = vld [vmem:[%s6059_s7 + $0x58] sm:$0xff] }
 0x26a   : > { %3887 = vmatpush3.bf16.msra.mxu1 %v3884_v60  ;;  %v3888_v20 = vpack.c.bf16 %v2143_v63, %v2142_v58 }
 0x26b   : > { %v1683_v39 = vsub.f32 %v4869_v32, %v1651_v62  ;;  %v1682_v8 = vsub.f32 %v4872_v46, %v1650_v31  ;;  %v1751_v57 = vmul.f32 %v5044_v5, %v5044_v5  ;;  %v1750_v6 = vmul.f32 %v5047_v43, %v5047_v43  ;;  %v2144_v46 = vld [vmem:[%s6059_s7 + $0x50] sm:$0xff] }
 0x26c   : > { %v1607_v26 = vpop.xlane.xlu1 %1606  ;;  %v1605_v4 = vpop.xlane.xlu0 %1604  ;;  %3889 = vmatprep.subr.bf16.mxu1 %v3888_v20 }
 0x26d   : > { %v5062_v33 = vmul.f32 %v4943_v1, %v1683_v39  ;;  %v5065_v40 = vmul.f32 %v4943_v1, %v1682_v8  ;;  %v1653_v34 = vmul.f32 0.03125, %v1607_v26  ;;  %v1652_v32 = vmul.f32 0.03125, %v1605_v4  ;;  %1796 = vadd.xlane.f32.xlu1 %v1751_v57  ;;  %1794 = vadd.xlane.f32.xlu0 %v1750_v6  ;;  %v2147_v4 = vld [vmem:[%s6059_s7 + $0x68] sm:$0xff] }
 0x26e   : > { %3891 = vmatpush3.bf16.msra.mxu1 %v3888_v20  ;;  %v3892_v8 = vpack.c.bf16 %v2145_v14, %v2144_v46 }
 0x26f   : > { %v1685_v60 = vsub.f32 %v4877_v7, %v1653_v34  ;;  %v1684_v62 = vsub.f32 %v4880_v35, %v1652_v32  ;;  %v1753_v31 = vmul.f32 %v5062_v33, %v5062_v33  ;;  %v1752_v58 = vmul.f32 %v5065_v40, %v5065_v40  ;;  %v2146_v35 = vld [vmem:[%s6059_s7 + $0x60] sm:$0xff] }
 0x270   : > { %v1611_v63 = vpop.xlane.xlu1 %1610  ;;  %v1609_v39 = vpop.xlane.xlu0 %1608  ;;  %3893 = vmatprep.subr.bf16.mxu1 %v3892_v8 }
 0x271   : > { %v5080_v57 = vmul.f32 %v4943_v1, %v1685_v60  ;;  %v5083_v6 = vmul.f32 %v4943_v1, %v1684_v62  ;;  %v1655_v26 = vmul.f32 0.03125, %v1611_v63  ;;  %v1654_v7 = vmul.f32 0.03125, %v1609_v39  ;;  %1800 = vadd.xlane.f32.xlu1 %v1753_v31  ;;  %1798 = vadd.xlane.f32.xlu0 %v1752_v58  ;;  %v2149_v39 = vld [vmem:[%s6059_s7 + $0x78] sm:$0xff] }
 0x272   : > { %3895 = vmatpush3.bf16.msra.mxu1 %v3892_v8  ;;  %v3896_v62 = vpack.c.bf16 %v2147_v4, %v2146_v35 }
 0x273   : > { %v1687_v20 = vsub.f32 %v4885_v59, %v1655_v26  ;;  %v1686_v34 = vsub.f32 %v4888_v29, %v1654_v7  ;;  %v1755_v32 = vmul.f32 %v5080_v57, %v5080_v57  ;;  %v1754_v46 = vmul.f32 %v5083_v6, %v5083_v6  ;;  %v2148_v29 = vld [vmem:[%s6059_s7 + $0x70] sm:$0xff] }
 0x274   : > { %v1615_v14 = vpop.xlane.xlu1 %1614  ;;  %v1613_v60 = vpop.xlane.xlu0 %1612  ;;  %3897 = vmatprep.subr.bf16.mxu1 %v3896_v62 }
 0x275   : > { %v5098_v31 = vmul.f32 %v4943_v1, %v1687_v20  ;;  %v5101_v58 = vmul.f32 %v4943_v1, %v1686_v34  ;;  %v1657_v63 = vmul.f32 0.03125, %v1615_v14  ;;  %v1656_v59 = vmul.f32 0.03125, %v1613_v60  ;;  %1804 = vadd.xlane.f32.xlu1 %v1755_v32  ;;  %1802 = vadd.xlane.f32.xlu0 %v1754_v46 }
 0x276   : > { %3899 = vmatpush3.bf16.msra.mxu1 %v3896_v62  ;;  %v3900_v34 = vpack.c.bf16 %v2149_v39, %v2148_v29 }
 0x277   : > { %v1689_v8 = vsub.f32 %v4893_v47, %v1657_v63  ;;  %v1688_v26 = vsub.f32 %v4896_v23, %v1656_v59  ;;  %v1757_v7 = vmul.f32 %v5098_v31, %v5098_v31  ;;  %v1756_v35 = vmul.f32 %v5101_v58, %v5101_v58 }
 0x278   : > { %v1619_v4 = vpop.xlane.xlu1 %1618  ;;  %v1617_v20 = vpop.xlane.xlu0 %1616  ;;  %3901 = vmatprep.subr.bf16.mxu1 %v3900_v34 }
 0x279   : > { %v5116_v32 = vmul.f32 %v4943_v1, %v1689_v8  ;;  %v5119_v46 = vmul.f32 %v4943_v1, %v1688_v26  ;;  %v1659_v14 = vmul.f32 0.03125, %v1619_v4  ;;  %v1658_v47 = vmul.f32 0.03125, %v1617_v20  ;;  %1808 = vadd.xlane.f32.xlu1 %v1757_v7  ;;  %1806 = vadd.xlane.f32.xlu0 %v1756_v35 }
 0x27a   : > { %3903 = vmatpush3.bf16.msra.mxu1 %v3900_v34 }
 0x27b   : > { %v1691_v23 = vsub.f32 %v4901_v36, %v1659_v14  ;;  %v1690_v60 = vsub.f32 %v4904_v17, %v1658_v47  ;;  %v1759_v62 = vmul.f32 %v5116_v32, %v5116_v32  ;;  %v1758_v63 = vmul.f32 %v5119_v46, %v5119_v46 }
 0x27c   : > { %v1623_v59 = vpop.xlane.xlu1 %1622  ;;  %v1621_v29 = vpop.xlane.xlu0 %1620 }
 0x27d   : > { %v5128_v39 = vmul.f32 %v4943_v1, %v1691_v23  ;;  %v5131_v8 = vmul.f32 %v4943_v1, %v1690_v60  ;;  %v1661_v26 = vmul.f32 0.03125, %v1623_v59  ;;  %v1660_v7 = vmul.f32 0.03125, %v1621_v29  ;;  %1812 = vadd.xlane.f32.xlu1 %v1759_v62  ;;  %1810 = vadd.xlane.f32.xlu0 %v1758_v63 }
 0x27f   : > { %v1693_v17 = vsub.f32 %v4909_v30, %v1661_v26  ;;  %v1692_v36 = vsub.f32 %v4912_v11, %v1660_v7  ;;  %v1761_v35 = vmul.f32 %v5128_v39, %v5128_v39  ;;  %v1760_v4 = vmul.f32 %v5131_v8, %v5131_v8 }
 0x280   : > { %v1627_v20 = vpop.xlane.xlu1 %1626  ;;  %v1625_v34 = vpop.xlane.xlu0 %1624 }
 0x281   : > { %v5140_v14 = vmul.f32 %v4943_v1, %v1693_v17  ;;  %v5143_v47 = vmul.f32 %v4943_v1, %v1692_v36  ;;  %v1663_v23 = vmul.f32 0.03125, %v1627_v20  ;;  %v1662_v60 = vmul.f32 0.03125, %v1625_v34  ;;  %1816 = vadd.xlane.f32.xlu1 %v1761_v35  ;;  %1814 = vadd.xlane.f32.xlu0 %v1760_v4 }
 0x283   : > { %v1695_v11 = vsub.f32 %v4917_v24, %v1663_v23  ;;  %v1694_v30 = vsub.f32 %v4920_v2, %v1662_v60  ;;  %v1763_v62 = vmul.f32 %v5140_v14, %v5140_v14  ;;  %v1762_v63 = vmul.f32 %v5143_v47, %v5143_v47 }
 0x284   : > { %v1631_v59 = vpop.xlane.xlu1 %1630  ;;  %v1629_v29 = vpop.xlane.xlu0 %1628 }
 0x285   : > { %v5152_v26 = vmul.f32 %v4943_v1, %v1695_v11  ;;  %v5155_v7 = vmul.f32 %v4943_v1, %v1694_v30  ;;  %v1665_v17 = vmul.f32 0.03125, %v1631_v59  ;;  %v1664_v36 = vmul.f32 0.03125, %v1629_v29  ;;  %1820 = vadd.xlane.f32.xlu1 %v1763_v62  ;;  %1818 = vadd.xlane.f32.xlu0 %v1762_v63 }
 0x287   : > { %v1697_v2 = vsub.f32 %v4925_v18, %v1665_v17  ;;  %v1696_v24 = vsub.f32 %v4928_v3, %v1664_v36  ;;  %v1765_v35 = vmul.f32 %v5152_v26, %v5152_v26  ;;  %v1764_v4 = vmul.f32 %v5155_v7, %v5155_v7  ;;  %v2956_v36 = vld [vmem:[%s5190_s19 + $0x80] sm:$0xff] }
 0x288   : > { %v1635_v20 = vpop.xlane.xlu1 %1634  ;;  %v1633_v34 = vpop.xlane.xlu0 %1632 }
 0x289   : > { %v5164_v23 = vmul.f32 %v4943_v1, %v1697_v2  ;;  %v5167_v60 = vmul.f32 %v4943_v1, %v1696_v24  ;;  %v1667_v11 = vmul.f32 0.03125, %v1635_v20  ;;  %v1666_v30 = vmul.f32 0.03125, %v1633_v34  ;;  %1824 = vadd.xlane.f32.xlu1 %v1765_v35  ;;  %1822 = vadd.xlane.f32.xlu0 %v1764_v4  ;;  %v2958_v2 = vld [vmem:[%s5190_s19 + $0x90] sm:$0xff]  ;;  %v2941_v24 = vld [vmem:[%s5190_s19 + $0x8] sm:$0xff]  ;;  %v2959_v4 = vld [vmem:[%s5190_s19 + $0x98] sm:$0xff] }
 0x28a   : > { %v2942_v35 = vld [vmem:[%s5190_s19 + $0x10] sm:$0xff]  ;;  %v2960_v20 = vld [vmem:[%s5190_s19 + $0xa0] sm:$0xff]  ;;  %v2943_v34 = vld [vmem:[%s5190_s19 + $0x18] sm:$0xff] }
 0x28b   : > { %v1699_v3 = vsub.f32 %v4933_v12, %v1667_v11  ;;  %v1698_v18 = vsub.f32 %v4936_v54, %v1666_v30  ;;  %v1767_v62 = vmul.f32 %v5164_v23, %v5164_v23  ;;  %v1766_v63 = vmul.f32 %v5167_v60, %v5167_v60  ;;  %v2940_v12 = vld [vmem:[%s5190_s19] sm:$0xff]  ;;  %v2961_v30 = vld [vmem:[%s5190_s19 + $0xa8] sm:$0xff] }
 0x28c   : > { %v2944_v11 = vld [vmem:[%s5190_s19 + $0x20] sm:$0xff] }
 0x28d   : > { %v5176_v59 = vmul.f32 %v4943_v1, %v1699_v3  ;;  %v5179_v29 = vmul.f32 %v4943_v1, %v1698_v18  ;;  %1828 = vadd.xlane.f32.xlu1 %v1767_v62  ;;  %1826 = vadd.xlane.f32.xlu0 %v1766_v63  ;;  %v2957_v1 = vld [vmem:[%s5190_s19 + $0x88] sm:$0xff]  ;;  %v2962_v3 = vld [vmem:[%s5190_s19 + $0xb0] sm:$0xff]  ;;  %v2963_v63 = vld [vmem:[%s5190_s19 + $0xb8] sm:$0xff] }
 0x28e   : > { %v2945_v18 = vld [vmem:[%s5190_s19 + $0x28] sm:$0xff]  ;;  %v2946_v62 = vld [vmem:[%s5190_s19 + $0x30] sm:$0xff] }
 0x28f   : > { %v1769_v17 = vmul.f32 %v5176_v59, %v5176_v59  ;;  %v1768_v54 = vmul.f32 %v5179_v29, %v5179_v29 }
 0x291   : > { %1832 = vadd.xlane.f32.xlu1 %v1769_v17  ;;  %1830 = vadd.xlane.f32.xlu0 %v1768_v54  ;;  %v2964_v17 = vld [vmem:[%s5190_s19 + $0xc0] sm:$0xff]  ;;  %v2947_v54 = vld [vmem:[%s5190_s19 + $0x38] sm:$0xff] }
 0x2a2   : > { %3059 = vperm.xlu1 %4029, %v2957_v1   ;;  %v2948_v1 = vld [vmem:[%s5190_s19 + $0x40] sm:$0xff] }
 0x2a6   : > { %2974 = vperm.xlu1 %4029, %v2940_v12   ;;  %v2965_v12 = vld [vmem:[%s5190_s19 + $0xc8] sm:$0xff] }
 0x2a7   : > { %3054 = vperm.xlu0 %4028, %v2956_v36   ;;  %v2966_v36 = vld [vmem:[%s5190_s19 + $0xd0] sm:$0xff] }
 0x2aa   : > { %3064 = vperm.xlu1 %4029, %v2958_v2   ;;  %v2949_v2 = vld [vmem:[%s5190_s19 + $0x48] sm:$0xff] }
 0x2ab   : > { %2979 = vperm.xlu0 %4028, %v2941_v24   ;;  %v2950_v24 = vld [vmem:[%s5190_s19 + $0x50] sm:$0xff] }
 0x2ae   : > { %2984 = vperm.xlu1 %4029, %v2942_v35   ;;  %v2967_v35 = vld [vmem:[%s5190_s19 + $0xd8] sm:$0xff] }
 0x2af   : > { %3069 = vperm.xlu0 %4028, %v2959_v4   ;;  %v2968_v4 = vld [vmem:[%s5190_s19 + $0xe0] sm:$0xff] }
 0x2b2   : > { %3074 = vperm.xlu1 %4029, %v2960_v20   ;;  %v2951_v20 = vld [vmem:[%s5190_s19 + $0x58] sm:$0xff] }
 0x2b3   : > { %2989 = vperm.xlu0 %4028, %v2943_v34   ;;  %v2952_v34 = vld [vmem:[%s5190_s19 + $0x60] sm:$0xff] }
 0x2b6   : > { %2994 = vperm.xlu1 %4029, %v2944_v11   ;;  %v2969_v11 = vld [vmem:[%s5190_s19 + $0xe8] sm:$0xff] }
 0x2b7   : > { %3079 = vperm.xlu0 %4028, %v2961_v30  }
 0x2ba   : > { %3084 = vperm.xlu1 %4029, %v2962_v3  }
 0x2bb   : > { %2999 = vperm.xlu0 %4028, %v2945_v18  }
 0x2be   : > { %3004 = vperm.xlu1 %4029, %v2946_v62  }
 0x2bf   : > { %3089 = vperm.xlu0 %4028, %v2963_v63  }
 0x2c2   : > { %3094 = vperm.xlu1 %4029, %v2964_v17  }
 0x2c3   : > { %3009 = vperm.xlu0 %4028, %v2947_v54  }
 0x2c6   : > { %3014 = vperm.xlu1 %4029, %v2948_v1  }
 0x2c7   : > { %3099 = vperm.xlu0 %4028, %v2965_v12  }
 0x2ca   : > { %3104 = vperm.xlu1 %4029, %v2966_v36  }
 0x2cb   : > { %3019 = vperm.xlu0 %4028, %v2949_v2  }
 0x2ce   : > { %3024 = vperm.xlu1 %4029, %v2950_v24  }
 0x2cf   : > { %3109 = vperm.xlu0 %4028, %v2967_v35  }
 0x2d2   : > { %3114 = vperm.xlu1 %4029, %v2968_v4  }
 0x2d3   : > { %3029 = vperm.xlu0 %4028, %v2951_v20  }
 0x2d6   : > { %3034 = vperm.xlu1 %4029, %v2952_v34  }
 0x2d7   : > { %3119 = vperm.xlu0 %4028, %v2969_v11  }
 0x2e1   : > { %v1773_v30 = vpop.xlane.xlu1 %1772 }
 0x2e2   : > { %v1835_v3 = vmul.f32 0.03125, %v1773_v30  ;;  %v1771_v18 = vpop.xlane.xlu0 %1770 }
 0x2e3   : > { %v1834_v62 = vmul.f32 0.03125, %v1771_v18 }
 0x2e4   : > { %v1867_v63 = vadd.f32 1e-05, %v1835_v3 }
 0x2e5   : > { %v1866_v17 = vadd.f32 1e-05, %v1834_v62 }
 0x2e6   : > { %4067 = vrsqrt.f32 %v1867_v63  ;;  %v1777_v54 = vpop.xlane.xlu1 %1776  ;;  %v1775_v1 = vpop.xlane.xlu0 %1774 }
 0x2e7   : > { %4069 = vrsqrt.f32 %v1866_v17  ;;  %v1837_v12 = vmul.f32 0.03125, %v1777_v54  ;;  %v1836_v36 = vmul.f32 0.03125, %v1775_v1  ;;  %v5222_v17 = vld [vmem:[%s6057_s5] ss:$0 sm:$0xff] }
 0x2e9   : > { %v1869_v2 = vadd.f32 1e-05, %v1837_v12  ;;  %v1868_v24 = vadd.f32 1e-05, %v1836_v36 }
 0x2ea   : > { %v1781_v35 = vpop.xlane.xlu1 %1780  ;;  %v1779_v4 = vpop.xlane.xlu0 %1778 }
 0x2eb   : > { %4071 = vrsqrt.f32 %v1869_v2  ;;  %v1839_v20 = vmul.f32 0.03125, %v1781_v35  ;;  %v1838_v34 = vmul.f32 0.03125, %v1779_v4  ;;  %v5228_v35 = vld [vmem:[%s6058_s6] ss:$0 sm:$0xff] }
 0x2ec   : > { %4073 = vrsqrt.f32 %v1868_v24 }
 0x2ed   : > { %v1871_v11 = vadd.f32 1e-05, %v1839_v20  ;;  %v1870_v30 = vadd.f32 1e-05, %v1838_v34 }
 0x2ee   : > { %v1785_v56 = vpop.xlane.xlu1 %1784  ;;  %v1783_v18 = vpop.xlane.xlu0 %1782 }
 0x2ef   : > { %4075 = vrsqrt.f32 %v1871_v11  ;;  %v1841_v3 = vmul.f32 0.03125, %v1785_v56  ;;  %v1840_v62 = vmul.f32 0.03125, %v1783_v18 }
 0x2f0   : > { %v4068_v63 = vpop.eup %4067  ;;  %4077 = vrsqrt.f32 %v1870_v30 }
 0x2f1   : > { %v4070_v54 = vpop.eup %4069  ;;  %v1872_v1 = vadd.f32 1e-05, %v1840_v62  ;;  %v1931_v12 = vmul.f32 %v4068_v63, %v4948_v38  ;;  %v1873_v36 = vadd.f32 1e-05, %v1841_v3 }
 0x2f2   : > { %v1789_v2 = vpop.xlane.xlu1 %1788  ;;  %v1787_v24 = vpop.xlane.xlu0 %1786  ;;  %v1930_v56 = vmul.f32 %v4070_v54, %v4951_v51 }
 0x2f3   : > { %v1843_v4 = vmul.f32 0.03125, %v1789_v2  ;;  %v1842_v20 = vmul.f32 0.03125, %v1787_v24  ;;  %v1969_v34 = vmul.f32 %v5222_v17, %v1931_v12  ;;  %4079 = vrsqrt.f32 %v1872_v1 }
 0x2f4   : > { %v1968_v11 = vmul.f32 %v5222_v17, %v1930_v56  ;;  %4081 = vrsqrt.f32 %v1873_v36 }
 0x2f5   : > { %v4072_v30 = vpop.eup %4071  ;;  %v1875_v18 = vadd.f32 1e-05, %v1843_v4  ;;  %v1874_v38 = vadd.f32 1e-05, %v1842_v20  ;;  %v2007_v3 = vadd.f32 %v5228_v35, %v1969_v34 }
 0x2f6   : > { %v4074_v62 = vpop.eup %4073  ;;  %v1793_v63 = vpop.xlane.xlu1 %1792  ;;  %v2006_v53 = vadd.f32 %v5228_v35, %v1968_v11  ;;  %v1933_v51 = vmul.f32 %v4072_v30, %v4960_v37 }
 0x2f7   : > { %v1791_v28 = vpop.xlane.xlu0 %1790  ;;  %4083 = vrsqrt.f32 %v1875_v18  ;;  %v1845_v54 = vmul.f32 0.03125, %v1793_v63  ;;  %vm2039_vm0 = vcmp.ge.f32.partialorder %v2007_v3, 0.0  ;;  %v2071_v12 = vmul.f32 0.2, %v2007_v3 }
 0x2f8   : > { %v1844_v2 = vmul.f32 0.03125, %v1791_v28  ;;  %4085 = vrsqrt.f32 %v1874_v38  ;;  %vm2038_vm5 = vcmp.ge.f32.partialorder %v2006_v53, 0.0  ;;  %v2070_v1 = vmul.f32 0.2, %v2006_v53 }
 0x2f9   : > { %v4076_v24 = vpop.eup %4075  ;;  %v1877_v56 = vadd.f32 1e-05, %v1845_v54  ;;  %v1932_v20 = vmul.f32 %v4074_v62, %v4963_v0  ;;  %v1971_v36 = vmul.f32 %v5222_v17, %v1933_v51  ;;  %v2103_v37 = vsel %vm2039_vm0, %v2007_v3, %v2071_v12 }
 0x2fa   : > { %v1876_v4 = vadd.f32 1e-05, %v1844_v2  ;;  %v4078_v34 = vpop.eup %4077  ;;  %v1797_v21 = vpop.xlane.xlu1 %1796  ;;  %v2102_v52 = vsel %vm2038_vm5, %v2006_v53, %v2070_v1  ;;  %v1935_v30 = vmul.f32 %v4076_v24, %v4984_v55 }
 0x2fb   : > { %v1795_v11 = vpop.xlane.xlu0 %1794  ;;  %4087 = vrsqrt.f32 %v1877_v56  ;;  %v1847_v28 = vmul.f32 0.03125, %v1797_v21  ;;  %3824 = vmatprep.mubr.f32.mxu1 %v2102_v52  ;;  %v1970_v38 = vmul.f32 %v5222_v17, %v1932_v20  ;;  %v2009_v63 = vadd.f32 %v5228_v35, %v1971_v36 }
 0x2fc   : > { %v1846_v18 = vmul.f32 0.03125, %v1795_v11  ;;  %4089 = vrsqrt.f32 %v1876_v4  ;;  %3825 = vmatmul.mubr.f32.vlgmr.msra.gmra.mrb[0].mxu1 %v2103_v37  ;;  %v1934_v0 = vmul.f32 %v4078_v34, %v4987_v50  ;;  %v1973_v62 = vmul.f32 %v5222_v17, %v1935_v30 }
 0x2fd   : > { %v2008_v53 = vadd.f32 %v5228_v35, %v1970_v38  ;;  %v4080_v3 = vpop.eup %4079  ;;  %vm2041_vm6 = vcmp.ge.f32.partialorder %v2009_v63, 0.0  ;;  %v2073_v21 = vmul.f32 0.2, %v2009_v63  ;;  %v1879_v1 = vadd.f32 1e-05, %v1847_v28 }
 0x2fe   : > { %v1878_v51 = vadd.f32 1e-05, %v1846_v18  ;;  %v1801_v54 = vpop.xlane.xlu1 %1800  ;;  %v1972_v52 = vmul.f32 %v5222_v17, %v1934_v0  ;;  %v2011_v2 = vadd.f32 %v5228_v35, %v1973_v62  ;;  %v4082_v56 = vpop.eup %4081  ;;  %v1936_v37 = vmul.f32 %v4080_v3, %v4999_v61 }
 0x2ff   : > { %v1799_v55 = vpop.xlane.xlu0 %1798  ;;  %v1849_v12 = vmul.f32 0.03125, %v1801_v54  ;;  %vm2040_vm7 = vcmp.ge.f32.partialorder %v2008_v53, 0.0  ;;  %v2072_v50 = vmul.f32 0.2, %v2008_v53  ;;  %v2105_v4 = vsel %vm2041_vm6, %v2009_v63, %v2073_v21 }
 0x300   : > { %v1848_v24 = vmul.f32 0.03125, %v1799_v55  ;;  %4091 = vrsqrt.f32 %v1878_v51  ;;  %v2010_v20 = vadd.f32 %v5228_v35, %v1972_v52  ;;  %vm2043_vm8 = vcmp.ge.f32.partialorder %v2011_v2, 0.0 }
 0x301   : > { %v4084_v36 = vpop.eup %4083  ;;  %v1881_v34 = vadd.f32 1e-05, %v1849_v12  ;;  %v2104_v18 = vsel %vm2040_vm7, %v2008_v53, %v2072_v50  ;;  %v2075_v62 = vmul.f32 0.2, %v2011_v2  ;;  %4093 = vrsqrt.f32 %v1879_v1 }
 0x302   : > { %v1880_v11 = vadd.f32 1e-05, %v1848_v24  ;;  %v4086_v30 = vpop.eup %4085  ;;  %v1805_v38 = vpop.xlane.xlu1 %1804  ;;  %vm2042_vm9 = vcmp.ge.f32.partialorder %v2010_v20, 0.0  ;;  %v2074_v28 = vmul.f32 0.2, %v2010_v20  ;;  %3827 = vmatprep.mubr.f32.mxu1 %v2104_v18  ;;  %v1974_v63 = vmul.f32 %v5222_v17, %v1936_v37 }
 0x303   : > { %v1803_v0 = vpop.xlane.xlu0 %1802  ;;  %v1851_v51 = vmul.f32 0.03125, %v1805_v38  ;;  %4095 = vrsqrt.f32 %v1881_v34  ;;  %3828 = vmatmul.mubr.f32.gmra.mrb[2].mxu1 %v2105_v4  ;;  %v2107_v21 = vsel %vm2043_vm8, %v2011_v2, %v2075_v62  ;;  %v1937_v61 = vmul.f32 %v4082_v56, %v4996_v19 }
 0x304   : > { %v1850_v54 = vmul.f32 0.03125, %v1803_v0  ;;  %v2106_v55 = vsel %vm2042_vm9, %v2010_v20, %v2074_v28  ;;  %v2012_v12 = vadd.f32 %v5228_v35, %v1974_v63  ;;  %v1938_v1 = vmul.f32 %v4086_v30, %v5011_v27 }
 0x305   : > { %v4088_v3 = vpop.eup %4087  ;;  %v1883_v53 = vadd.f32 1e-05, %v1851_v51  ;;  %3830 = vmatprep.mubr.f32.mxu1 %v2106_v55  ;;  %4097 = vrsqrt.f32 %v1880_v11  ;;  %v1975_v34 = vmul.f32 %v5222_v17, %v1937_v61  ;;  %v1939_v4 = vmul.f32 %v4084_v36, %v5008_v42 }
 0x306   : > { %v1882_v52 = vadd.f32 1e-05, %v1850_v54  ;;  %v4090_v24 = vpop.eup %4089  ;;  %v1809_v50 = vpop.xlane.xlu1 %1808  ;;  %v1941_v2 = vmul.f32 %v4088_v3, %v5026_v13  ;;  %vm2044_vm10 = vcmp.ge.f32.partialorder %v2012_v12, 0.0  ;;  %v2076_v20 = vmul.f32 0.2, %v2012_v12 }
 0x307   : > { %v1807_v18 = vpop.xlane.xlu0 %1806  ;;  %4099 = vrsqrt.f32 %v1883_v53  ;;  %v1853_v19 = vmul.f32 0.03125, %v1809_v50  ;;  %3831 = vmatmul.mubr.f32.gmra.mrb[4].mxu1 %v2107_v21  ;;  %v2013_v37 = vadd.f32 %v5228_v35, %v1975_v34  ;;  %v1976_v27 = vmul.f32 %v5222_v17, %v1938_v1 }
 0x308   : > { %v1852_v56 = vmul.f32 0.03125, %v1807_v18  ;;  %4101 = vrsqrt.f32 %v1882_v52  ;;  %v1977_v38 = vmul.f32 %v5222_v17, %v1939_v4  ;;  %v1940_v0 = vmul.f32 %v4090_v24, %v5029_v25 }
 0x309   : > { %v1885_v11 = vadd.f32 1e-05, %v1853_v19  ;;  %v2108_v36 = vsel %vm2044_vm10, %v2012_v12, %v2076_v20  ;;  %vm2045_vm11 = vcmp.ge.f32.partialorder %v2013_v37, 0.0  ;;  %v2077_v13 = vmul.f32 0.2, %v2013_v37 }
 0x30a   : > { %v1884_v30 = vadd.f32 1e-05, %v1852_v56  ;;  %v4092_v42 = vpop.eup %4091  ;;  %v1813_v28 = vpop.xlane.xlu1 %1812  ;;  %v2014_v51 = vadd.f32 %v5228_v35, %v1976_v27  ;;  %3833 = vmatprep.mubr.f32.mxu1 %v2108_v36  ;;  %v2015_v55 = vadd.f32 %v5228_v35, %v1977_v38  ;;  %v1978_v52 = vmul.f32 %v5222_v17, %v1940_v0 }
 0x30b   : > { %v1811_v62 = vpop.xlane.xlu0 %1810  ;;  %4103 = vrsqrt.f32 %v1885_v11  ;;  %v1855_v54 = vmul.f32 0.03125, %v1813_v28  ;;  %v2109_v21 = vsel %vm2045_vm11, %v2013_v37, %v2077_v13  ;;  %v4094_v3 = vpop.eup %4093  ;;  %v1979_v34 = vmul.f32 %v5222_v17, %v1941_v2 }
 0x30c   : > { %v1854_v63 = vmul.f32 0.03125, %v1811_v62  ;;  %4105 = vrsqrt.f32 %v1884_v30  ;;  %vm2046_vm12 = vcmp.ge.f32.partialorder %v2014_v51, 0.0  ;;  %v2078_v61 = vmul.f32 0.2, %v2014_v51  ;;  %3834 = vmatmul.mubr.f32.gmra.mrb[6].mxu1 %v2109_v21 }
 0x30d   : > { %v1887_v25 = vadd.f32 1e-05, %v1855_v54  ;;  %vm2047_vm13 = vcmp.ge.f32.partialorder %v2015_v55, 0.0  ;;  %v4096_v12 = vpop.eup %4095  ;;  %v2079_v24 = vmul.f32 0.2, %v2015_v55  ;;  %v1942_v4 = vmul.f32 %v4092_v42, %v5047_v43 }
 0x30e   : > { %v1886_v53 = vadd.f32 1e-05, %v1854_v63  ;;  %v2110_v1 = vsel %vm2046_vm12, %v2014_v51, %v2078_v61  ;;  %v1817_v50 = vpop.xlane.xlu1 %1816  ;;  %v2016_v20 = vadd.f32 %v5228_v35, %v1978_v52  ;;  %v2017_v11 = vadd.f32 %v5228_v35, %v1979_v34 }
 0x30f   : > { %v1815_v18 = vpop.xlane.xlu0 %1814  ;;  %4107 = vrsqrt.f32 %v1887_v25  ;;  %3836 = vmatprep.mubr.f32.mxu1 %v2110_v1  ;;  %v1857_v19 = vmul.f32 0.03125, %v1817_v50  ;;  %v4098_v37 = vpop.eup %4097  ;;  %v2111_v27 = vsel %vm2047_vm13, %v2015_v55, %v2079_v24  ;;  %v1980_v30 = vmul.f32 %v5222_v17, %v1942_v4 }
 0x310   : > { %v1856_v56 = vmul.f32 0.03125, %v1815_v18  ;;  %4109 = vrsqrt.f32 %v1886_v53  ;;  %3837 = vmatmul.mubr.f32.gmra.mrb[8].mxu1 %v2111_v27  ;;  %vm2048_vm14 = vcmp.ge.f32.partialorder %v2016_v20, 0.0  ;;  %v1943_v43 = vmul.f32 %v4094_v3, %v5044_v5 }
 0x311   : > { %v4100_v38 = vpop.eup %4099  ;;  %v1889_v0 = vadd.f32 1e-05, %v1857_v19  ;;  %v2080_v36 = vmul.f32 0.2, %v2016_v20  ;;  %vm2049_vm15 = vcmp.ge.f32.partialorder %v2017_v11, 0.0  ;;  %v2018_v51 = vadd.f32 %v5228_v35, %v1980_v30 }
 0x312   : > { %v1888_v2 = vadd.f32 1e-05, %v1856_v56  ;;  %v4102_v42 = vpop.eup %4101  ;;  %v2081_v13 = vmul.f32 0.2, %v2017_v11  ;;  %v1821_v28 = vpop.xlane.xlu1 %1820  ;;  %v1981_v55 = vmul.f32 %v5222_v17, %v1943_v43  ;;  %v1944_v18 = vmul.f32 %v4098_v37, %v5065_v40 }
 0x313   : > { %v1819_v62 = vpop.xlane.xlu0 %1818  ;;  %4111 = vrsqrt.f32 %v1889_v0  ;;  %v1859_v54 = vmul.f32 0.03125, %v1821_v28  ;;  %v2112_v21 = vsel %vm2048_vm14, %v2016_v20, %v2080_v36  ;;  %vm2050_vm1 = vcmp.ge.f32.partialorder %v2018_v51, 0.0 }
 0x314   : > { %v1858_v63 = vmul.f32 0.03125, %v1819_v62  ;;  %4113 = vrsqrt.f32 %v1888_v2  ;;  %v2113_v61 = vsel %vm2049_vm15, %v2017_v11, %v2081_v13  ;;  %3839 = vmatprep.mubr.f32.mxu1 %v2112_v21  ;;  %v2082_v53 = vmul.f32 0.2, %v2018_v51 }
 0x315   : > { %v5272_v25 = vpop.eup %4103  ;;  %v1891_v5 = vadd.f32 1e-05, %v1859_v54  ;;  %v2019_v52 = vadd.f32 %v5228_v35, %v1981_v55  ;;  %3840 = vmatmul.mubr.f32.gmra.mrb[10].mxu1 %v2113_v61  ;;  %v1945_v34 = vmul.f32 %v4096_v12, %v5062_v33  ;;  %v1946_v4 = vmul.f32 %v4102_v42, %v5083_v6 }
 0x316   : > { %v1890_v3 = vadd.f32 1e-05, %v1858_v63  ;;  %v4106_v1 = vpop.eup %4105  ;;  %v1825_v24 = vpop.xlane.xlu1 %1824  ;;  %v1947_v19 = vmul.f32 %v4100_v38, %v5080_v57  ;;  %v2114_v56 = vsel %vm2050_vm1, %v2018_v51, %v2082_v53  ;;  %v1982_v30 = vmul.f32 %v5222_v17, %v1944_v18 }
 0x317   : > { %v1823_v50 = vpop.xlane.xlu0 %1822  ;;  %4115 = vrsqrt.f32 %v1891_v5  ;;  %vm2051_vm2 = vcmp.ge.f32.partialorder %v2019_v52, 0.0  ;;  %v2083_v20 = vmul.f32 0.2, %v2019_v52  ;;  %3842 = vmatprep.mubr.f32.mxu1 %v2114_v56  ;;  %v1861_v27 = vmul.f32 0.03125, %v1825_v24 }
 0x318   : > { %4117 = vrsqrt.f32 %v1890_v3  ;;  %v1860_v11 = vmul.f32 0.03125, %v1823_v50  ;;  %v1983_v40 = vmul.f32 %v5222_v17, %v1945_v34  ;;  %v1984_v33 = vmul.f32 %v5222_v17, %v1946_v4 }
 0x319   : > { %v4108_v0 = vpop.eup %4107  ;;  %v2115_v2 = vsel %vm2051_vm2, %v2019_v52, %v2083_v20  ;;  %v1985_v6 = vmul.f32 %v5222_v17, %v1947_v19  ;;  %v1893_v12 = vadd.f32 1e-05, %v1861_v27  ;;  %v2020_v38 = vadd.f32 %v5228_v35, %v1982_v30 }
 0x31a   : > { %v4110_v57 = vpop.eup %4109  ;;  %3843 = vmatmul.mubr.f32.gmra.mrb[12].mxu1 %v2115_v2  ;;  %v1892_v37 = vadd.f32 1e-05, %v1860_v11  ;;  %v1829_v43 = vpop.xlane.xlu1 %1828  ;;  %v1948_v36 = vmul.f32 %v4106_v1, %v5101_v58  ;;  %v2021_v13 = vadd.f32 %v5228_v35, %v1983_v40  ;;  %v2022_v51 = vadd.f32 %v5228_v35, %v1984_v33 }
 0x31b   : > { %v1827_v42 = vpop.xlane.xlu0 %1826  ;;  %v1863_v28 = vmul.f32 0.03125, %v1829_v43  ;;  %4119 = vrsqrt.f32 %v1893_v12  ;;  %vm2052_vm3 = vcmp.ge.f32.partialorder %v2020_v38, 0.0  ;;  %v2084_v54 = vmul.f32 0.2, %v2020_v38 }
 0x31c   : > { %v1862_v62 = vmul.f32 0.03125, %v1827_v42  ;;  %v2023_v63 = vadd.f32 %v5228_v35, %v1985_v6  ;;  %4121 = vrsqrt.f32 %v1892_v37  ;;  %vm2053_vm4 = vcmp.ge.f32.partialorder %v2021_v13, 0.0 }
 0x31d   : > { %v4112_v55 = vpop.eup %4111  ;;  %v2085_v21 = vmul.f32 0.2, %v2021_v13  ;;  %v1895_v61 = vadd.f32 1e-05, %v1863_v28  ;;  %v2116_v3 = vsel %vm2052_vm3, %v2020_v38, %v2084_v54  ;;  %vm2054_vm0 = vcmp.ge.f32.partialorder %v2022_v51, 0.0 }
 0x31e   : > { %v4114_v5 = vpop.eup %4113  ;;  %v1894_v53 = vadd.f32 1e-05, %v1862_v62  ;;  %v2086_v58 = vmul.f32 0.2, %v2022_v51  ;;  %v1833_v52 = vpop.xlane.xlu1 %1832  ;;  %3845 = vmatprep.mubr.f32.mxu1 %v2116_v3  ;;  %vm2055_vm5 = vcmp.ge.f32.partialorder %v2023_v63, 0.0  ;;  %v1986_v20 = vmul.f32 %v5222_v17, %v1948_v36 }
 0x31f   : > { %v1831_v1 = vpop.xlane.xlu0 %1830  ;;  %v2117_v24 = vsel %vm2053_vm4, %v2021_v13, %v2085_v21  ;;  %4123 = vrsqrt.f32 %v1895_v61  ;;  %v2087_v50 = vmul.f32 0.2, %v2023_v63  ;;  %v1865_v34 = vmul.f32 0.03125, %v1833_v52 }
 0x320   : > { %3846 = vmatmul.mubr.f32.gmra.mrb[14].mxu1 %v2117_v24  ;;  %4125 = vrsqrt.f32 %v1894_v53  ;;  %v2118_v18 = vsel %vm2054_vm0, %v2022_v51, %v2086_v58  ;;  %v1864_v4 = vmul.f32 0.03125, %v1831_v1  ;;  %v1949_v27 = vmul.f32 %v5272_v25, %v5098_v31 }
 0x321   : > { %v4116_v19 = vpop.eup %4115  ;;  %3848 = vmatprep.mubr.f32.mxu1 %v2118_v18  ;;  %v2119_v56 = vsel %vm2055_vm5, %v2023_v63, %v2087_v50  ;;  %v1950_v11 = vmul.f32 %v4110_v57, %v5119_v46  ;;  %v1897_v2 = vadd.f32 1e-05, %v1865_v34  ;;  %v1951_v33 = vmul.f32 %v4108_v0, %v5116_v32 }
 0x322   : > { %v4118_v30 = vpop.eup %4117  ;;  %v1896_v40 = vadd.f32 1e-05, %v1864_v4  ;;  %v1952_v6 = vmul.f32 %v4114_v5, %v5131_v8  ;;  %v2024_v12 = vadd.f32 %v5228_v35, %v1986_v20  ;;  %v1987_v37 = vmul.f32 %v5222_v17, %v1949_v27 }
 0x323   : > { %v1988_v38 = vmul.f32 %v5222_v17, %v1950_v11  ;;  %v1953_v43 = vmul.f32 %v4112_v55, %v5128_v39  ;;  %4127 = vrsqrt.f32 %v1897_v2  ;;  %v1989_v31 = vmul.f32 %v5222_v17, %v1951_v33 }
 0x324   : > { %3849 = vmatmul.mubr.f32.gmra.mrb[16].mxu1 %v2119_v56  ;;  %v1990_v46 = vmul.f32 %v5222_v17, %v1952_v6  ;;  %v1954_v25 = vmul.f32 %v4118_v30, %v5143_v47  ;;  %4129 = vrsqrt.f32 %v1896_v40  ;;  %vm2056_vm6 = vcmp.ge.f32.partialorder %v2024_v12, 0.0 }
 0x325   : > { %v2088_v32 = vmul.f32 0.2, %v2024_v12  ;;  %v2025_v8 = vadd.f32 %v5228_v35, %v1987_v37  ;;  %v4120_v0 = vpop.eup %4119  ;;  %v2026_v57 = vadd.f32 %v5228_v35, %v1988_v38  ;;  %v2027_v42 = vadd.f32 %v5228_v35, %v1989_v31 }
 0x326   : > { %v2028_v39 = vadd.f32 %v5228_v35, %v1990_v46  ;;  %v1991_v36 = vmul.f32 %v5222_v17, %v1953_v43  ;;  %v4122_v13 = vpop.eup %4121  ;;  %v1992_v47 = vmul.f32 %v5222_v17, %v1954_v25  ;;  %v1955_v52 = vmul.f32 %v4116_v19, %v5140_v14 }
 0x327   : > { %v2120_v28 = vsel %vm2056_vm6, %v2024_v12, %v2088_v32  ;;  %vm2057_vm7 = vcmp.ge.f32.partialorder %v2025_v8, 0.0  ;;  %v2089_v62 = vmul.f32 0.2, %v2025_v8  ;;  %vm2058_vm8 = vcmp.ge.f32.partialorder %v2026_v57, 0.0 }
 0x328   : > { %3851 = vmatprep.mubr.f32.mxu1 %v2120_v28  ;;  %v2090_v51 = vmul.f32 0.2, %v2026_v57  ;;  %vm2059_vm9 = vcmp.ge.f32.partialorder %v2027_v42, 0.0  ;;  %v2091_v54 = vmul.f32 0.2, %v2027_v42  ;;  %vm2060_vm10 = vcmp.ge.f32.partialorder %v2028_v39, 0.0 }
 0x329   : > { %v4124_v63 = vpop.eup %4123  ;;  %v2121_v55 = vsel %vm2057_vm7, %v2025_v8, %v2089_v62  ;;  %v2092_v21 = vmul.f32 0.2, %v2028_v39  ;;  %v2029_v61 = vadd.f32 %v5228_v35, %v1991_v36  ;;  %v2030_v58 = vadd.f32 %v5228_v35, %v1992_v47  ;;  %v5334_v47 = vld [vmem:[%s6060_s8] ss:$0 sm:$0xff] }
 0x32a   : > { %v4126_v5 = vpop.eup %4125  ;;  %3852 = vmatmul.mubr.f32.gmra.mrb[18].mxu1 %v2121_v55  ;;  %v2122_v3 = vsel %vm2058_vm8, %v2026_v57, %v2090_v51  ;;  %v2123_v53 = vsel %vm2059_vm9, %v2027_v42, %v2091_v54  ;;  %v1956_v50 = vmul.f32 %v4122_v13, %v5155_v7  ;;  %v1993_v34 = vmul.f32 %v5222_v17, %v1955_v52 }
 0x32b   : > { %3854 = vmatprep.mubr.f32.mxu1 %v2122_v3  ;;  %v2124_v1 = vsel %vm2060_vm10, %v2028_v39, %v2092_v21  ;;  %vm2061_vm11 = vcmp.ge.f32.partialorder %v2029_v61, 0.0  ;;  %v2093_v24 = vmul.f32 0.2, %v2029_v61  ;;  %vm2062_vm12 = vcmp.ge.f32.partialorder %v2030_v58, 0.0 }
 0x32c   : > { %v2094_v18 = vmul.f32 0.2, %v2030_v58  ;;  %v1957_v4 = vmul.f32 %v4120_v0, %v5152_v26  ;;  %v1994_v56 = vmul.f32 %v5222_v17, %v1956_v50  ;;  %v1958_v20 = vmul.f32 %v4126_v5, %v5167_v60 }
 0x32d   : > { %v1959_v27 = vmul.f32 %v4124_v63, %v5164_v23  ;;  %v4128_v11 = vpop.eup %4127  ;;  %v2125_v14 = vsel %vm2061_vm11, %v2029_v61, %v2093_v24  ;;  %v2031_v30 = vadd.f32 %v5228_v35, %v1993_v34 }
 0x32e   : > { %3855 = vmatmul.mubr.f32.gmra.mrb[20].mxu1 %v2123_v53  ;;  %v2126_v19 = vsel %vm2062_vm12, %v2030_v58, %v2094_v18  ;;  %v1995_v7 = vmul.f32 %v5222_v17, %v1957_v4  ;;  %v4130_v2 = vpop.eup %4129  ;;  %v2032_v40 = vadd.f32 %v5228_v35, %v1994_v56  ;;  %v1996_v26 = vmul.f32 %v5222_v17, %v1958_v20 }
 0x32f   : > { %3857 = vmatprep.mubr.f32.mxu1 %v2124_v1  ;;  %v1997_v33 = vmul.f32 %v5222_v17, %v1959_v27  ;;  %v1961_v60 = vmul.f32 %v4128_v11, %v5176_v59  ;;  %vm2063_vm13 = vcmp.ge.f32.partialorder %v2031_v30, 0.0  ;;  %v2095_v23 = vmul.f32 0.2, %v2031_v30 }
 0x330   : > { %v2033_v6 = vadd.f32 %v5228_v35, %v1995_v7  ;;  %v1960_v12 = vmul.f32 %v4130_v2, %v5179_v29  ;;  %vm2064_vm14 = vcmp.ge.f32.partialorder %v2032_v40, 0.0  ;;  %v2096_v37 = vmul.f32 0.2, %v2032_v40 }
 0x331   : > { %v2034_v38 = vadd.f32 %v5228_v35, %v1996_v26  ;;  %v2127_v31 = vsel %vm2063_vm13, %v2031_v30, %v2095_v23  ;;  %v2035_v25 = vadd.f32 %v5228_v35, %v1997_v33  ;;  %v1999_v0 = vmul.f32 %v5222_v17, %v1961_v60 }
 0x332   : > { %3858 = vmatmul.mubr.f32.gmra.mrb[22].mxu1 %v2125_v14  ;;  %v1998_v43 = vmul.f32 %v5222_v17, %v1960_v12  ;;  %vm2065_vm15 = vcmp.ge.f32.partialorder %v2033_v6, 0.0  ;;  %v2097_v46 = vmul.f32 0.2, %v2033_v6  ;;  %v2128_v59 = vsel %vm2064_vm14, %v2032_v40, %v2096_v37 }
 0x333   : > { %3860 = vmatprep.mubr.f32.mxu1 %v2126_v19  ;;  %v2098_v32 = vmul.f32 0.2, %v2034_v38  ;;  %vm2066_vm1 = vcmp.ge.f32.partialorder %v2034_v38, 0.0  ;;  %v2099_v57 = vmul.f32 0.2, %v2035_v25  ;;  %v2037_v42 = vadd.f32 %v5228_v35, %v1999_v0 }
 0x334   : > { %v2036_v8 = vadd.f32 %v5228_v35, %v1998_v43  ;;  %v2129_v29 = vsel %vm2065_vm15, %v2033_v6, %v2097_v46  ;;  %vm2067_vm2 = vcmp.ge.f32.partialorder %v2035_v25, 0.0 }
 0x335   : > { %v2130_v39 = vsel %vm2066_vm1, %v2034_v38, %v2098_v32  ;;  %v2131_v13 = vsel %vm2067_vm2, %v2035_v25, %v2099_v57  ;;  %v2101_v28 = vmul.f32 0.2, %v2037_v42  ;;  %vm2069_vm4 = vcmp.ge.f32.partialorder %v2037_v42, 0.0 }
 0x336   : > { %3861 = vmatmul.mubr.f32.gmra.mrb[24].mxu1 %v2127_v31  ;;  %v2100_v36 = vmul.f32 0.2, %v2036_v8  ;;  %vm2068_vm3 = vcmp.ge.f32.partialorder %v2036_v8, 0.0 }
 0x337   : > { %3863 = vmatprep.mubr.f32.mxu1 %v2128_v59  ;;  %v2133_v17 = vsel %vm2069_vm4, %v2037_v42, %v2101_v28 }
 0x338   : > { %v2132_v62 = vsel %vm2068_vm3, %v2036_v8, %v2100_v36 }
 0x33a   : > { %3864 = vmatmul.mubr.f32.gmra.mrb[26].mxu1 %v2129_v29 }
 0x33b   : > { %3866 = vmatprep.mubr.f32.mxu1 %v2130_v39 }
 0x33e   : > { %3867 = vmatmul.mubr.f32.gmra.mrb[28].mxu1 %v2131_v13 }
 0x33f   : > { %3869 = vmatprep.mubr.f32.mxu1 %v2132_v62 }
 0x342   : > { %3870 = vmatmul.mubr.f32.gmra.mrb[30].mxu1 %v2133_v17  ;;  %v5439_v17 = vpop.permute.xlu1 %3059 }
 0x343   : > { %6119 = vst [vmem:[#allocation27_spill] sm:$0xff] %v5439_v17 }
 0x3cf   : > { %v3826_v35 = vpop.f32.mrb[0].mxu1 }
 0x3d0   : > { %v5337_v51 = vadd.f32 %v3826_v35, %v5334_v47  ;;  %v2223_v54 = vpop.f32.mrb[1].mxu1 }
 0x3d1   : > { %v5340_v63 = vadd.f32 %v5334_v47, %v2223_v54 }
 0x3d2   : > { %2386 = vadd.xlane.f32.xlu1 %v5337_v51 }
 0x3d3   : > { %2384 = vadd.xlane.f32.xlu0 %v5340_v63 }
 0x3d6   : > { %v3829_v55 = vpop.f32.mrb[2].mxu1 }
 0x3d7   : > { %v5345_v21 = vadd.f32 %v3829_v55, %v5334_v47  ;;  %v2233_v61 = vpop.f32.mrb[3].mxu1 }
 0x3d8   : > { %v5348_v5 = vadd.f32 %v5334_v47, %v2233_v61 }
 0x3d9   : > { %2390 = vadd.xlane.f32.xlu1 %v5345_v21 }
 0x3da   : > { %2388 = vadd.xlane.f32.xlu0 %v5348_v5  ;;  %v3832_v3 = vpop.f32.mrb[4].mxu1 }
 0x3db   : > { %v5353_v53 = vadd.f32 %v3832_v3, %v5334_v47  ;;  %v2243_v58 = vpop.f32.mrb[5].mxu1 }
 0x3dc   : > { %v5356_v52 = vadd.f32 %v5334_v47, %v2243_v58 }
 0x3dd   : > { %2394 = vadd.xlane.f32.xlu1 %v5353_v53 }
 0x3de   : > { %2392 = vadd.xlane.f32.xlu0 %v5356_v52 }
 0x3df   : > { %v3835_v1 = vpop.f32.mrb[6].mxu1 }
 0x3e0   : > { %v5361_v24 = vadd.f32 %v3835_v1, %v5334_v47  ;;  %v2253_v50 = vpop.f32.mrb[7].mxu1 }
 0x3e1   : > { %v5364_v18 = vadd.f32 %v5334_v47, %v2253_v50  ;;  %v5453_v50 = vpop.permute.xlu1 %2974 }
 0x3e2   : > { %2398 = vadd.xlane.f32.xlu1 %v5361_v24 }
 0x3e3   : > { %2396 = vadd.xlane.f32.xlu0 %v5364_v18  ;;  %v3838_v34 = vpop.f32.mrb[8].mxu1 }
 0x3e4   : > { %v5369_v4 = vadd.f32 %v3838_v34, %v5334_v47  ;;  %v2263_v56 = vpop.f32.mrb[9].mxu1 }
 0x3e5   : > { %v5372_v20 = vadd.f32 %v5334_v47, %v2263_v56  ;;  %v5458_v56 = vpop.permute.xlu0 %3054 }
 0x3e6   : > { %2402 = vadd.xlane.f32.xlu1 %v5369_v4  ;;  %6120 = vst [vmem:[#allocation28_spill] sm:$0xff] %v5458_v56 }
 0x3e7   : > { %2400 = vadd.xlane.f32.xlu0 %v5372_v20 }
 0x3e8   : > { %v3841_v27 = vpop.f32.mrb[10].mxu1 }
 0x3e9   : > { %v5377_v11 = vadd.f32 %v3841_v27, %v5334_v47  ;;  %v2273_v14 = vpop.f32.mrb[11].mxu1 }
 0x3ea   : > { %v5380_v19 = vadd.f32 %v5334_v47, %v2273_v14 }
 0x3eb   : > { %2406 = vadd.xlane.f32.xlu1 %v5377_v11 }
 0x3ec   : > { %2404 = vadd.xlane.f32.xlu0 %v5380_v19 }
 0x3ed   : > { %v3844_v30 = vpop.f32.mrb[12].mxu1 }
 0x3ee   : > { %v5385_v7 = vadd.f32 %v3844_v30, %v5334_v47  ;;  %v2283_v2 = vpop.f32.mrb[13].mxu1 }
 0x3ef   : > { %v5388_v40 = vadd.f32 %v5334_v47, %v2283_v2 }
 0x3f0   : > { %2410 = vadd.xlane.f32.xlu1 %v5385_v7 }
 0x3f1   : > { %2408 = vadd.xlane.f32.xlu0 %v5388_v40 }
 0x3f3   : > { %v3847_v26 = vpop.f32.mrb[14].mxu1 }
 0x3f4   : > { %v5393_v33 = vadd.f32 %v3847_v26, %v5334_v47  ;;  %v2293_v60 = vpop.f32.mrb[15].mxu1  ;;  %v5469_v26 = vpop.permute.xlu1 %3064 }
 0x3f5   : > { %v5396_v23 = vadd.f32 %v5334_v47, %v2293_v60  ;;  %6121 = vst [vmem:[#allocation29_spill] sm:$0xff] %v5469_v26  ;;  %v5472_v60 = vpop.permute.xlu0 %2979 }
 0x3f6   : > { %2414 = vadd.xlane.f32.xlu1 %v5393_v33 }
 0x3f7   : > { %2412 = vadd.xlane.f32.xlu0 %v5396_v23  ;;  %v3850_v6 = vpop.f32.mrb[16].mxu1 }
 0x3f8   : > { %v5401_v12 = vadd.f32 %v3850_v6, %v5334_v47  ;;  %v2303_v37 = vpop.f32.mrb[17].mxu1  ;;  %v5474_v6 = vpop.permute.xlu1 %2984 }
 0x3f9   : > { %v5404_v38 = vadd.f32 %v5334_v47, %v2303_v37  ;;  %v5476_v37 = vpop.permute.xlu0 %3069 }
 0x3fa   : > { %2418 = vadd.xlane.f32.xlu1 %v5401_v12  ;;  %6122 = vst [vmem:[#allocation30_spill] sm:$0xff] %v5476_v37 }
 0x3fb   : > { %2416 = vadd.xlane.f32.xlu0 %v5404_v38 }
 0x3fd   : > { %v3853_v43 = vpop.f32.mrb[18].mxu1 }
 0x3fe   : > { %v5409_v31 = vadd.f32 %v3853_v43, %v5334_v47  ;;  %v2313_v46 = vpop.f32.mrb[19].mxu1  ;;  %v5478_v43 = vpop.permute.xlu1 %3074 }
 0x3ff   : > { %v5412_v25 = vadd.f32 %v5334_v47, %v2313_v46  ;;  %6123 = vst [vmem:[#allocation31_spill] sm:$0xff] %v5478_v43  ;;  %v5480_v46 = vpop.permute.xlu0 %2989 }
 0x400   : > { %2422 = vadd.xlane.f32.xlu1 %v5409_v31 }
 0x401   : > { %2420 = vadd.xlane.f32.xlu0 %v5412_v25  ;;  %v3856_v59 = vpop.f32.mrb[20].mxu1 }
 0x402   : > { %v5417_v32 = vadd.f32 %v3856_v59, %v5334_v47  ;;  %v2323_v8 = vpop.f32.mrb[21].mxu1  ;;  %v2970_v59 = vld [vmem:[%s5190_s19 + $0xf0] sm:$0xff] }
 0x403   : > { %v5420_v0 = vadd.f32 %v5334_v47, %v2323_v8  ;;  %v5485_v8 = vpop.permute.xlu0 %3079 }
 0x404   : > { %2426 = vadd.xlane.f32.xlu1 %v5417_v32  ;;  %6124 = vst [vmem:[#allocation32_spill] sm:$0xff] %v5485_v8 }
 0x405   : > { %2424 = vadd.xlane.f32.xlu0 %v5420_v0  ;;  %v3859_v29 = vpop.f32.mrb[22].mxu1 }
 0x406   : > { %v5425_v57 = vadd.f32 %v3859_v29, %v5334_v47  ;;  %v2333_v42 = vpop.f32.mrb[23].mxu1  ;;  %v2953_v29 = vld [vmem:[%s5190_s19 + $0x68] sm:$0xff] }
 0x407   : > { %v5428_v39 = vadd.f32 %v5334_v47, %v2333_v42 }
 0x408   : > { %2430 = vadd.xlane.f32.xlu1 %v5425_v57 }
 0x409   : > { %2428 = vadd.xlane.f32.xlu0 %v5428_v39  ;;  %v3862_v36 = vpop.f32.mrb[24].mxu1 }
 0x40a   : > { %v5433_v13 = vadd.f32 %v3862_v36, %v5334_v47  ;;  %v2343_v28 = vpop.f32.mrb[25].mxu1  ;;  %v5490_v36 = vpop.permute.xlu0 %2999 }
 0x40b   : > { %v5436_v62 = vadd.f32 %v5334_v47, %v2343_v28 }
 0x40c   : > { %2434 = vadd.xlane.f32.xlu1 %v5433_v13 }
 0x40d   : > { %2432 = vadd.xlane.f32.xlu0 %v5436_v62  ;;  %v3865_v35 = vpop.f32.mrb[26].mxu1 }
 0x40e   : > { %v5443_v54 = vadd.f32 %v3865_v35, %v5334_v47  ;;  %v2353_v55 = vpop.f32.mrb[27].mxu1  ;;  %v5494_v35 = vpop.permute.xlu0 %3089 }
 0x40f   : > { %v5446_v61 = vadd.f32 %v5334_v47, %v2353_v55  ;;  %6126 = vst [vmem:[#allocation34_spill] sm:$0xff] %v5494_v35 }
 0x410   : > { %2438 = vadd.xlane.f32.xlu1 %v5443_v54 }
 0x411   : > { %2436 = vadd.xlane.f32.xlu0 %v5446_v61  ;;  %v3868_v3 = vpop.f32.mrb[28].mxu1 }
 0x412   : > { %v5451_v58 = vadd.f32 %v3868_v3, %v5334_v47  ;;  %v2363_v1 = vpop.f32.mrb[29].mxu1  ;;  %v5498_v3 = vpop.permute.xlu0 %3009 }
 0x413   : > { %v5456_v34 = vadd.f32 %v5334_v47, %v2363_v1  ;;  %6128 = vst [vmem:[#allocation36_spill] sm:$0xff] %v5498_v3 }
 0x414   : > { %2442 = vadd.xlane.f32.xlu1 %v5451_v58 }
 0x415   : > { %2440 = vadd.xlane.f32.xlu0 %v5456_v34  ;;  %v3871_v27 = vpop.f32.mrb[30].mxu1 }
 0x416   : > { %v5463_v14 = vadd.f32 %v3871_v27, %v5334_v47  ;;  %v2373_v30 = vpop.f32.mrb[31].mxu1  ;;  %v5502_v27 = vpop.permute.xlu0 %3099 }
 0x417   : > { %v5466_v2 = vadd.f32 %v5334_v47, %v2373_v30  ;;  %v5483_v47 = vpop.permute.xlu1 %2994  ;;  %6130 = vst [vmem:[#allocation38_spill] sm:$0xff] %v5502_v27 }
 0x418   : > { %2446 = vadd.xlane.f32.xlu1 %v5463_v14 }
 0x419   : > { %2444 = vadd.xlane.f32.xlu0 %v5466_v2 }
 0x41b   : > { %v5488_v42 = vpop.permute.xlu1 %3084 }
 0x41c   : > { %6125 = vst [vmem:[#allocation33_spill] sm:$0xff] %v5488_v42 }
 0x41f   : > { %v5492_v28 = vpop.permute.xlu1 %3004 }
 0x423   : > { %v5496_v55 = vpop.permute.xlu1 %3094 }
 0x424   : > { %6127 = vst [vmem:[#allocation35_spill] sm:$0xff] %v5496_v55 }
 0x427   : > { %v5500_v1 = vpop.permute.xlu1 %3014 }
 0x428   : > { %6129 = vst [vmem:[#allocation37_spill] sm:$0xff] %v5500_v1 }
 0x429   : > { %3124 = vperm.xlu1 %4029, %v2970_v59   ;;  %v5506_v59 = vpop.permute.xlu0 %3019 }
 0x42a   : > { %6132 = vst [vmem:[#allocation40_spill] sm:$0xff] %v5506_v59 }
 0x42b   : > { %v5504_v30 = vpop.permute.xlu1 %3104 }
 0x42c   : > { %6131 = vst [vmem:[#allocation39_spill] sm:$0xff] %v5504_v30 }
 0x42d   : > { %v5510_v42 = vpop.permute.xlu0 %3109 }
 0x42e   : > { %6134 = vst [vmem:[#allocation42_spill] sm:$0xff] %v5510_v42  ;;  %v5525_v42 = vld [vmem:[%s6063_s11] ss:$0 sm:$0xff] }
 0x42f   : > { %3039 = vperm.xlu0 %4028, %v2953_v29   ;;  %v5508_v29 = vpop.permute.xlu1 %3024 }
 0x430   : > { %6133 = vst [vmem:[#allocation41_spill] sm:$0xff] %v5508_v29 }
 0x431   : > { %v5514_v43 = vpop.permute.xlu0 %3029 }
 0x432   : > { %6136 = vst [vmem:[#allocation44_spill] sm:$0xff] %v5514_v43 }
 0x433   : > { %v5512_v8 = vpop.permute.xlu1 %3114 }
 0x434   : > { %6135 = vst [vmem:[#allocation43_spill] sm:$0xff] %v5512_v8 }
 0x435   : > { %v5518_v55 = vpop.permute.xlu0 %3119 }
 0x436   : > { %6138 = vst [vmem:[#allocation46_spill] sm:$0xff] %v5518_v55 }
 0x437   : > { %v5516_v35 = vpop.permute.xlu1 %3034 }
 0x438   : > { %6137 = vst [vmem:[#allocation45_spill] sm:$0xff] %v5516_v35 }
 0x45f   : > { %v2387_v37 = vpop.xlane.xlu1 %2386 }
 0x460   : > { %v2449_v26 = vmul.f32 0.03125, %v2387_v37  ;;  %v2385_v56 = vpop.xlane.xlu0 %2384 }
 0x461   : > { %v2448_v27 = vmul.f32 0.03125, %v2385_v56 }
 0x462   : > { %v2481_v30 = vsub.f32 %v5337_v51, %v2449_v26 }
 0x463   : > { %v2480_v17 = vsub.f32 %v5340_v63, %v2448_v27 }
 0x464   : > { %v5528_v8 = vmul.f32 %v5525_v42, %v2481_v30 }
 0x465   : > { %v5531_v35 = vmul.f32 %v5525_v42, %v2480_v17 }
 0x466   : > { %v2545_v37 = vmul.f32 %v5528_v8, %v5528_v8  ;;  %v2391_v55 = vpop.xlane.xlu1 %2390 }
 0x467   : > { %v2544_v51 = vmul.f32 %v5531_v35, %v5531_v35  ;;  %v2451_v56 = vmul.f32 0.03125, %v2391_v55  ;;  %v2389_v63 = vpop.xlane.xlu0 %2388 }
 0x468   : > { %2578 = vadd.xlane.f32.xlu1 %v2545_v37  ;;  %v2450_v26 = vmul.f32 0.03125, %v2389_v63 }
 0x469   : > { %2576 = vadd.xlane.f32.xlu0 %v2544_v51  ;;  %v2483_v27 = vsub.f32 %v5345_v21, %v2451_v56 }
 0x46a   : > { %v2482_v30 = vsub.f32 %v5348_v5, %v2450_v26  ;;  %v2395_v43 = vpop.xlane.xlu1 %2394 }
 0x46b   : > { %v5540_v17 = vmul.f32 %v5525_v42, %v2483_v27  ;;  %v2453_v29 = vmul.f32 0.03125, %v2395_v43  ;;  %v2393_v59 = vpop.xlane.xlu0 %2392 }
 0x46c   : > { %v5543_v1 = vmul.f32 %v5525_v42, %v2482_v30  ;;  %v2452_v3 = vmul.f32 0.03125, %v2393_v59 }
 0x46d   : > { %v2485_v55 = vsub.f32 %v5353_v53, %v2453_v29  ;;  %v2547_v37 = vmul.f32 %v5540_v17, %v5540_v17 }
 0x46e   : > { %v2484_v51 = vsub.f32 %v5356_v52, %v2452_v3  ;;  %v2546_v21 = vmul.f32 %v5543_v1, %v5543_v1 }
 0x46f   : > { %v5552_v5 = vmul.f32 %v5525_v42, %v2485_v55  ;;  %v2399_v56 = vpop.xlane.xlu1 %2398  ;;  %2582 = vadd.xlane.f32.xlu1 %v2547_v37 }
 0x470   : > { %v5555_v43 = vmul.f32 %v5525_v42, %v2484_v51  ;;  %v2455_v63 = vmul.f32 0.03125, %v2399_v56  ;;  %v2397_v59 = vpop.xlane.xlu0 %2396  ;;  %2580 = vadd.xlane.f32.xlu0 %v2546_v21 }
 0x471   : > { %v2454_v53 = vmul.f32 0.03125, %v2397_v59  ;;  %v2549_v29 = vmul.f32 %v5552_v5, %v5552_v5 }
 0x472   : > { %v2487_v52 = vsub.f32 %v5361_v24, %v2455_v63  ;;  %v2548_v3 = vmul.f32 %v5555_v43, %v5555_v43 }
 0x473   : > { %v2486_v26 = vsub.f32 %v5364_v18, %v2454_v53  ;;  %v2403_v27 = vpop.xlane.xlu1 %2402  ;;  %2586 = vadd.xlane.f32.xlu1 %v2549_v29 }
 0x474   : > { %v5564_v30 = vmul.f32 %v5525_v42, %v2487_v52  ;;  %v2457_v55 = vmul.f32 0.03125, %v2403_v27  ;;  %v2401_v37 = vpop.xlane.xlu0 %2400  ;;  %2584 = vadd.xlane.f32.xlu0 %v2548_v3 }
 0x475   : > { %v5567_v51 = vmul.f32 %v5525_v42, %v2486_v26  ;;  %v2456_v21 = vmul.f32 0.03125, %v2401_v37 }
 0x476   : > { %v2489_v56 = vsub.f32 %v5369_v4, %v2457_v55  ;;  %v2551_v24 = vmul.f32 %v5564_v30, %v5564_v30 }
 0x477   : > { %v2488_v63 = vsub.f32 %v5372_v20, %v2456_v21  ;;  %v2550_v18 = vmul.f32 %v5567_v51, %v5567_v51 }
 0x478   : > { %v5576_v59 = vmul.f32 %v5525_v42, %v2489_v56  ;;  %v2407_v53 = vpop.xlane.xlu1 %2406  ;;  %2590 = vadd.xlane.f32.xlu1 %v2551_v24 }
 0x479   : > { %v5579_v29 = vmul.f32 %v5525_v42, %v2488_v63  ;;  %v2459_v52 = vmul.f32 0.03125, %v2407_v53  ;;  %v2405_v3 = vpop.xlane.xlu0 %2404  ;;  %2588 = vadd.xlane.f32.xlu0 %v2550_v18 }
 0x47a   : > { %v2458_v4 = vmul.f32 0.03125, %v2405_v3  ;;  %v2553_v26 = vmul.f32 %v5576_v59, %v5576_v59 }
 0x47b   : > { %v2491_v20 = vsub.f32 %v5377_v11, %v2459_v52  ;;  %v2552_v27 = vmul.f32 %v5579_v29, %v5579_v29 }
 0x47c   : > { %v2490_v55 = vsub.f32 %v5380_v19, %v2458_v4  ;;  %2594 = vadd.xlane.f32.xlu1 %v2553_v26 }
 0x47d   : > { %v2411_v37 = vpop.xlane.xlu1 %2410  ;;  %v5588_v21 = vmul.f32 %v5525_v42, %v2491_v20  ;;  %2592 = vadd.xlane.f32.xlu0 %v2552_v27 }
 0x47e   : > { %v2461_v56 = vmul.f32 0.03125, %v2411_v37  ;;  %v2409_v24 = vpop.xlane.xlu0 %2408  ;;  %v5591_v63 = vmul.f32 %v5525_v42, %v2490_v55 }
 0x47f   : > { %v2460_v18 = vmul.f32 0.03125, %v2409_v24  ;;  %v2555_v11 = vmul.f32 %v5588_v21, %v5588_v21 }
 0x480   : > { %v2493_v53 = vsub.f32 %v5385_v7, %v2461_v56  ;;  %v2554_v19 = vmul.f32 %v5591_v63, %v5591_v63 }
 0x481   : > { %v2492_v52 = vsub.f32 %v5388_v40, %v2460_v18  ;;  %2598 = vadd.xlane.f32.xlu1 %v2555_v11 }
 0x482   : > { %v5600_v3 = vmul.f32 %v5525_v42, %v2493_v53  ;;  %2596 = vadd.xlane.f32.xlu0 %v2554_v19 }
 0x483   : > { %v5603_v4 = vmul.f32 %v5525_v42, %v2492_v52  ;;  %v2415_v26 = vpop.xlane.xlu1 %2414 }
 0x484   : > { %v2463_v20 = vmul.f32 0.03125, %v2415_v26  ;;  %v2413_v27 = vpop.xlane.xlu0 %2412  ;;  %v2557_v7 = vmul.f32 %v5600_v3, %v5600_v3 }
 0x485   : > { %v2462_v55 = vmul.f32 0.03125, %v2413_v27  ;;  %v2556_v40 = vmul.f32 %v5603_v4, %v5603_v4 }
 0x486   : > { %v2495_v37 = vsub.f32 %v5393_v33, %v2463_v20  ;;  %2602 = vadd.xlane.f32.xlu1 %v2557_v7 }
 0x487   : > { %v2494_v56 = vsub.f32 %v5396_v23, %v2462_v55  ;;  %v2419_v24 = vpop.xlane.xlu1 %2418  ;;  %2600 = vadd.xlane.f32.xlu0 %v2556_v40 }
 0x488   : > { %v5612_v18 = vmul.f32 %v5525_v42, %v2495_v37  ;;  %v2465_v53 = vmul.f32 0.03125, %v2419_v24  ;;  %v2417_v11 = vpop.xlane.xlu0 %2416 }
 0x489   : > { %v5615_v52 = vmul.f32 %v5525_v42, %v2494_v56  ;;  %v2464_v19 = vmul.f32 0.03125, %v2417_v11 }
 0x48a   : > { %v2497_v26 = vsub.f32 %v5401_v12, %v2465_v53  ;;  %v2559_v27 = vmul.f32 %v5612_v18, %v5612_v18 }
 0x48b   : > { %v2496_v33 = vsub.f32 %v5404_v38, %v2464_v19  ;;  %v2558_v23 = vmul.f32 %v5615_v52, %v5615_v52 }
 0x48c   : > { %v5624_v20 = vmul.f32 %v5525_v42, %v2497_v26  ;;  %2606 = vadd.xlane.f32.xlu1 %v2559_v27 }
 0x48d   : > { %v5627_v7 = vmul.f32 %v5525_v42, %v2496_v33  ;;  %v2423_v55 = vpop.xlane.xlu1 %2422  ;;  %2604 = vadd.xlane.f32.xlu0 %v2558_v23 }
 0x48e   : > { %v2467_v40 = vmul.f32 0.03125, %v2423_v55  ;;  %v2421_v37 = vpop.xlane.xlu0 %2420  ;;  %v2561_v12 = vmul.f32 %v5624_v20, %v5624_v20 }
 0x48f   : > { %v2466_v56 = vmul.f32 0.03125, %v2421_v37  ;;  %v2560_v38 = vmul.f32 %v5627_v7, %v5627_v7 }
 0x490   : > { %v2499_v24 = vsub.f32 %v5409_v31, %v2467_v40  ;;  %2610 = vadd.xlane.f32.xlu1 %v2561_v12 }
 0x491   : > { %v2498_v53 = vsub.f32 %v5412_v25, %v2466_v56  ;;  %v2427_v11 = vpop.xlane.xlu1 %2426  ;;  %2608 = vadd.xlane.f32.xlu0 %v2560_v38 }
 0x492   : > { %v5636_v19 = vmul.f32 %v5525_v42, %v2499_v24  ;;  %v2469_v26 = vmul.f32 0.03125, %v2427_v11  ;;  %v2425_v27 = vpop.xlane.xlu0 %2424 }
 0x493   : > { %v5639_v33 = vmul.f32 %v5525_v42, %v2498_v53  ;;  %v2468_v23 = vmul.f32 0.03125, %v2425_v27 }
 0x494   : > { %v2501_v55 = vsub.f32 %v5417_v32, %v2469_v26  ;;  %v2563_v37 = vmul.f32 %v5636_v19, %v5636_v19 }
 0x495   : > { %v2500_v31 = vsub.f32 %v5420_v0, %v2468_v23  ;;  %v2431_v40 = vpop.xlane.xlu1 %2430  ;;  %v2562_v25 = vmul.f32 %v5639_v33, %v5639_v33 }
 0x496   : > { %v5648_v12 = vmul.f32 %v5525_v42, %v2501_v55  ;;  %v2471_v56 = vmul.f32 0.03125, %v2431_v40  ;;  %2614 = vadd.xlane.f32.xlu1 %v2563_v37  ;;  %v2429_v38 = vpop.xlane.xlu0 %2428 }
 0x497   : > { %v5651_v24 = vmul.f32 %v5525_v42, %v2500_v31  ;;  %v2470_v53 = vmul.f32 0.03125, %v2429_v38  ;;  %2612 = vadd.xlane.f32.xlu0 %v2562_v25 }
 0x498   : > { %v2503_v32 = vsub.f32 %v5425_v57, %v2471_v56  ;;  %v2565_v0 = vmul.f32 %v5648_v12, %v5648_v12 }
 0x499   : > { %v2502_v11 = vsub.f32 %v5428_v39, %v2470_v53  ;;  %v2435_v26 = vpop.xlane.xlu1 %2434  ;;  %v2564_v27 = vmul.f32 %v5651_v24, %v5651_v24 }
 0x49a   : > { %v5660_v23 = vmul.f32 %v5525_v42, %v2503_v32  ;;  %v2473_v55 = vmul.f32 0.03125, %v2435_v26  ;;  %2618 = vadd.xlane.f32.xlu1 %v2565_v0  ;;  %v2433_v37 = vpop.xlane.xlu0 %2432 }
 0x49b   : > { %v5663_v31 = vmul.f32 %v5525_v42, %v2502_v11  ;;  %v2472_v40 = vmul.f32 0.03125, %v2433_v37  ;;  %2616 = vadd.xlane.f32.xlu0 %v2564_v27 }
 0x49c   : > { %v2505_v57 = vsub.f32 %v5433_v13, %v2473_v55  ;;  %v2567_v39 = vmul.f32 %v5660_v23, %v5660_v23 }
 0x49d   : > { %v2504_v25 = vsub.f32 %v5436_v62, %v2472_v40  ;;  %v2439_v56 = vpop.xlane.xlu1 %2438  ;;  %v2566_v38 = vmul.f32 %v5663_v31, %v5663_v31 }
 0x49e   : > { %v5672_v53 = vmul.f32 %v5525_v42, %v2505_v57  ;;  %v2475_v32 = vmul.f32 0.03125, %v2439_v56  ;;  %2622 = vadd.xlane.f32.xlu1 %v2567_v39  ;;  %v2437_v0 = vpop.xlane.xlu0 %2436 }
 0x49f   : > { %v5675_v11 = vmul.f32 %v5525_v42, %v2504_v25  ;;  %v2474_v26 = vmul.f32 0.03125, %v2437_v0  ;;  %2620 = vadd.xlane.f32.xlu0 %v2566_v38 }
 0x4a0   : > { %v2507_v13 = vsub.f32 %v5443_v54, %v2475_v32  ;;  %v2569_v62 = vmul.f32 %v5672_v53, %v5672_v53 }
 0x4a1   : > { %v2506_v27 = vsub.f32 %v5446_v61, %v2474_v26  ;;  %v2443_v55 = vpop.xlane.xlu1 %2442  ;;  %v2568_v37 = vmul.f32 %v5675_v11, %v5675_v11 }
 0x4a2   : > { %v5684_v40 = vmul.f32 %v5525_v42, %v2507_v13  ;;  %v2477_v57 = vmul.f32 0.03125, %v2443_v55  ;;  %2626 = vadd.xlane.f32.xlu1 %v2569_v62  ;;  %v2441_v39 = vpop.xlane.xlu0 %2440 }
 0x4a3   : > { %v5687_v25 = vmul.f32 %v5525_v42, %v2506_v27  ;;  %v2476_v56 = vmul.f32 0.03125, %v2441_v39  ;;  %2624 = vadd.xlane.f32.xlu0 %v2568_v37 }
 0x4a4   : > { %v2509_v54 = vsub.f32 %v5451_v58, %v2477_v57  ;;  %v2571_v61 = vmul.f32 %v5684_v40, %v5684_v40 }
 0x4a5   : > { %v2508_v38 = vsub.f32 %v5456_v34, %v2476_v56  ;;  %v2447_v32 = vpop.xlane.xlu1 %2446  ;;  %v2570_v0 = vmul.f32 %v5687_v25, %v5687_v25 }
 0x4a6   : > { %v5696_v26 = vmul.f32 %v5525_v42, %v2509_v54  ;;  %v2479_v13 = vmul.f32 0.03125, %v2447_v32  ;;  %2630 = vadd.xlane.f32.xlu1 %v2571_v61  ;;  %v2445_v62 = vpop.xlane.xlu0 %2444  ;;  %v2971_v61 = vld [vmem:[%s5190_s19 + $0xf8] sm:$0xff]  ;;  %v6139_v32 = vpack.i.bf16 %v4488_v41, %v4587_v10 }
 0x4a7   : > { %v5699_v27 = vmul.f32 %v5525_v42, %v2508_v38  ;;  %v2478_v58 = vmul.f32 0.03125, %v2445_v62  ;;  %2628 = vadd.xlane.f32.xlu0 %v2570_v0  ;;  %v2955_v38 = vld [vmem:[%s5190_s19 + $0x78] sm:$0xff]  ;;  %v6141_v0 = vpack.i.bf16 %v4498_v45, %v4603_v16  ;;  %v6144_v45 = vld [vmem:[#allocation5_spill] sm:$0xff]  ;;  %v6145_v16 = vld [vmem:[#allocation16_spill] sm:$0xff] }
 0x4a8   : > { %v2511_v55 = vsub.f32 %v5463_v14, %v2479_v13  ;;  %v2573_v34 = vmul.f32 %v5696_v26, %v5696_v26 }
 0x4a9   : > { %v2510_v37 = vsub.f32 %v5466_v2, %v2478_v58  ;;  %v2572_v57 = vmul.f32 %v5699_v27, %v5699_v27  ;;  %v2954_v2 = vld [vmem:[%s5190_s19 + $0x70] sm:$0xff]  ;;  %v5729_v13 = vpop.permute.xlu1 %3124  ;;  %v6142_v58 = vpack.i.bf16 %v4508_v48, %v4600_v15 }
 0x4aa   : > { %v5708_v39 = vmul.f32 %v5525_v42, %v2511_v55  ;;  %2634 = vadd.xlane.f32.xlu1 %v2573_v34 }
 0x4ab   : > { %v5711_v56 = vmul.f32 %v5525_v42, %v2510_v37  ;;  %2632 = vadd.xlane.f32.xlu0 %v2572_v57  ;;  %v6140_v42 = vpack.i.bf16 %v4495_v44, %v4584_v9  ;;  %v6143_v44 = vpack.i.bf16 %v4511_v49, %v4619_v22  ;;  %v6146_v57 = vpack.i.bf16 %v6144_v45, %v6145_v16 }
 0x4ac   : > { %v2575_v14 = vmul.f32 %v5708_v39, %v5708_v39 }
 0x4ad   : > { %v2574_v54 = vmul.f32 %v5711_v56, %v5711_v56 }
 0x4ae   : > { %2638 = vadd.xlane.f32.xlu1 %v2575_v14  ;;  %v5731_v62 = vpop.permute.xlu0 %3039 }
 0x4af   : > { %2636 = vadd.xlane.f32.xlu0 %v2574_v54 }
 0x4bf   : > { %3044 = vperm.xlu1 %4029, %v2954_v2   ;;  %v6147_v2 = vld [vmem:[#allocation6_spill] sm:$0xff] }
 0x4c5   : > { %3129 = vperm.xlu0 %4028, %v2971_v61   ;;  %v6148_v61 = vld [vmem:[#allocation18_spill] sm:$0xff] }
 0x4c9   : > { %3049 = vperm.xlu0 %4028, %v2955_v38   ;;  %v6149_v38 = vpack.i.bf16 %v6147_v2, %v6148_v61  ;;  %v6153_v61 = vld [vmem:[#allocation8_spill] sm:$0xff] }
 0x4e8   : > { %4031 = vxpose.xlu1.b32.start [1/16] (narrow) %v6139_v32, 8 }
 0x4ec   : > { %4033 = vxpose.xlu1.b32.cont [2/16] (narrow) %v6140_v42, 8 }
 0x4f0   : > { %4035 = vxpose.xlu1.b32.cont [3/16] (narrow) %v6141_v0, 8 }
 0x4f4   : > { %4037 = vxpose.xlu1.b32.cont [4/16] (narrow) %v6142_v58, 8 }
 0x4f5   : > { %v2579_v55 = vpop.xlane.xlu1 %2578 }
 0x4f6   : > { %v2641_v34 = vmul.f32 0.03125, %v2579_v55  ;;  %v2577_v41 = vpop.xlane.xlu0 %2576 }
 0x4f7   : > { %v2640_v10 = vmul.f32 0.03125, %v2577_v41  ;;  %v6150_v41 = vld [vmem:[#allocation7_spill] sm:$0xff] }
 0x4f8   : > { %4039 = vxpose.xlu1.b32.cont [5/16] (narrow) %v6143_v44, 8  ;;  %v2673_v9 = vadd.f32 1e-05, %v2641_v34  ;;  %v5748_v34 = vld [vmem:[%s6061_s9] ss:$0 sm:$0xff] }
 0x4f9   : > { %v2672_v37 = vadd.f32 1e-05, %v2640_v10  ;;  %v6151_v10 = vld [vmem:[#allocation17_spill] sm:$0xff] }
 0x4fa   : > { %4131 = vrsqrt.f32 %v2673_v9  ;;  %v6152_v44 = vpack.i.bf16 %v6150_v41, %v6151_v10 }
 0x4fb   : > { %4133 = vrsqrt.f32 %v2672_v37 }
 0x4fc   : > { %4041 = vxpose.xlu1.b32.cont [6/16] (narrow) %v6146_v57, 8  ;;  %v2583_v14 = vpop.xlane.xlu1 %2582 }
 0x4fd   : > { %v2643_v54 = vmul.f32 0.03125, %v2583_v14  ;;  %v2581_v48 = vpop.xlane.xlu0 %2580 }
 0x4fe   : > { %v2642_v15 = vmul.f32 0.03125, %v2581_v48 }
 0x4ff   : > { %v2675_v32 = vadd.f32 1e-05, %v2643_v54 }
 0x500   : > { %4043 = vxpose.xlu1.b32.cont [7/16] (narrow) %v6149_v38, 8  ;;  %v2674_v42 = vadd.f32 1e-05, %v2642_v15  ;;  %v2587_v49 = vpop.xlane.xlu1 %2586  ;;  %v6154_v38 = vld [vmem:[#allocation20_spill] sm:$0xff] }
 0x501   : > { %4135 = vrsqrt.f32 %v2675_v32  ;;  %v2645_v22 = vmul.f32 0.03125, %v2587_v49  ;;  %v2585_v0 = vpop.xlane.xlu0 %2584  ;;  %v6155_v32 = vpack.i.bf16 %v6153_v61, %v6154_v38 }
 0x502   : > { %4137 = vrsqrt.f32 %v2674_v42  ;;  %v2644_v58 = vmul.f32 0.03125, %v2585_v0 }
 0x503   : > { %v2677_v9 = vadd.f32 1e-05, %v2645_v22 }
 0x504   : > { %v4132_v55 = vpop.eup %4131  ;;  %4045 = vxpose.xlu1.b32.cont [8/16] (narrow) %v6152_v44, 8  ;;  %v2676_v16 = vadd.f32 1e-05, %v2644_v58  ;;  %v6156_v44 = vld [vmem:[#allocation9_spill] sm:$0xff] }
 0x505   : > { %v4134_v37 = vpop.eup %4133  ;;  %v2737_v45 = vmul.f32 %v4132_v55, %v5528_v8  ;;  %4139 = vrsqrt.f32 %v2677_v9  ;;  %v2591_v14 = vpop.xlane.xlu1 %2590  ;;  %v5763_v8 = vld [vmem:[%s6062_s10] ss:$0 sm:$0xff] }
 0x506   : > { %v2736_v57 = vmul.f32 %v4134_v37, %v5531_v35  ;;  %4141 = vrsqrt.f32 %v2676_v16  ;;  %v2647_v48 = vmul.f32 0.03125, %v2591_v14  ;;  %v2589_v15 = vpop.xlane.xlu0 %2588  ;;  %v6157_v9 = vld [vmem:[#allocation19_spill] sm:$0xff] }
 0x507   : > { %v2775_v54 = vmul.f32 %v5748_v34, %v2737_v45  ;;  %v2646_v42 = vmul.f32 0.03125, %v2589_v15  ;;  %v6158_v37 = vpack.i.bf16 %v6156_v44, %v6157_v9 }
 0x508   : > { %v2774_v2 = vmul.f32 %v5748_v34, %v2736_v57  ;;  %4047 = vxpose.xlu1.b32.cont [9/16] (narrow) %v6155_v32, 8  ;;  %v2679_v35 = vadd.f32 1e-05, %v2647_v48 }
 0x509   : > { %v2678_v49 = vadd.f32 1e-05, %v2646_v42  ;;  %v2595_v22 = vpop.xlane.xlu1 %2594  ;;  %v2813_v41 = vadd.f32 %v5763_v8, %v2775_v54  ;;  %v6159_v42 = vld [vmem:[#allocation10_spill] sm:$0xff] }
 0x50a   : > { %4143 = vrsqrt.f32 %v2679_v35  ;;  %v2649_v0 = vmul.f32 0.03125, %v2595_v22  ;;  %v2593_v58 = vpop.xlane.xlu0 %2592  ;;  %v2812_v55 = vadd.f32 %v5763_v8, %v2774_v2  ;;  %v6160_v35 = vld [vmem:[#allocation22_spill] sm:$0xff] }
 0x50b   : > { %v4136_v10 = vpop.eup %4135  ;;  %4145 = vrsqrt.f32 %v2678_v49  ;;  %v2648_v45 = vmul.f32 0.03125, %v2593_v58  ;;  %v2877_v54 = vmul.f32 0.2, %v2813_v41  ;;  %v6161_v22 = vpack.i.bf16 %v6159_v42, %v6160_v35  ;;  %v6162_v42 = vld [vmem:[#allocation11_spill] sm:$0xff]  ;;  %v6163_v35 = vld [vmem:[#allocation21_spill] sm:$0xff] }
 0x50c   : > { %4049 = vxpose.xlu1.b32.cont [10/16] (narrow) %v6158_v37, 8  ;;  %v4138_v16 = vpop.eup %4137  ;;  %v2739_v57 = vmul.f32 %v4136_v10, %v5540_v17  ;;  %v2681_v14 = vadd.f32 1e-05, %v2649_v0  ;;  %v2876_v38 = vmul.f32 0.2, %v2812_v55  ;;  %vm2844_vm0 = vcmp.ge.f32.partialorder %v2812_v55, 0.0 }
 0x50d   : > { %v2738_v48 = vmul.f32 %v4138_v16, %v5543_v1  ;;  %v2680_v15 = vadd.f32 1e-05, %v2648_v45  ;;  %vm2845_vm5 = vcmp.ge.f32.partialorder %v2813_v41, 0.0 }
 0x50e   : > { %v2777_v61 = vmul.f32 %v5748_v34, %v2739_v57  ;;  %4147 = vrsqrt.f32 %v2681_v14  ;;  %v2599_v2 = vpop.xlane.xlu1 %2598  ;;  %v2908_v45 = vsel %vm2844_vm0, %v2812_v55, %v2876_v38  ;;  %v2909_v16 = vsel %vm2845_vm5, %v2813_v41, %v2877_v54 }
 0x50f   : > { %v4140_v32 = vpop.eup %4139  ;;  %4149 = vrsqrt.f32 %v2680_v15  ;;  %v2651_v49 = vmul.f32 0.03125, %v2599_v2  ;;  %v2597_v58 = vpop.xlane.xlu0 %2596  ;;  %v2776_v1 = vmul.f32 %v5748_v34, %v2738_v48 }
 0x510   : > { %4051 = vxpose.xlu1.b32.cont [11/16] (narrow) %v6161_v22, 8  ;;  %v4142_v17 = vpop.eup %4141  ;;  %v2741_v0 = vmul.f32 %v4140_v32, %v5552_v5  ;;  %v2650_v10 = vmul.f32 0.03125, %v2597_v58  ;;  %v2815_v57 = vadd.f32 %v5763_v8, %v2777_v61  ;;  %v6164_v22 = vpack.i.bf16 %v6162_v42, %v6163_v35 }
 0x511   : > { %v2740_v44 = vmul.f32 %v4142_v17, %v5555_v43  ;;  %v2683_v2 = vadd.f32 1e-05, %v2651_v49  ;;  %v2814_v58 = vadd.f32 %v5763_v8, %v2776_v1  ;;  %v5790_v17 = vmul.f32 %v5453_v50, %v2908_v45 }
 0x512   : > { %v2682_v9 = vadd.f32 1e-05, %v2650_v10  ;;  %v2779_v14 = vmul.f32 %v5748_v34, %v2741_v0  ;;  %v5793_v0 = vmul.f32 %v5472_v60, %v2909_v16  ;;  %v6165_v10 = vld [vmem:[#allocation12_spill] sm:$0xff]  ;;  %vm2847_vm6 = vcmp.ge.f32.partialorder %v2815_v57, 0.0 }
 0x513   : > { %v2603_v37 = vpop.xlane.xlu1 %2602  ;;  %v2778_v15 = vmul.f32 %v5748_v34, %v2740_v44  ;;  %v6166_v44 = vld [vmem:[#allocation24_spill] sm:$0xff]  ;;  %v2879_v1 = vmul.f32 0.2, %v2815_v57  ;;  %vm2846_vm7 = vcmp.ge.f32.partialorder %v2814_v58, 0.0 }
 0x514   : > { %4053 = vxpose.xlu1.b32.cont [12/16] (narrow) %v6164_v22, 8  ;;  %v2653_v48 = vmul.f32 0.03125, %v2603_v37  ;;  %v2601_v5 = vpop.xlane.xlu0 %2600  ;;  %v4144_v32 = vpop.eup %4143  ;;  %4151 = vrsqrt.f32 %v2682_v9  ;;  %v6167_v9 = vpack.i.bf16 %v6165_v10, %v6166_v44 }
 0x515   : > { %v2652_v43 = vmul.f32 0.03125, %v2601_v5  ;;  %v4146_v55 = vpop.eup %4145  ;;  %v2743_v41 = vmul.f32 %v4144_v32, %v5564_v30  ;;  %v2816_v38 = vadd.f32 %v5763_v8, %v2778_v15  ;;  %4153 = vrsqrt.f32 %v2683_v2  ;;  %v6168_v32 = vld [vmem:[#allocation13_spill] sm:$0xff] }
 0x516   : > { %v2685_v61 = vadd.f32 1e-05, %v2653_v48  ;;  %v2742_v54 = vmul.f32 %v4146_v55, %v5567_v51  ;;  %v2817_v30 = vadd.f32 %v5763_v8, %v2779_v14  ;;  %v2878_v2 = vmul.f32 0.2, %v2814_v58 }
 0x517   : > { %v2684_v49 = vadd.f32 1e-05, %v2652_v43  ;;  %v2781_v15 = vmul.f32 %v5748_v34, %v2743_v41  ;;  %v2880_v42 = vmul.f32 0.2, %v2816_v38  ;;  %v6169_v43 = vld [vmem:[#allocation23_spill] sm:$0xff]  ;;  %v3906_v41 = vpack.c.bf16 %v5793_v0, %v5790_v17 }
 0x518   : > { %4055 = vxpose.xlu1.b32.cont [13/16] (narrow) %v6167_v9, 8  ;;  %v4148_v37 = vpop.eup %4147  ;;  %v2780_v51 = vmul.f32 %v5748_v34, %v2742_v54  ;;  %4155 = vrsqrt.f32 %v2685_v61  ;;  %v6170_v55 = vpack.i.bf16 %v6168_v32, %v6169_v43  ;;  %vm2848_vm8 = vcmp.ge.f32.partialorder %v2816_v38, 0.0  ;;  %v6172_v32 = vld [vmem:[#allocation26_spill] sm:$0xff] }
 0x519   : > { %v2607_v50 = vpop.xlane.xlu1 %2606  ;;  %v4150_v45 = vpop.eup %4149  ;;  %4157 = vrsqrt.f32 %v2684_v49  ;;  %v2745_v35 = vmul.f32 %v4148_v37, %v5576_v59  ;;  %v2881_v61 = vmul.f32 0.2, %v2817_v30  ;;  %vm2849_vm9 = vcmp.ge.f32.partialorder %v2817_v30, 0.0 }
 0x51a   : > { %v2655_v60 = vmul.f32 0.03125, %v2607_v50  ;;  %v2605_v16 = vpop.xlane.xlu0 %2604  ;;  %v2744_v22 = vmul.f32 %v4150_v45, %v5579_v29  ;;  %v2818_v14 = vadd.f32 %v5763_v8, %v2780_v51  ;;  %v2819_v59 = vadd.f32 %v5763_v8, %v2781_v15 }
 0x51b   : > { %v2654_v48 = vmul.f32 0.03125, %v2605_v16  ;;  %v2910_v9 = vsel %vm2846_vm7, %v2814_v58, %v2878_v2  ;;  %v2911_v37 = vsel %vm2847_vm6, %v2815_v57, %v2879_v1  ;;  %v2783_v50 = vmul.f32 %v5748_v34, %v2745_v35 }
 0x51c   : > { %v2687_v5 = vadd.f32 1e-05, %v2655_v60  ;;  %4057 = vxpose.xlu1.b32.cont [14/16] (narrow) %v6170_v55, 8  ;;  %v2782_v54 = vmul.f32 %v5748_v34, %v2744_v22  ;;  %v2912_v60 = vsel %vm2848_vm8, %v2816_v38, %v2880_v42  ;;  %v2882_v16 = vmul.f32 0.2, %v2818_v14 }
 0x51d   : > { %v2686_v49 = vadd.f32 1e-05, %v2654_v48  ;;  %v2611_v10 = vpop.xlane.xlu1 %2610  ;;  %v6171_v48 = vld [vmem:[#allocation14_spill] sm:$0xff]  ;;  %v2913_v15 = vsel %vm2849_vm9, %v2817_v30, %v2881_v61  ;;  %vm2850_vm10 = vcmp.ge.f32.partialorder %v2818_v14, 0.0  ;;  %vm2851_vm11 = vcmp.ge.f32.partialorder %v2819_v59, 0.0 }
 0x51e   : > { %4159 = vrsqrt.f32 %v2687_v5  ;;  %v2657_v29 = vmul.f32 0.03125, %v2611_v10  ;;  %v2609_v44 = vpop.xlane.xlu0 %2608  ;;  %v4152_v51 = vpop.eup %4151  ;;  %v6173_v43 = vpack.i.bf16 %v6171_v48, %v6172_v32  ;;  %v2883_v5 = vmul.f32 0.2, %v2819_v59  ;;  %v6174_v10 = vld [vmem:[#allocation15_spill] sm:$0xff] }
 0x51f   : > { %v2656_v45 = vmul.f32 0.03125, %v2609_v44  ;;  %4161 = vrsqrt.f32 %v2686_v49  ;;  %v2820_v58 = vadd.f32 %v5763_v8, %v2782_v54  ;;  %v4154_v57 = vpop.eup %4153  ;;  %v2746_v1 = vmul.f32 %v4152_v51, %v5591_v63 }
 0x520   : > { %v2689_v22 = vadd.f32 1e-05, %v2657_v29  ;;  %4059 = vxpose.xlu1.b32.cont [15/16] (narrow) %v6173_v43, 8  ;;  %v5820_v38 = vmul.f32 %v5474_v6, %v2910_v9  ;;  %v5823_v2 = vmul.f32 %v5480_v46, %v2911_v37  ;;  %v5826_v30 = vmul.f32 %v5483_v47, %v2912_v60  ;;  %v6175_v29 = vld [vmem:[#allocation25_spill] sm:$0xff] }
 0x521   : > { %v2688_v55 = vadd.f32 1e-05, %v2656_v45  ;;  %v5829_v61 = vmul.f32 %v5490_v36, %v2913_v15  ;;  %v2821_v54 = vadd.f32 %v5763_v8, %v2783_v50  ;;  %v6176_v6 = vpack.i.bf16 %v6174_v10, %v6175_v29  ;;  %v6178_v10 = vld [vmem:[#allocation37_spill] sm:$0xff] }
 0x522   : > { %4163 = vrsqrt.f32 %v2689_v22  ;;  %v4156_v42 = vpop.eup %4155  ;;  %v2914_v46 = vsel %vm2850_vm10, %v2818_v14, %v2882_v16  ;;  %v2915_v9 = vsel %vm2851_vm11, %v2819_v59, %v2883_v5  ;;  %v2884_v37 = vmul.f32 0.2, %v2820_v58  ;;  %v6177_v59 = vld [vmem:[#allocation36_spill] sm:$0xff] }
 0x523   : > { %4165 = vrsqrt.f32 %v2688_v55  ;;  %v2615_v35 = vpop.xlane.xlu1 %2614  ;;  %v4158_v49 = vpop.eup %4157  ;;  %v2747_v47 = vmul.f32 %v4154_v57, %v5588_v21  ;;  %vm2852_vm12 = vcmp.ge.f32.partialorder %v2820_v58, 0.0  ;;  %vm2853_vm13 = vcmp.ge.f32.partialorder %v2821_v54, 0.0 }
 0x524   : > { %v2659_v63 = vmul.f32 0.03125, %v2615_v35  ;;  %4061 = vxpose.xlu1.b32.end [16/16] (narrow) %v6176_v6, 8  ;;  %v2613_v44 = vpop.xlane.xlu0 %2612  ;;  %v2784_v36 = vmul.f32 %v5748_v34, %v2746_v1  ;;  %v2749_v50 = vmul.f32 %v4156_v42, %v5600_v3  ;;  %v2885_v60 = vmul.f32 0.2, %v2821_v54  ;;  %v6179_v6 = vld [vmem:[#allocation40_spill] sm:$0xff] }
 0x525   : > { %v2658_v51 = vmul.f32 0.03125, %v2613_v44  ;;  %v2748_v22 = vmul.f32 %v4158_v49, %v5603_v4  ;;  %v5842_v14 = vmul.f32 %v5492_v28, %v2914_v46  ;;  %v5845_v16 = vmul.f32 %v6177_v59, %v2915_v9 }
 0x526   : > { %v2691_v45 = vadd.f32 1e-05, %v2659_v63  ;;  %v2916_v5 = vsel %vm2852_vm12, %v2820_v58, %v2884_v37  ;;  %v2917_v55 = vsel %vm2853_vm13, %v2821_v54, %v2885_v60  ;;  %v3910_v57 = vpack.c.bf16 %v5823_v2, %v5820_v38 }
 0x527   : > { %v2690_v48 = vadd.f32 1e-05, %v2658_v51  ;;  %v2619_v32 = vpop.xlane.xlu1 %2618  ;;  %v3914_v4 = vpack.c.bf16 %v5829_v61, %v5826_v30  ;;  %v2785_v28 = vmul.f32 %v5748_v34, %v2747_v47  ;;  %v5853_v42 = vmul.f32 %v5748_v34, %v2749_v50  ;;  %v6190_v61 = vld [vmem:[#allocation35_spill] sm:$0xff] }
 0x528   : > { %v4160_v21 = vpop.eup %4159  ;;  %4167 = vrsqrt.f32 %v2691_v45  ;;  %v2661_v43 = vmul.f32 0.03125, %v2619_v32  ;;  %v2617_v15 = vpop.xlane.xlu0 %2616  ;;  %v2786_v58 = vmul.f32 %v5748_v34, %v2748_v22  ;;  %v5858_v29 = vmul.f32 %v6178_v10, %v2916_v5 }
 0x529   : > { %4169 = vrsqrt.f32 %v2690_v48  ;;  %v2660_v3 = vmul.f32 0.03125, %v2617_v15  ;;  %v4162_v1 = vpop.eup %4161  ;;  %v2751_v49 = vmul.f32 %v4160_v21, %v5612_v18  ;;  %v5861_v44 = vmul.f32 %v6179_v6, %v2917_v55 }
 0x52a   : > { %v2693_v35 = vadd.f32 1e-05, %v2661_v43  ;;  %v3918_v47 = vpack.c.bf16 %v5845_v16, %v5842_v14  ;;  %v5866_v51 = vadd.f32 %v5763_v8, %v2784_v36  ;;  %v2750_v60 = vmul.f32 %v4162_v1, %v5615_v52  ;;  %v6193_v14 = vld [vmem:[#allocation42_spill] sm:$0xff] }
 0x52b   : > { %v2692_v54 = vadd.f32 1e-05, %v2660_v3  ;;  %v2623_v63 = vpop.xlane.xlu1 %2622  ;;  %v2789_v32 = vmul.f32 %v5748_v34, %v2751_v49  ;;  %v5873_v59 = vadd.f32 %v5763_v8, %v2785_v28  ;;  %v3922_v15 = vpack.c.bf16 %v5861_v44, %v5858_v29  ;;  %v6194_v44 = vld [vmem:[#allocation43_spill] sm:$0xff] }
 0x52c   : > { %v4164_v46 = vpop.eup %4163  ;;  %4171 = vrsqrt.f32 %v2693_v35  ;;  %v2663_v9 = vmul.f32 0.03125, %v2623_v63  ;;  %v2621_v37 = vpop.xlane.xlu0 %2620  ;;  %v5883_v55 = vmul.f32 0.2, %v5866_v51  ;;  %v2788_v28 = vmul.f32 %v5748_v34, %v2750_v60 }
 0x52d   : > { %v4166_v18 = vpop.eup %4165  ;;  %v2753_v50 = vmul.f32 %v4164_v46, %v5624_v20  ;;  %4173 = vrsqrt.f32 %v2692_v54  ;;  %v2662_v45 = vmul.f32 0.03125, %v2621_v37  ;;  %v5879_v20 = vadd.f32 %v5763_v8, %v2786_v58 }
 0x52e   : > { %v2752_v22 = vmul.f32 %v4166_v18, %v5627_v7  ;;  %v2695_v48 = vadd.f32 1e-05, %v2663_v9  ;;  %v5889_v58 = vadd.f32 %v5763_v8, %v2789_v32  ;;  %v5892_v63 = vmul.f32 0.2, %v5873_v59 }
 0x52f   : > { %v2694_v21 = vadd.f32 1e-05, %v2662_v45  ;;  %v2627_v43 = vpop.xlane.xlu1 %2626  ;;  %v2791_v36 = vmul.f32 %v5748_v34, %v2753_v50  ;;  %vm2854_vm1 = vcmp.ge.f32.partialorder %v5866_v51, 0.0  ;;  %vm2855_vm4 = vcmp.ge.f32.partialorder %v5873_v59, 0.0 }
 0x530   : > { %4175 = vrsqrt.f32 %v2695_v48  ;;  %v2665_v52 = vmul.f32 0.03125, %v2627_v43  ;;  %v2625_v5 = vpop.xlane.xlu0 %2624  ;;  %v2790_v7 = vmul.f32 %v5748_v34, %v2752_v22  ;;  %v6180_v43 = vld [vmem:[#allocation27_spill] sm:$0xff]  ;;  %v2919_v2 = vsel %vm2855_vm4, %v5873_v59, %v5892_v63 }
 0x531   : > { %4177 = vrsqrt.f32 %v2694_v21  ;;  %v2664_v3 = vmul.f32 0.03125, %v2625_v5  ;;  %v2829_v1 = vadd.f32 %v5763_v8, %v2791_v36  ;;  %v5899_v36 = vadd.f32 %v5763_v8, %v2788_v28 }
 0x532   : > { %v4168_v35 = vpop.eup %4167  ;;  %v2697_v49 = vadd.f32 1e-05, %v2665_v52  ;;  %v2828_v54 = vadd.f32 %v5763_v8, %v2790_v7 }
 0x533   : > { %v4170_v10 = vpop.eup %4169  ;;  %v2755_v6 = vmul.f32 %v4168_v35, %v5636_v19  ;;  %v2696_v46 = vadd.f32 1e-05, %v2664_v3  ;;  %v2631_v9 = vpop.xlane.xlu1 %2630  ;;  %vm2861_vm14 = vcmp.ge.f32.partialorder %v2829_v1, 0.0  ;;  %v2893_v37 = vmul.f32 0.2, %v2829_v1 }
 0x534   : > { %v2754_v18 = vmul.f32 %v4170_v10, %v5639_v33  ;;  %4179 = vrsqrt.f32 %v2697_v49  ;;  %v2667_v50 = vmul.f32 0.03125, %v2631_v9  ;;  %v2629_v45 = vpop.xlane.xlu0 %2628  ;;  %vm2860_vm15 = vcmp.ge.f32.partialorder %v2828_v54, 0.0  ;;  %v6181_v9 = vld [vmem:[#allocation28_spill] sm:$0xff] }
 0x535   : > { %4181 = vrsqrt.f32 %v2696_v46  ;;  %v2666_v60 = vmul.f32 0.03125, %v2629_v45  ;;  %v2892_v22 = vmul.f32 0.2, %v2828_v54  ;;  %v2925_v48 = vsel %vm2861_vm14, %v2829_v1, %v2893_v37 }
 0x536   : > { %v4172_v32 = vpop.eup %4171  ;;  %v2699_v21 = vadd.f32 1e-05, %v2667_v50  ;;  %v3149_v19 = vmul.f32 %v6180_v43, %v2925_v48  ;;  %v2792_v52 = vmul.f32 %v5748_v34, %v2754_v18  ;;  %v2793_v49 = vmul.f32 %v5748_v34, %v2755_v6 }
 0x537   : > { %v4174_v33 = vpop.eup %4173  ;;  %v2757_v5 = vmul.f32 %v4172_v32, %v5648_v12  ;;  %v2698_v7 = vadd.f32 1e-05, %v2666_v60  ;;  %v2635_v3 = vpop.xlane.xlu1 %2634  ;;  %v2924_v35 = vsel %vm2860_vm15, %v2828_v54, %v2892_v22  ;;  %vm2858_vm4 = vcmp.ge.f32.partialorder %v5899_v36, 0.0 }
 0x538   : > { %v2756_v1 = vmul.f32 %v4174_v33, %v5651_v24  ;;  %4183 = vrsqrt.f32 %v2699_v21  ;;  %v2669_v10 = vmul.f32 0.03125, %v2635_v3  ;;  %v2633_v46 = vpop.xlane.xlu0 %2632  ;;  %v3148_v37 = vmul.f32 %v6181_v9, %v2924_v35 }
 0x539   : > { %4185 = vrsqrt.f32 %v2698_v7  ;;  %v2668_v28 = vmul.f32 0.03125, %v2633_v46  ;;  %v2830_v50 = vadd.f32 %v5763_v8, %v2792_v52  ;;  %v2831_v18 = vadd.f32 %v5763_v8, %v2793_v49 }
 0x53a   : > { %v4176_v45 = vpop.eup %4175  ;;  %v2701_v12 = vadd.f32 1e-05, %v2669_v10  ;;  %v3904_v60 = vpack.c.bf16 %v3149_v19, %v3148_v37  ;;  %v2794_v54 = vmul.f32 %v5748_v34, %v2756_v1  ;;  %v2795_v6 = vmul.f32 %v5748_v34, %v2757_v5  ;;  %v6182_v37 = vld [vmem:[#allocation29_spill] sm:$0xff] }
 0x53b   : > { %v4178_v22 = vpop.eup %4177  ;;  %v2759_v24 = vmul.f32 %v4176_v45, %v5660_v23  ;;  %v2700_v48 = vadd.f32 1e-05, %v2668_v28  ;;  %v2639_v32 = vpop.xlane.xlu1 %2638  ;;  %vm2862_vm2 = vcmp.ge.f32.partialorder %v2830_v50, 0.0  ;;  %vm2863_vm3 = vcmp.ge.f32.partialorder %v2831_v18, 0.0 }
 0x53c   : > { %v2758_v21 = vmul.f32 %v4178_v22, %v5663_v31  ;;  %4187 = vrsqrt.f32 %v2701_v12  ;;  %v2671_v43 = vmul.f32 0.03125, %v2639_v32  ;;  %v2637_v52 = vpop.xlane.xlu0 %2636  ;;  %3905 = vmatprep.subr.bf16.mxu1 %v3904_v60  ;;  %v2894_v33 = vmul.f32 0.2, %v2830_v50 }
 0x53d   : > { %4189 = vrsqrt.f32 %v2700_v48  ;;  %v2670_v19 = vmul.f32 0.03125, %v2637_v52  ;;  %3907 = vmatpush3.bf16.msra.mxu1 %v3906_v41  ;;  %v2895_v23 = vmul.f32 0.2, %v2831_v18  ;;  %v2832_v5 = vadd.f32 %v5763_v8, %v2794_v54  ;;  %v6183_v41 = vld [vmem:[#allocation30_spill] sm:$0xff] }
 0x53e   : > { %v4180_v7 = vpop.eup %4179  ;;  %v2703_v3 = vadd.f32 1e-05, %v2671_v43  ;;  %v2926_v31 = vsel %vm2862_vm2, %v2830_v50, %v2894_v33  ;;  %v2833_v35 = vadd.f32 %v5763_v8, %v2795_v6  ;;  %v2796_v49 = vmul.f32 %v5748_v34, %v2758_v21  ;;  %v6184_v21 = vld [vmem:[#allocation31_spill] sm:$0xff] }
 0x53f   : > { %v4182_v1 = vpop.eup %4181  ;;  %v2761_v10 = vmul.f32 %v4180_v7, %v5672_v53  ;;  %v2702_v46 = vadd.f32 1e-05, %v2670_v19  ;;  %v2927_v9 = vsel %vm2863_vm3, %v2831_v18, %v2895_v23  ;;  %v3150_v17 = vmul.f32 %v6182_v37, %v2926_v31 }
 0x540   : > { %v2760_v0 = vmul.f32 %v4182_v1, %v5675_v11  ;;  %4191 = vrsqrt.f32 %v2703_v3  ;;  %v3151_v28 = vmul.f32 %v6183_v41, %v2927_v9  ;;  %v2918_v50 = vsel %vm2854_vm1, %v5866_v51, %v5883_v55  ;;  %v6186_v1 = vld [vmem:[#allocation33_spill] sm:$0xff] }
 0x541   : > { %4193 = vrsqrt.f32 %v2702_v46  ;;  %vm2864_vm0 = vcmp.ge.f32.partialorder %v2832_v5, 0.0  ;;  %vm2865_vm5 = vcmp.ge.f32.partialorder %v2833_v35, 0.0  ;;  %v2896_v45 = vmul.f32 0.2, %v2832_v5  ;;  %v6187_v46 = vld [vmem:[#allocation34_spill] sm:$0xff] }
 0x542   : > { %v4184_v53 = vpop.eup %4183  ;;  %v3908_v12 = vpack.c.bf16 %v3151_v28, %v3150_v17  ;;  %v2897_v60 = vmul.f32 0.2, %v2833_v35  ;;  %v2797_v18 = vmul.f32 %v5748_v34, %v2759_v24  ;;  %v2834_v54 = vadd.f32 %v5763_v8, %v2796_v49  ;;  %v6185_v24 = vld [vmem:[#allocation32_spill] sm:$0xff] }
 0x543   : > { %v4186_v11 = vpop.eup %4185  ;;  %v2763_v6 = vmul.f32 %v4184_v53, %v5684_v40  ;;  %v2928_v22 = vsel %vm2864_vm0, %v2832_v5, %v2896_v45  ;;  %v2798_v48 = vmul.f32 %v5748_v34, %v2760_v0  ;;  %v2799_v32 = vmul.f32 %v5748_v34, %v2761_v10  ;;  %v6189_v28 = vld [vmem:[#allocation44_spill] sm:$0xff] }
 0x544   : > { %v2762_v51 = vmul.f32 %v4186_v11, %v5687_v25  ;;  %3909 = vmatprep.subr.bf16.mxu1 %v3908_v12  ;;  %v2929_v55 = vsel %vm2865_vm5, %v2833_v35, %v2897_v60  ;;  %v3152_v43 = vmul.f32 %v6184_v21, %v2928_v22  ;;  %v2835_v52 = vadd.f32 %v5763_v8, %v2797_v18 }
 0x545   : > { %3911 = vmatpush3.bf16.msra.mxu1 %v3910_v57  ;;  %v3153_v33 = vmul.f32 %v6185_v24, %v2929_v55  ;;  %vm2866_vm6 = vcmp.ge.f32.partialorder %v2834_v54, 0.0  ;;  %v2898_v40 = vmul.f32 0.2, %v2834_v54  ;;  %v2836_v19 = vadd.f32 %v5763_v8, %v2798_v48 }
 0x546   : > { %v4188_v23 = vpop.eup %4187  ;;  %vm2867_vm7 = vcmp.ge.f32.partialorder %v2835_v52, 0.0  ;;  %v2899_v5 = vmul.f32 0.2, %v2835_v52  ;;  %v2837_v25 = vadd.f32 %v5763_v8, %v2799_v32  ;;  %v2800_v7 = vmul.f32 %v5748_v34, %v2762_v51 }
 0x547   : > { %v4190_v3 = vpop.eup %4189  ;;  %v3912_v31 = vpack.c.bf16 %v3153_v33, %v3152_v43  ;;  %v5945_v35 = vmul.f32 0.2, %v5889_v58  ;;  %v2930_v38 = vsel %vm2866_vm6, %v2834_v54, %v2898_v40  ;;  %v2765_v57 = vmul.f32 %v4188_v23, %v5696_v26  ;;  %v6188_v26 = vld [vmem:[#allocation41_spill] sm:$0xff]  ;;  %v6192_v33 = vld [vmem:[#allocation39_spill] sm:$0xff] }
 0x548   : > { %v2931_v49 = vsel %vm2867_vm7, %v2835_v52, %v2899_v5  ;;  %v3154_v10 = vmul.f32 %v6186_v1, %v2930_v38  ;;  %vm2868_vm8 = vcmp.ge.f32.partialorder %v2836_v19, 0.0  ;;  %vm2869_vm9 = vcmp.ge.f32.partialorder %v2837_v25, 0.0 }
 0x549   : > { %3913 = vmatprep.subr.bf16.mxu1 %v3912_v31  ;;  %v3155_v9 = vmul.f32 %v6187_v46, %v2931_v49  ;;  %v2900_v37 = vmul.f32 0.2, %v2836_v19  ;;  %v2901_v17 = vmul.f32 0.2, %v2837_v25  ;;  %v2801_v41 = vmul.f32 %v5748_v34, %v2763_v6  ;;  %v6195_v46 = vld [vmem:[#allocation46_spill] sm:$0xff] }
 0x54a   : > { %v4192_v0 = vpop.eup %4191  ;;  %3915 = vmatpush3.bf16.msra.mxu1 %v3914_v4  ;;  %v2838_v59 = vadd.f32 %v5763_v8, %v2800_v7  ;;  %v3142_v63 = vmul.f32 %v6188_v26, %v2918_v50  ;;  %v3143_v45 = vmul.f32 %v6189_v28, %v2919_v2  ;;  %v2764_v12 = vmul.f32 %v4190_v3, %v5699_v27  ;;  %v6191_v50 = vld [vmem:[#allocation38_spill] sm:$0xff]  ;;  %v3045_v28 = vpop.permute.xlu1 %3044 }
 0x54b   : > { %v4194_v53 = vpop.eup %4193  ;;  %v2767_v60 = vmul.f32 %v4192_v0, %v5708_v39  ;;  %v3916_v18 = vpack.c.bf16 %v3155_v9, %v3154_v10  ;;  %v2932_v54 = vsel %vm2868_vm8, %v2836_v19, %v2900_v37  ;;  %v2933_v30 = vsel %vm2869_vm9, %v2837_v25, %v2901_v17  ;;  %v3130_v25 = vpop.permute.xlu0 %3129 }
 0x54c   : > { %v2766_v11 = vmul.f32 %v4194_v53, %v5711_v56  ;;  %v3156_v4 = vmul.f32 %v6190_v61, %v2932_v54  ;;  %v2839_v6 = vadd.f32 %v5763_v8, %v2801_v41  ;;  %v3157_v48 = vmul.f32 %v6191_v50, %v2933_v30 }
 0x54d   : > { %v2805_v22 = vmul.f32 %v5748_v34, %v2767_v60  ;;  %3917 = vmatprep.subr.bf16.mxu1 %v3916_v18  ;;  %vm2870_vm10 = vcmp.ge.f32.partialorder %v2838_v59, 0.0  ;;  %v2902_v32 = vmul.f32 0.2, %v2838_v59  ;;  %v3926_v56 = vpack.c.bf16 %v3143_v45, %v3142_v63 }
 0x54e   : > { %v2804_v27 = vmul.f32 %v5748_v34, %v2766_v11  ;;  %3919 = vmatpush3.bf16.msra.mxu1 %v3918_v47  ;;  %vm2871_vm11 = vcmp.ge.f32.partialorder %v2839_v6, 0.0  ;;  %v2903_v39 = vmul.f32 0.2, %v2839_v6  ;;  %v3920_v55 = vpack.c.bf16 %v3157_v48, %v3156_v4 }
 0x54f   : > { %v2843_v51 = vadd.f32 %v5763_v8, %v2805_v22  ;;  %v2934_v21 = vsel %vm2870_vm10, %v2838_v59, %v2902_v32  ;;  %v2802_v43 = vmul.f32 %v5748_v34, %v2764_v12  ;;  %v2803_v19 = vmul.f32 %v5748_v34, %v2765_v57  ;;  %v3050_v17 = vpop.permute.xlu0 %3049  ;;  %v6196_v59 = vld [vmem:[#allocation45_spill] sm:$0xff] }
 0x550   : > { %v2842_v52 = vadd.f32 %v5763_v8, %v2804_v27  ;;  %v2935_v24 = vsel %vm2871_vm11, %v2839_v6, %v2903_v39  ;;  %v3158_v40 = vmul.f32 %v6192_v33, %v2934_v21  ;;  %3921 = vmatprep.subr.bf16.mxu1 %v3920_v55  ;;  %v2825_v3 = vadd.f32 %v5763_v8, %v5853_v42 }
 0x551   : > { %vm2875_vm12 = vcmp.ge.f32.partialorder %v2843_v51, 0.0  ;;  %v2907_v23 = vmul.f32 0.2, %v2843_v51  ;;  %v3159_v16 = vmul.f32 %v6193_v14, %v2935_v24  ;;  %v2840_v47 = vadd.f32 %v5763_v8, %v2802_v43 }
 0x552   : > { %vm2874_vm13 = vcmp.ge.f32.partialorder %v2842_v52, 0.0  ;;  %v2906_v5 = vmul.f32 0.2, %v2842_v52  ;;  %3923 = vmatpush3.bf16.msra.mxu1 %v3922_v15  ;;  %v2841_v7 = vadd.f32 %v5763_v8, %v2803_v19  ;;  %vm2856_vm1 = vcmp.ge.f32.partialorder %v5879_v20, 0.0 }
 0x553   : > { %v2939_v34 = vsel %vm2875_vm12, %v2843_v51, %v2907_v23  ;;  %v3924_v31 = vpack.c.bf16 %v3159_v16, %v3158_v40  ;;  %vm2872_vm14 = vcmp.ge.f32.partialorder %v2840_v47, 0.0  ;;  %v2904_v38 = vmul.f32 0.2, %v2840_v47 }
 0x554   : > { %v2938_v2 = vsel %vm2874_vm13, %v2842_v52, %v2906_v5  ;;  %v3163_v57 = vmul.f32 %v3130_v25, %v2939_v34  ;;  %vm2873_vm15 = vcmp.ge.f32.partialorder %v2841_v7, 0.0  ;;  %v2905_v49 = vmul.f32 0.2, %v2841_v7 }
 0x555   : > { %v3162_v1 = vmul.f32 %v5729_v13, %v2938_v2  ;;  %3925 = vmatprep.subr.bf16.mxu1 %v3924_v31  ;;  %v2936_v10 = vsel %vm2872_vm14, %v2840_v47, %v2904_v38  ;;  %vm2857_vm2 = vcmp.ge.f32.partialorder %v2825_v3, 0.0  ;;  %v2888_v8 = vmul.f32 0.2, %v5879_v20 }
 0x556   : > { %3927 = vmatpush3.bf16.msra.mxu1 %v3926_v56  ;;  %v2937_v29 = vsel %vm2873_vm15, %v2841_v7, %v2905_v49  ;;  %v3160_v15 = vmul.f32 %v6194_v44, %v2936_v10  ;;  %v2889_v42 = vmul.f32 0.2, %v2825_v3  ;;  %vm2859_vm3 = vcmp.ge.f32.partialorder %v5889_v58, 0.0 }
 0x557   : > { %v3161_v9 = vmul.f32 %v6195_v46, %v2937_v29  ;;  %v2890_v37 = vmul.f32 0.2, %v5899_v36  ;;  %v2920_v13 = vsel %vm2856_vm1, %v5879_v20, %v2888_v8  ;;  %v3932_v45 = vpack.c.bf16 %v3163_v57, %v3162_v1 }
 0x558   : > { %v2921_v0 = vsel %vm2857_vm2, %v2825_v3, %v2889_v42  ;;  %v3144_v26 = vmul.f32 %v6196_v59, %v2920_v13  ;;  %v2923_v53 = vsel %vm2859_vm3, %v5889_v58, %v5945_v35 }
 0x559   : > { %v3928_v41 = vpack.c.bf16 %v3161_v9, %v3160_v15  ;;  %v3145_v63 = vmul.f32 %v5731_v62, %v2921_v0  ;;  %v3147_v12 = vmul.f32 %v3050_v17, %v2923_v53  ;;  %v2922_v20 = vsel %vm2858_vm4, %v5899_v36, %v2890_v37 }
 0x55a   : > { %v3146_v18 = vmul.f32 %v3045_v28, %v2922_v20 }
 0x55b   : > { %3929 = vmatprep.subr.bf16.mxu1 %v3928_v41  ;;  %v3930_v60 = vpack.c.bf16 %v3145_v63, %v3144_v26 }
 0x55c   : > { %v3934_v54 = vpack.c.bf16 %v3147_v12, %v3146_v18 }
 0x55d   : > { %3931 = vmatpush3.bf16.msra.mxu1 %v3930_v60 }
 0x55e   : > { %3933 = vmatprep.subr.bf16.mxu1 %v3932_v45 }
 0x561   : > { %3935 = vmatpush3.bf16.msra.mxu1 %v3934_v54 }
 0x568   : > { %v4062_v11 = vpop.trf.xlu1 }
 0x569   : > { %v4066_v30 = vunpack.i.h.bf16 %v4062_v11  ;;  %v4063_v62 = vunpack.i.l.bf16 %v4062_v11 }
 0x56b   : > { %3293 = vmatprep.mubr.f32.mxu1 %v4063_v62 }
 0x56c   : > { %3294 = vmatmul.mubr.f32.vlgmr.msra.gmra.mrb[32].mxu1 %v4066_v30 }
 0x63f   : > { %v3689_v58 = vpop.f32.mrb[32].mxu1 }
 0x640   : > { %v3690_v35 = vpop.f32.mrb[33].mxu1 }
 0x641   : > { %v3691_v61 = vadd.f32 %v3690_v35, %v3689_v58 }
 0x643   : > { %3300 = vst [vmem:[%s445_s18] sm:$0xff] %v3691_v61 }
 0x644   : > { %4209 = shalt.err (!%p4206_p5)
}
 0x645   : > { %s4210_s28 = scalar_lea.hbm %s6005_s20, 128  ;;  %s4214_s19 = scalar_lea.hbm %s6064_s12, 256 }
 0x646   : > { %p4211_p6 = scmp.ne.s32.totalorder %s6005_s20, %s4210_s28  ;;  %p4215_p10 = scmp.lt.u32.totalorder %s6005_s20, %s6064_s12 }
 0x647   : > { %p4216_p11 = scmp.lt.u32.totalorder %s4214_s19, %s4210_s28  ;;  %p4218_p13 = scmp.lt.u32.totalorder %s4210_s28, %s6005_s20 }
 0x648   : > { %p4212_p7 = pnand %p4211_p6, %p4385_p4 }
 0x649   : > { %p4217_p12 = por %p4216_p11, %p4215_p10 }
 0x64a   : > { %p4213_p9 = pneg %p4212_p7 }
 0x64b   : > { %p4219_p0 = por %p4218_p13, %p4217_p12 }
 0x64d   : > { %p4220_p1 = pnand %p4219_p0, %p4213_p9 }
 0x64f   : > { %4223 = shalt.err (!%p4220_p1)
}
 0x650   : > { %3968 = dma.vmem_to_hbm [thread:$0]  (%p4385_p4), %s6007_s14, 128, %s6005_s20, %s3302_s27  }
 0x651 PF: > { %p3974_p2 = scmp.ge.s32.totalorder %s4274_s26, 2  ;;  %s3327_s1 = sand.u32 1, %s4254_s21  }
 0x652   : > { %s3328_s2 = scalar_lea.sflag [#allocation3], %s3327_s1 }
 0x653   : > { %p3971_p3 = pnand %p3974_p2, %p4392_p8 }
 0x655   : > { %4249 = dma.done.wait (!%p3971_p3), %s3328_s2, 128  }
 0x656   : > { %4251 = vsyncadd (!%p3971_p3), %s3328_s2, 4294967168  ;;  %s25_s26 = sadd.s32 1, %s4274_s26   ;;  %s6197_s21 = smov %s4258_s22 }
 0x657   : > { %p22_p5 = scmp.ge.s32.totalorder %s25_s26, 4   ;;  %s6198_s22 = smov %s4262_s23 }
 0x658   : > { %s6199_s23 = smov %s4398_s16  ;;  %s6200_s24 = smov %s4270_s25 }
 0x659   : > { %s6201_s25 = smov %s6203_s29  ;;  %24 = sbr.rel (!%p22_p5) target bundleno = 8 (0x8), region = 110 }
 0x660   :  { %3333 = vsyncpa [#allocation3], 1 }
 0x661   :  { %3335 = vsyncpa [#allocation3 + $0x1], 1 }

</bundles_post_ra>
